<compile_context>
chip_gen: v6e
topology: v6e:2x2x1
jax: 0.10.0
libtpu: 0.0.40
codegen_flags: <defaults>
</compile_context>

<pallas_src>
import functools

import jax
import jax.numpy as jnp
from jax.experimental import pallas as pl
from jax.experimental.pallas import tpu as pltpu

IGNORE_INDEX = 255
DICE_SMOOTH = 1e-5
# seg logits are provably bounded in [0, Q] (softmaxed class weights in [0,1]
# summed over Q queries, each times a sigmoid in [0,1]); exp() of values up to
# ~80 is safely below f32 overflow, so for Q <= 80 logsumexp needs no max pass.
_MAX_SAFE_LOGIT_Q = 80


def _bilinear_matrix(in_size: int, out_size: int) -> jnp.ndarray:
    """(out_size, in_size) matrix M such that M @ x equals 1-D bilinear
    resize with align_corners=False (PyTorch semantics)."""
    scale = in_size / out_size
    i = jnp.arange(out_size, dtype=jnp.float32)
    src = (i + 0.5) * scale - 0.5
    src = jnp.maximum(src, 0.0)                                  # PyTorch clamps <0 to 0
    i0 = jnp.minimum(jnp.floor(src).astype(jnp.int32), in_size - 1)
    i1 = jnp.minimum(i0 + 1, in_size - 1)
    l1 = src - i0.astype(jnp.float32)
    l0 = 1.0 - l1
    m = jnp.zeros((out_size, in_size), jnp.float32)
    rows = jnp.arange(out_size)
    m = m.at[rows, i0].add(l0)
    m = m.at[rows, i1].add(l1)
    return m


def _task_head_kernel(cls_ref, wy_ref, tmpw_ref, gt_ref, stats_ref,
                      seg_ref, acc_ref, *,
                      num_classes, num_queries, out_w, tile_h,
                      use_max_sub, trans_dtype):
    """One grid step = one (batch, row-tile).  grid = (B, Ht), fully parallel.

    cls_ref  : SMEM (B*Q*C,) f32          -- softmaxed class scores (prefetch)
    wy_ref   : VMEM (tile_h, h_in)        -- row tile of the h-interp matrix
    tmpw_ref : VMEM (1, Q, h_in, W)       -- masks @ Wx^T (w-half of interp)
    gt_ref   : VMEM (1, tile_h, W) int8   -- labels, 255 remapped to -1
    stats_ref: VMEM (1, 1, 8, 128) f32    -- loss partials for this tile
    seg_ref  : VMEM (C, tile_h, W) f32    -- class-mixed logits, then exps
    acc_ref  : VMEM (2, tile_h, W) f32    -- [0]=softmax denom, [1]=picked logit
    """
    C, Q, W = num_classes, num_queries, out_w
    b = pl.program_id(0)
    base = b * (Q * C)

    wy_tile = wy_ref[...]                               # loop-invariant, 1 vreg-ish

    # --- Pass 1: stream over queries ----------------------------------------
    # seg_ref[c] = sum_q cls[b,q,c] * sigmoid(Wy_tile @ tmpw[b,q])
    seg_ref[...] = jnp.zeros_like(seg_ref)

    def q_body(q, carry):
        rhs = tmpw_ref[0, q]                            # (h_in, W), leading-dim index
        up_q = jnp.dot(wy_tile, rhs, preferred_element_type=jnp.float32)
        sig_q = jax.nn.sigmoid(up_q.astype(trans_dtype)).astype(jnp.float32)

        def c_body(c, inner):
            w_qc = cls_ref[base + q * C + c]            # SMEM scalar
            seg_ref[c] = seg_ref[c] + w_qc * sig_q
            return inner

        return jax.lax.fori_loop(0, C, c_body, carry, unroll=True)

    jax.lax.fori_loop(0, Q, q_body, 0)

    # --- fused CE + dice partials for this tile ------------------------------
    gt = gt_ref[0].astype(jnp.int32)                    # (tile_h, W); ignore == -1
    validf = (gt >= 0).astype(jnp.float32)

    if use_max_sub:
        # Only traced for Q > 80 where exp(seg) could overflow f32.
        def m_body(c, m):
            return jnp.maximum(m, seg_ref[c])
        shift = jax.lax.fori_loop(0, C, m_body,
                                  jnp.zeros((tile_h, W), jnp.float32))
    else:
        shift = None                                    # seg in [0, Q], exp is safe

    # Pass 2: softmax denominator + picked target logit; overwrite seg->exp.
    acc_ref[...] = jnp.zeros_like(acc_ref)

    def b_body(c, carry):
        seg_c = seg_ref[c]
        x = seg_c - shift if use_max_sub else seg_c
        e_c = jnp.exp(x.astype(trans_dtype)).astype(jnp.float32)
        seg_ref[c] = e_c                                # reuse storage: logits -> exps
        acc_ref[0] = acc_ref[0] + e_c
        acc_ref[1] = acc_ref[1] + jnp.where(gt == c, seg_c, 0.0)
        return carry

    jax.lax.fori_loop(0, C, b_body, 0)

    denom = acc_ref[0]
    picked = acc_ref[1]
    inv_denom = pl.reciprocal(denom, approx=True)       # EUP slot, nearly free
    lse = (jnp.log(denom) + shift) if use_max_sub else jnp.log(denom)
    ce_sum = jnp.sum(validf * lse - picked)             # sum of per-pixel CE
    cnt = jnp.sum(validf)                               # number of valid pixels
    pv = inv_denom * validf

    row_i = jax.lax.broadcasted_iota(jnp.int32, (8, 128), 0)
    lane_i = jax.lax.broadcasted_iota(jnp.int32, (8, 128), 1)

    # Pass 3: per-class dice partials (inter, p^2-sum, t-sum), one pass over C.
    def c_stats(c, stats):
        e_c = seg_ref[c]                                # exp(seg_c - shift)
        p_c = e_c * pv                                  # masked softmax prob
        t_c = (gt == c).astype(jnp.float32)             # one-hot target (ignore never matches)
        inter_c = jnp.sum(p_c * t_c)
        psum_c = jnp.sum(p_c * p_c)
        tsum_c = jnp.sum(t_c)
        sel = lane_i == c
        stats = jnp.where((row_i == 0) & sel, inter_c, stats)
        stats = jnp.where((row_i == 1) & sel, psum_c, stats)
        stats = jnp.where((row_i == 2) & sel, tsum_c, stats)
        return stats

    stats = jax.lax.fori_loop(0, C, c_stats, jnp.zeros((8, 128), jnp.float32))
    stats = jnp.where((row_i == 3) & (lane_i == 0), ce_sum, stats)
    stats = jnp.where((row_i == 3) & (lane_i == 1), cnt, stats)
    stats_ref[0, 0] = stats


def task_head_forward(cls_pred, masks_pred, gt_label, *,
                      out_size=256, tile_h=128,
                      ce_weight=0.3, dice_weight=0.7,
                      matmul_dtype=jnp.bfloat16,
                      transcendental_dtype=jnp.float32,
                      single_buffer_tmpw=False,
                      vmem_limit_bytes=None):
    """Pallas TPU implementation of TaskHead.forward.

    cls_pred:   (B, Q, C) float    -- class logits per query
    masks_pred: (B, Q, h, w) float -- low-res mask logits per query
    gt_label:   (B, out_size, out_size) int -- labels in [0, C) or 255 (ignore)

    tile_h: 128 everywhere-safe; 256 recommended on v6e/v7x (raise
            vmem_limit_bytes to ~48-64 MiB).
    matmul_dtype: bf16 MXU operands by default (f32 accumulation); use
            jnp.float32 for PyTorch-exact parity testing.
    transcendental_dtype: set jnp.bfloat16 on v6e/v7x to run the sigmoid/exp
            path on the bf16 EUP (keep f32 on v5e).
    single_buffer_tmpw: set True (v7x, production sizes) to stop
            double-buffering the batch-invariant tmpw block.
    """
    B, Q, C = cls_pred.shape
    _, _, h_in, w_in = masks_pred.shape
    H = W = out_size
    assert H % tile_h == 0 and tile_h % 8 == 0
    assert W % 128 == 0
    assert C <= 128
    Ht = H // tile_h

    # -- tiny JAX glue --------------------------------------------------------
    # softmax of (B, Q, C); flattened so the kernel reads scalars from SMEM.
    # (For very large B*Q*C, prefetch only the current batch slice instead.)
    cls_score = jax.nn.softmax(cls_pred.astype(jnp.float32), axis=-1)
    cls_flat = cls_score.reshape(-1)                              # (B*Q*C,)

    wy = _bilinear_matrix(h_in, H)                                # (H, h_in)
    wxt = _bilinear_matrix(w_in, W).T                             # (w_in, W)

    # w-axis half of the separable bilinear resize, hoisted out of the kernel
    # and built directly in (B, Q, h_in, W) order (no transpose round-trip).
    tmpw = jnp.einsum('bqhw,wx->bqhx', masks_pred.astype(jnp.float32), wxt)

    wy_m = wy.astype(matmul_dtype)
    tmpw_m = tmpw.astype(matmul_dtype)
    # Labels as int8 (quarter the HBM read / VMEM footprint vs int32);
    # 255 (ignore) is remapped to -1.  Invalid labels >= 128 wrap negative and
    # are treated as ignored (PyTorch would error on them anyway).
    gt_i8 = jnp.where(gt_label == IGNORE_INDEX, -1, gt_label).astype(jnp.int8)

    use_max_sub = Q > _MAX_SAFE_LOGIT_Q

    kernel = functools.partial(
        _task_head_kernel, num_classes=C, num_queries=Q, out_w=W,
        tile_h=tile_h, use_max_sub=use_max_sub,
        trans_dtype=transcendental_dtype)

    tmpw_spec_kwargs = {}
    if single_buffer_tmpw:
        tmpw_spec_kwargs = dict(pipeline_mode=pl.Buffered(1))

    grid_spec = pltpu.PrefetchScalarGridSpec(
        num_scalar_prefetch=1,                                    # cls weights -> SMEM
        grid=(B, Ht),
        in_specs=[
            pl.BlockSpec((tile_h, h_in), lambda b, h, cls: (h, 0)),        # Wy row tile
            pl.BlockSpec((1, Q, h_in, W), lambda b, h, cls: (b, 0, 0, 0),  # masks @ Wx^T
                         **tmpw_spec_kwargs),
            pl.BlockSpec((1, tile_h, W), lambda b, h, cls: (b, h, 0)),     # gt labels
        ],
        out_specs=pl.BlockSpec((1, 1, 8, 128), lambda b, h, cls: (b, h, 0, 0)),
        scratch_shapes=[
            pltpu.VMEM((C, tile_h, W), jnp.float32),   # class-mixed logits, then exps
            pltpu.VMEM((2, tile_h, W), jnp.float32),   # softmax denom / picked logit
        ],
    )
    stats = pl.pallas_call(
        kernel,
        grid_spec=grid_spec,
        out_shape=jax.ShapeDtypeStruct((B, Ht, 8, 128), jnp.float32),
        compiler_params=pltpu.CompilerParams(
            dimension_semantics=("parallel", "parallel"),
            vmem_limit_bytes=vmem_limit_bytes),
    )(cls_flat, wy_m, tmpw_m, gt_i8)

    # -- tiny scalar combine in JAX -------------------------------------------
    s = jnp.sum(stats, axis=(0, 1))                 # (8, 128) total partials
    inter = s[0, :C]
    psum = s[1, :C]
    tsum = s[2, :C]
    ce_sum = s[3, 0]
    cnt = s[3, 1]

    ce_loss = ce_sum / cnt                          # mean over non-ignored pixels
    dice_per_class = 1.0 - (2.0 * inter + DICE_SMOOTH) / (psum + tsum + DICE_SMOOTH)
    dice_loss = jnp.mean(dice_per_class)
    return dict(ce_loss=ce_weight * ce_loss, dice_loss=dice_weight * dice_loss)


if __name__ == "__main__":
    # small shapes consistent with the module: batch=2, queries=8, classes=3,
    # low-res masks 16x16, upsample target 256 (module default is 1024).
    B, Q, C = 2, 8, 3
    h_in = w_in = 16
    OUT = 256

    key = jax.random.PRNGKey(0)
    k1, k2, k3, k4 = jax.random.split(key, 4)
    cls_pred = jax.random.normal(k1, (B, Q, C), jnp.float32)
    masks_pred = jax.random.normal(k2, (B, Q, h_in, w_in), jnp.float32)
    gt = jax.random.randint(k3, (B, OUT, OUT), 0, C, dtype=jnp.int32)
    ignore = jax.random.bernoulli(k4, 0.1, (B, OUT, OUT))
    gt = jnp.where(ignore, IGNORE_INDEX, gt)

    losses = task_head_forward(cls_pred, masks_pred, gt, out_size=OUT, tile_h=128)
    losses = jax.tree_util.tree_map(jax.block_until_ready, losses)
    print("KERNEL_OK")
</pallas_src>

<mosaic_0001>
module attributes {stable_mosaic.version = 11 : i64} {
  func.func @_task_head_kernel(%arg0: i32, %arg1: i32, %arg2: memref<48xf32, #tpu.memory_space<smem>>, %arg3: memref<128x16xbf16, #tpu.memory_space<vmem>>, %arg4: memref<1x8x16x256xbf16, #tpu.memory_space<vmem>>, %arg5: memref<1x128x256xi8, #tpu.memory_space<vmem>>, %arg6: memref<1x1x8x128xf32, #tpu.memory_space<vmem>>, %arg7: memref<3x128x256xf32, #tpu.memory_space<vmem>>, %arg8: memref<2x128x256xf32, #tpu.memory_space<vmem>>) attributes {dimension_semantics = [#tpu.dimension_semantics<parallel>, #tpu.dimension_semantics<parallel>], iteration_bounds = array<i64: 2, 2>, scalar_prefetch = 1 : i64, scratch_operands = 2 : i64, tpu.core_type = #tpu.core_type<tc>, window_params = [{transform_indices = @transform_0, window_bounds = array<i64: 128, 16>}, {transform_indices = @transform_1, window_bounds = array<i64: 1, 8, 16, 256>}, {transform_indices = @transform_2, window_bounds = array<i64: 1, 128, 256>}, {transform_indices = @transform_3, window_bounds = array<i64: 1, 1, 8, 128>}]} {
    %c24_i32 = arith.constant 24 : i32
    %0 = arith.muli %arg0, %c24_i32 : i32
    %c0 = arith.constant 0 : index
    %c0_0 = arith.constant 0 : index
    %1 = vector.load %arg3[%c0, %c0_0] : memref<128x16xbf16, #tpu.memory_space<vmem>>, vector<128x16xbf16>
    %cst = arith.constant 0.000000e+00 : f32
    %2 = vector.broadcast %cst : f32 to vector<3x128x256xf32>
    %c0_1 = arith.constant 0 : index
    %c0_2 = arith.constant 0 : index
    %c0_3 = arith.constant 0 : index
    %3 = vector.load %arg7[%c0_1, %c0_2, %c0_3] : memref<3x128x256xf32, #tpu.memory_space<vmem>>, vector<3x128x256xf32>
    tpu.vector_store %arg7[%c0_1, %c0_2, %c0_3], %2 {strides = array<i32>} : memref<3x128x256xf32, #tpu.memory_space<vmem>>, vector<3x128x256xf32>,
    %c0_i32 = arith.constant 0 : i32
    %c8_i32 = arith.constant 8 : i32
    %4 = arith.addi %c0_i32, %c8_i32 : i32
    %c1_i32 = arith.constant 1 : i32
    scf.for %arg9 = %c0_i32 to %4 step %c1_i32  : i32 {
      %c0_36 = arith.constant 0 : index
      %54 = arith.index_cast %arg9 : i32 to index
      %c0_37 = arith.constant 0 : index
      %c0_38 = arith.constant 0 : index
      %55 = vector.load %arg4[%c0_36, %54, %c0_37, %c0_38] : memref<1x8x16x256xbf16, #tpu.memory_space<vmem>>, vector<1x1x16x256xbf16>
      %56 = vector.shape_cast %55 : vector<1x1x16x256xbf16> to vector<16x256xbf16>
      %cst_39 = arith.constant dense<0.000000e+00> : vector<128x256xf32>
      %57 = tpu.matmul %1, %56, %cst_39 {dimension_numbers = #tpu.dot_dimension_numbers<[1], [0], [0], [1], [0, 0, 1, 1], [], []>} : vector<128x16xbf16>, vector<16x256xbf16>, vector<128x256xf32> -> vector<128x256xf32>
      %58 = arith.negf %57 : vector<128x256xf32>
      %59 = math.exp %58 : vector<128x256xf32>
      %cst_40 = arith.constant 1.000000e+00 : f32
      %60 = vector.broadcast %cst_40 : f32 to vector<128x256xf32>
      %61 = arith.addf %60, %59 : vector<128x256xf32>
      %62 = arith.divf %60, %61 : vector<128x256xf32>
      %c0_i32_41 = arith.constant 0 : i32
      %c3_i32_42 = arith.constant 3 : i32
      %63 = arith.muli %arg9, %c3_i32_42 : i32
      %64 = arith.addi %0, %63 : i32
      %65 = arith.addi %64, %c0_i32_41 : i32
      %66 = arith.index_cast %65 : i32 to index
      %67 = memref.load %arg2[%66] : memref<48xf32, #tpu.memory_space<smem>>
      %68 = arith.index_cast %c0_i32_41 : i32 to index
      %c0_43 = arith.constant 0 : index
      %c0_44 = arith.constant 0 : index
      %69 = vector.load %arg7[%68, %c0_43, %c0_44] : memref<3x128x256xf32, #tpu.memory_space<vmem>>, vector<1x128x256xf32>
      %70 = vector.shape_cast %69 : vector<1x128x256xf32> to vector<128x256xf32>
      %71 = vector.broadcast %67 : f32 to vector<128x256xf32>
      %72 = arith.mulf %71, %62 : vector<128x256xf32>
      %73 = arith.addf %70, %72 : vector<128x256xf32>
      %74 = arith.index_cast %c0_i32_41 : i32 to index
      %c0_45 = arith.constant 0 : index
      %c0_46 = arith.constant 0 : index
      %75 = vector.load %arg7[%74, %c0_45, %c0_46] : memref<3x128x256xf32, #tpu.memory_space<vmem>>, vector<1x128x256xf32>
      %76 = vector.shape_cast %75 : vector<1x128x256xf32> to vector<128x256xf32>
      %77 = vector.shape_cast %73 : vector<128x256xf32> to vector<1x128x256xf32>
      tpu.vector_store %arg7[%74, %c0_45, %c0_46], %77 {strides = array<i32>} : memref<3x128x256xf32, #tpu.memory_space<vmem>>, vector<1x128x256xf32>,
      %c1_i32_47 = arith.constant 1 : i32
      %c3_i32_48 = arith.constant 3 : i32
      %78 = arith.muli %arg9, %c3_i32_48 : i32
      %79 = arith.addi %0, %78 : i32
      %80 = arith.addi %79, %c1_i32_47 : i32
      %81 = arith.index_cast %80 : i32 to index
      %82 = memref.load %arg2[%81] : memref<48xf32, #tpu.memory_space<smem>>
      %83 = arith.index_cast %c1_i32_47 : i32 to index
      %c0_49 = arith.constant 0 : index
      %c0_50 = arith.constant 0 : index
      %84 = vector.load %arg7[%83, %c0_49, %c0_50] : memref<3x128x256xf32, #tpu.memory_space<vmem>>, vector<1x128x256xf32>
      %85 = vector.shape_cast %84 : vector<1x128x256xf32> to vector<128x256xf32>
      %86 = vector.broadcast %82 : f32 to vector<128x256xf32>
      %87 = arith.mulf %86, %62 : vector<128x256xf32>
      %88 = arith.addf %85, %87 : vector<128x256xf32>
      %89 = arith.index_cast %c1_i32_47 : i32 to index
      %c0_51 = arith.constant 0 : index
      %c0_52 = arith.constant 0 : index
      %90 = vector.load %arg7[%89, %c0_51, %c0_52] : memref<3x128x256xf32, #tpu.memory_space<vmem>>, vector<1x128x256xf32>
      %91 = vector.shape_cast %90 : vector<1x128x256xf32> to vector<128x256xf32>
      %92 = vector.shape_cast %88 : vector<128x256xf32> to vector<1x128x256xf32>
      tpu.vector_store %arg7[%89, %c0_51, %c0_52], %92 {strides = array<i32>} : memref<3x128x256xf32, #tpu.memory_space<vmem>>, vector<1x128x256xf32>,
      %c2_i32 = arith.constant 2 : i32
      %c3_i32_53 = arith.constant 3 : i32
      %93 = arith.muli %arg9, %c3_i32_53 : i32
      %94 = arith.addi %0, %93 : i32
      %95 = arith.addi %94, %c2_i32 : i32
      %96 = arith.index_cast %95 : i32 to index
      %97 = memref.load %arg2[%96] : memref<48xf32, #tpu.memory_space<smem>>
      %98 = arith.index_cast %c2_i32 : i32 to index
      %c0_54 = arith.constant 0 : index
      %c0_55 = arith.constant 0 : index
      %99 = vector.load %arg7[%98, %c0_54, %c0_55] : memref<3x128x256xf32, #tpu.memory_space<vmem>>, vector<1x128x256xf32>
      %100 = vector.shape_cast %99 : vector<1x128x256xf32> to vector<128x256xf32>
      %101 = vector.broadcast %97 : f32 to vector<128x256xf32>
      %102 = arith.mulf %101, %62 : vector<128x256xf32>
      %103 = arith.addf %100, %102 : vector<128x256xf32>
      %104 = arith.index_cast %c2_i32 : i32 to index
      %c0_56 = arith.constant 0 : index
      %c0_57 = arith.constant 0 : index
      %105 = vector.load %arg7[%104, %c0_56, %c0_57] : memref<3x128x256xf32, #tpu.memory_space<vmem>>, vector<1x128x256xf32>
      %106 = vector.shape_cast %105 : vector<1x128x256xf32> to vector<128x256xf32>
      %107 = vector.shape_cast %103 : vector<128x256xf32> to vector<1x128x256xf32>
      tpu.vector_store %arg7[%104, %c0_56, %c0_57], %107 {strides = array<i32>} : memref<3x128x256xf32, #tpu.memory_space<vmem>>, vector<1x128x256xf32>,
      %c3_i32_58 = arith.constant 3 : i32
    }
    %c8_i32_4 = arith.constant 8 : i32
    %c0_5 = arith.constant 0 : index
    %c0_6 = arith.constant 0 : index
    %c0_7 = arith.constant 0 : index
    %5 = vector.load %arg5[%c0_5, %c0_6, %c0_7] : memref<1x128x256xi8, #tpu.memory_space<vmem>>, vector<1x128x256xi8>
    %6 = vector.shape_cast %5 : vector<1x128x256xi8> to vector<128x256xi8>
    %7 = arith.extsi %6 : vector<128x256xi8> to vector<128x256xi32>
    %c0_i32_8 = arith.constant 0 : i32
    %8 = vector.broadcast %c0_i32_8 : i32 to vector<128x256xi32>
    %9 = arith.cmpi sge, %7, %8 : vector<128x256xi32>
    %10 = arith.extui %9 : vector<128x256xi1> to vector<128x256xi32>
    %11 = arith.sitofp %10 : vector<128x256xi32> to vector<128x256xf32>
    %cst_9 = arith.constant 0.000000e+00 : f32
    %12 = vector.broadcast %cst_9 : f32 to vector<2x128x256xf32>
    %c0_10 = arith.constant 0 : index
    %c0_11 = arith.constant 0 : index
    %c0_12 = arith.constant 0 : index
    %13 = vector.load %arg8[%c0_10, %c0_11, %c0_12] : memref<2x128x256xf32, #tpu.memory_space<vmem>>, vector<2x128x256xf32>
    tpu.vector_store %arg8[%c0_10, %c0_11, %c0_12], %12 {strides = array<i32>} : memref<2x128x256xf32, #tpu.memory_space<vmem>>, vector<2x128x256xf32>,
    %c0_i32_13 = arith.constant 0 : i32
    %c3_i32 = arith.constant 3 : i32
    %14 = arith.addi %c0_i32_13, %c3_i32 : i32
    %c1_i32_14 = arith.constant 1 : i32
    scf.for %arg9 = %c0_i32_13 to %14 step %c1_i32_14  : i32 {
      %54 = arith.index_cast %arg9 : i32 to index
      %c0_36 = arith.constant 0 : index
      %c0_37 = arith.constant 0 : index
      %55 = vector.load %arg7[%54, %c0_36, %c0_37] : memref<3x128x256xf32, #tpu.memory_space<vmem>>, vector<1x128x256xf32>
      %56 = vector.shape_cast %55 : vector<1x128x256xf32> to vector<128x256xf32>
      %57 = math.exp %56 : vector<128x256xf32>
      %58 = arith.index_cast %arg9 : i32 to index
      %c0_38 = arith.constant 0 : index
      %c0_39 = arith.constant 0 : index
      %59 = vector.load %arg7[%58, %c0_38, %c0_39] : memref<3x128x256xf32, #tpu.memory_space<vmem>>, vector<1x128x256xf32>
      %60 = vector.shape_cast %59 : vector<1x128x256xf32> to vector<128x256xf32>
      %61 = vector.shape_cast %57 : vector<128x256xf32> to vector<1x128x256xf32>
      tpu.vector_store %arg7[%58, %c0_38, %c0_39], %61 {strides = array<i32>} : memref<3x128x256xf32, #tpu.memory_space<vmem>>, vector<1x128x256xf32>,
      %c0_40 = arith.constant 0 : index
      %c0_41 = arith.constant 0 : index
      %c0_42 = arith.constant 0 : index
      %62 = vector.load %arg8[%c0_40, %c0_41, %c0_42] : memref<2x128x256xf32, #tpu.memory_space<vmem>>, vector<1x128x256xf32>
      %63 = vector.shape_cast %62 : vector<1x128x256xf32> to vector<128x256xf32>
      %64 = arith.addf %63, %57 : vector<128x256xf32>
      %c0_43 = arith.constant 0 : index
      %c0_44 = arith.constant 0 : index
      %c0_45 = arith.constant 0 : index
      %65 = vector.load %arg8[%c0_43, %c0_44, %c0_45] : memref<2x128x256xf32, #tpu.memory_space<vmem>>, vector<1x128x256xf32>
      %66 = vector.shape_cast %65 : vector<1x128x256xf32> to vector<128x256xf32>
      %67 = vector.shape_cast %64 : vector<128x256xf32> to vector<1x128x256xf32>
      tpu.vector_store %arg8[%c0_43, %c0_44, %c0_45], %67 {strides = array<i32>} : memref<2x128x256xf32, #tpu.memory_space<vmem>>, vector<1x128x256xf32>,
      %c1_46 = arith.constant 1 : index
      %c0_47 = arith.constant 0 : index
      %c0_48 = arith.constant 0 : index
      %68 = vector.load %arg8[%c1_46, %c0_47, %c0_48] : memref<2x128x256xf32, #tpu.memory_space<vmem>>, vector<1x128x256xf32>
      %69 = vector.shape_cast %68 : vector<1x128x256xf32> to vector<128x256xf32>
      %70 = vector.broadcast %arg9 : i32 to vector<128x256xi32>
      %71 = arith.cmpi eq, %7, %70 : vector<128x256xi32>
      %cst_49 = arith.constant 0.000000e+00 : f32
      %72 = vector.broadcast %cst_49 : f32 to vector<128x256xf32>
      %73 = arith.select %71, %56, %72 : vector<128x256xi1>, vector<128x256xf32>
      %74 = arith.addf %69, %73 : vector<128x256xf32>
      %c1_50 = arith.constant 1 : index
      %c0_51 = arith.constant 0 : index
      %c0_52 = arith.constant 0 : index
      %75 = vector.load %arg8[%c1_50, %c0_51, %c0_52] : memref<2x128x256xf32, #tpu.memory_space<vmem>>, vector<1x128x256xf32>
      %76 = vector.shape_cast %75 : vector<1x128x256xf32> to vector<128x256xf32>
      %77 = vector.shape_cast %74 : vector<128x256xf32> to vector<1x128x256xf32>
      tpu.vector_store %arg8[%c1_50, %c0_51, %c0_52], %77 {strides = array<i32>} : memref<2x128x256xf32, #tpu.memory_space<vmem>>, vector<1x128x256xf32>,
    }
    %c3_i32_15 = arith.constant 3 : i32
    %c0_16 = arith.constant 0 : index
    %c0_17 = arith.constant 0 : index
    %c0_18 = arith.constant 0 : index
    %15 = vector.load %arg8[%c0_16, %c0_17, %c0_18] : memref<2x128x256xf32, #tpu.memory_space<vmem>>, vector<1x128x256xf32>
    %16 = vector.shape_cast %15 : vector<1x128x256xf32> to vector<128x256xf32>
    %c1 = arith.constant 1 : index
    %c0_19 = arith.constant 0 : index
    %c0_20 = arith.constant 0 : index
    %17 = vector.load %arg8[%c1, %c0_19, %c0_20] : memref<2x128x256xf32, #tpu.memory_space<vmem>>, vector<1x128x256xf32>
    %18 = vector.shape_cast %17 : vector<1x128x256xf32> to vector<128x256xf32>
    %19 = tpu.reciprocal %16 {approx = true} : vector<128x256xf32> -> vector<128x256xf32>
    %20 = math.log %16 : vector<128x256xf32>
    %21 = arith.mulf %11, %20 : vector<128x256xf32>
    %22 = arith.subf %21, %18 : vector<128x256xf32>
    %23 = vector.shape_cast %22 : vector<128x256xf32> to vector<1x128x256xf32>
    %cst_21 = arith.constant dense<0.000000e+00> : vector<1xf32>
    %24 = vector.multi_reduction <add>, %23, %cst_21 [1, 2] : vector<1x128x256xf32> to vector<1xf32>
    %25 = vector.shape_cast %24 : vector<1xf32> to vector<1x1x1xf32>
    %26 = vector.extract %25[0, 0, 0] : f32 from vector<1x1x1xf32>
    %27 = vector.shape_cast %11 : vector<128x256xf32> to vector<1x128x256xf32>
    %cst_22 = arith.constant dense<0.000000e+00> : vector<1xf32>
    %28 = vector.multi_reduction <add>, %27, %cst_22 [1, 2] : vector<1x128x256xf32> to vector<1xf32>
    %29 = vector.shape_cast %28 : vector<1xf32> to vector<1x1x1xf32>
    %30 = vector.extract %29[0, 0, 0] : f32 from vector<1x1x1xf32>
    %31 = arith.mulf %19, %11 : vector<128x256xf32>
    %32 = tpu.iota {dimensions = array<i32: 0>} : vector<8x128xi32>
    %33 = tpu.iota {dimensions = array<i32: 1>} : vector<8x128xi32>
    %cst_23 = arith.constant 0.000000e+00 : f32
    %34 = vector.broadcast %cst_23 : f32 to vector<8x128xf32>
    %c0_i32_24 = arith.constant 0 : i32
    %c3_i32_25 = arith.constant 3 : i32
    %35 = arith.addi %c0_i32_24, %c3_i32_25 : i32
    %c1_i32_26 = arith.constant 1 : i32
    %36 = scf.for %arg9 = %c0_i32_24 to %35 step %c1_i32_26 iter_args(%arg10 = %34) -> (vector<8x128xf32>)  : i32 {
      %54 = arith.index_cast %arg9 : i32 to index
      %c0_36 = arith.constant 0 : index
      %c0_37 = arith.constant 0 : index
      %55 = vector.load %arg7[%54, %c0_36, %c0_37] : memref<3x128x256xf32, #tpu.memory_space<vmem>>, vector<1x128x256xf32>
      %56 = vector.shape_cast %55 : vector<1x128x256xf32> to vector<128x256xf32>
      %57 = arith.mulf %56, %31 : vector<128x256xf32>
      %58 = vector.broadcast %arg9 : i32 to vector<128x256xi32>
      %59 = arith.cmpi eq, %7, %58 : vector<128x256xi32>
      %60 = arith.extui %59 : vector<128x256xi1> to vector<128x256xi32>
      %61 = arith.sitofp %60 : vector<128x256xi32> to vector<128x256xf32>
      %62 = arith.mulf %57, %61 : vector<128x256xf32>
      %63 = vector.shape_cast %62 : vector<128x256xf32> to vector<1x128x256xf32>
      %cst_38 = arith.constant dense<0.000000e+00> : vector<1xf32>
      %64 = vector.multi_reduction <add>, %63, %cst_38 [1, 2] : vector<1x128x256xf32> to vector<1xf32>
      %65 = vector.shape_cast %64 : vector<1xf32> to vector<1x1x1xf32>
      %66 = vector.extract %65[0, 0, 0] : f32 from vector<1x1x1xf32>
      %67 = arith.mulf %57, %57 : vector<128x256xf32>
      %68 = vector.shape_cast %67 : vector<128x256xf32> to vector<1x128x256xf32>
      %cst_39 = arith.constant dense<0.000000e+00> : vector<1xf32>
      %69 = vector.multi_reduction <add>, %68, %cst_39 [1, 2] : vector<1x128x256xf32> to vector<1xf32>
      %70 = vector.shape_cast %69 : vector<1xf32> to vector<1x1x1xf32>
      %71 = vector.extract %70[0, 0, 0] : f32 from vector<1x1x1xf32>
      %72 = vector.shape_cast %61 : vector<128x256xf32> to vector<1x128x256xf32>
      %cst_40 = arith.constant dense<0.000000e+00> : vector<1xf32>
      %73 = vector.multi_reduction <add>, %72, %cst_40 [1, 2] : vector<1x128x256xf32> to vector<1xf32>
      %74 = vector.shape_cast %73 : vector<1xf32> to vector<1x1x1xf32>
      %75 = vector.extract %74[0, 0, 0] : f32 from vector<1x1x1xf32>
      %76 = vector.broadcast %arg9 : i32 to vector<8x128xi32>
      %77 = arith.cmpi eq, %33, %76 : vector<8x128xi32>
      %c0_i32_41 = arith.constant 0 : i32
      %78 = vector.broadcast %c0_i32_41 : i32 to vector<8x128xi32>
      %79 = arith.cmpi eq, %32, %78 : vector<8x128xi32>
      %80 = arith.andi %79, %77 : vector<8x128xi1>
      %81 = vector.broadcast %66 : f32 to vector<8x128xf32>
      %82 = arith.select %80, %81, %arg10 : vector<8x128xi1>, vector<8x128xf32>
      %c1_i32_42 = arith.constant 1 : i32
      %83 = vector.broadcast %c1_i32_42 : i32 to vector<8x128xi32>
      %84 = arith.cmpi eq, %32, %83 : vector<8x128xi32>
      %85 = arith.andi %84, %77 : vector<8x128xi1>
      %86 = vector.broadcast %71 : f32 to vector<8x128xf32>
      %87 = arith.select %85, %86, %82 : vector<8x128xi1>, vector<8x128xf32>
      %c2_i32 = arith.constant 2 : i32
      %88 = vector.broadcast %c2_i32 : i32 to vector<8x128xi32>
      %89 = arith.cmpi eq, %32, %88 : vector<8x128xi32>
      %90 = arith.andi %89, %77 : vector<8x128xi1>
      %91 = vector.broadcast %75 : f32 to vector<8x128xf32>
      %92 = arith.select %90, %91, %87 : vector<8x128xi1>, vector<8x128xf32>
      scf.yield %92 : vector<8x128xf32>
    }
    %c3_i32_27 = arith.constant 3 : i32
    %c3_i32_28 = arith.constant 3 : i32
    %37 = vector.broadcast %c3_i32_28 : i32 to vector<8x128xi32>
    %38 = arith.cmpi eq, %32, %37 : vector<8x128xi32>
    %c0_i32_29 = arith.constant 0 : i32
    %39 = vector.broadcast %c0_i32_29 : i32 to vector<8x128xi32>
    %40 = arith.cmpi eq, %33, %39 : vector<8x128xi32>
    %41 = arith.andi %38, %40 : vector<8x128xi1>
    %42 = vector.broadcast %26 : f32 to vector<8x128xf32>
    %43 = arith.select %41, %42, %36 : vector<8x128xi1>, vector<8x128xf32>
    %c3_i32_30 = arith.constant 3 : i32
    %44 = vector.broadcast %c3_i32_30 : i32 to vector<8x128xi32>
    %45 = arith.cmpi eq, %32, %44 : vector<8x128xi32>
    %c1_i32_31 = arith.constant 1 : i32
    %46 = vector.broadcast %c1_i32_31 : i32 to vector<8x128xi32>
    %47 = arith.cmpi eq, %33, %46 : vector<8x128xi32>
    %48 = arith.andi %45, %47 : vector<8x128xi1>
    %49 = vector.broadcast %30 : f32 to vector<8x128xf32>
    %50 = arith.select %48, %49, %43 : vector<8x128xi1>, vector<8x128xf32>
    %c0_32 = arith.constant 0 : index
    %c0_33 = arith.constant 0 : index
    %c0_34 = arith.constant 0 : index
    %c0_35 = arith.constant 0 : index
    %51 = vector.load %arg6[%c0_32, %c0_33, %c0_34, %c0_35] : memref<1x1x8x128xf32, #tpu.memory_space<vmem>>, vector<1x1x8x128xf32>
    %52 = vector.shape_cast %51 : vector<1x1x8x128xf32> to vector<8x128xf32>
    %53 = vector.shape_cast %50 : vector<8x128xf32> to vector<1x1x8x128xf32>
    tpu.vector_store %arg6[%c0_32, %c0_33, %c0_34, %c0_35], %53 {strides = array<i32>} : memref<1x1x8x128xf32, #tpu.memory_space<vmem>>, vector<1x1x8x128xf32>,
    return
  }
  func.func @transform_0(%arg0: i32, %arg1: i32, %arg2: memref<48xf32, #tpu.memory_space<smem>>) -> (i32, i32) {
    %c0_i32 = arith.constant 0 : i32
    %c0_i32_0 = arith.constant 0 : i32
    return %arg1, %c0_i32 : i32, i32
  }
  func.func @transform_1(%arg0: i32, %arg1: i32, %arg2: memref<48xf32, #tpu.memory_space<smem>>) -> (i32, i32, i32, i32) {
    %c0_i32 = arith.constant 0 : i32
    %c0_i32_0 = arith.constant 0 : i32
    %c0_i32_1 = arith.constant 0 : i32
    %c0_i32_2 = arith.constant 0 : i32
    return %arg0, %c0_i32, %c0_i32_0, %c0_i32_1 : i32, i32, i32, i32
  }
  func.func @transform_2(%arg0: i32, %arg1: i32, %arg2: memref<48xf32, #tpu.memory_space<smem>>) -> (i32, i32, i32) {
    %c0_i32 = arith.constant 0 : i32
    %c0_i32_0 = arith.constant 0 : i32
    return %arg0, %arg1, %c0_i32 : i32, i32, i32
  }
  func.func @transform_3(%arg0: i32, %arg1: i32, %arg2: memref<48xf32, #tpu.memory_space<smem>>) -> (i32, i32, i32, i32) {
    %c0_i32 = arith.constant 0 : i32
    %c0_i32_0 = arith.constant 0 : i32
    %c0_i32_1 = arith.constant 0 : i32
    return %arg0, %arg1, %c0_i32, %c0_i32_0 : i32, i32, i32, i32
  }
}

</mosaic_0001>

<bundles_post_ra>
// kernel: tpu_custom_call.1
= control target key start
LH: loop header
LB: loop body
LE: loop exit
PB: predicated region body
PF: predicated region fallthrough
CT: control target
= control target key end

     0   :  { %s5559_s0 = inlined_call_operand.vmem [shape: f32[48], index: 0, kind: input, shape index: {}]   ;;  %s5560_s1 = inlined_call_operand.vmem [shape: bf16[256,16], index: 1, kind: input, shape index: {}]   ;;  %s5561_s2 = inlined_call_operand.hbm [shape: bf16[2,8,16,256], index: 2, kind: input, shape index: {}]   ;;  %s5562_s3 = inlined_call_operand.hbm [shape: s8[2,256,256], index: 3, kind: input, shape index: {}]   ;;  %s5563_s4 = inlined_call_operand.hbm [shape: f32[2,2,8,128], index: 4, kind: output, shape index: {}]  }
   0x1   :  { %5673 = sst [smem:[#allocation99_spill]] %s5560_s1  ;;  %s9_s17 = sshll.u32 %s5559_s0, 4  ;;  %s10_s17 = int_to_ptr.vmem [resolvable:$true] %s9_s17 }
   0x2   :  { %5674 = sst [smem:[#allocation100_spill]] %s5561_s2  ;;  %s3284_s18 = scalar_lea.vmem %s10_s17, 16 }
   0x3   :  { %5675 = sst [smem:[#allocation101_spill]] %s5563_s4  ;;  %p3285_p0 = scmp.ne.s32.totalorder %s10_s17, %s3284_s18 }
   0x4   :  { %p3289_p1 = scmp.lt.s32.totalorder %s10_s17, %s10_s17  ;;  %p3290_p2 = scmp.lt.s32.totalorder %s3284_s18, %s3284_s18 }
   0x6   :  { %p3291_p3 = por %p3290_p2, %p3289_p1 }
   0x8   :  { %p3292_p4 = pnand %p3291_p3, %p3285_p0 }
   0xa   :  { %3295 = shalt.err (!%p3292_p4)  }
   0xb   :  { %s3512_s19 = smov [#allocation5]  }
   0xc   :  { %12 = dma.vmem_to_smem %s10_s17, 16, %s3512_s19, [#allocation4] }
   0xd   :  { %3438 = dma.done.wait [#allocation4], 16 }
   0xe   :  { %3439 = vsyncadd [#allocation4], 4294967280 }
   0xf   :  { %14 = sfence }
  0x10   :  { %15 = vsyncpa [#allocation7], 0 }
  0x11   :  { %17 = vsyncpa [#allocation7 + $0x1], 0 }
  0x12   :  { %18 = vsyncpa [#allocation10], 0 }
  0x13   :  { %20 = vsyncpa [#allocation10 + $0x1], 0 }
  0x14   :  { %21 = vsyncpa [#allocation8], 0 }
  0x15   :  { %23 = vsyncpa [#allocation8 + $0x1], 0  ;;  %s3551_s0 = smov 0   ;;  %s3553_s20 = smov 0  }
  0x16   :  { %s3555_s21 = smov 0   ;;  %s3557_s22 = smov 0  }
  0x17   :  { %s3559_s23 = smov 0   ;;  %s3561_s24 = smov 0  }
  0x18   :  { %s3563_s25 = smov 0   ;;  %s3565_s26 = smov 0  }
  0x19   :  { %s3567_s27 = smov 0   ;;  %s3569_s28 = smov 0  }
  0x1a   :  { %s3571_s29 = smov 0  }
  0x1b LB: > { %5676 = sst [smem:[#allocation16_spill]] %s3454_s0  ;;  %s2654_s30 = sadd.s32 4294967295, %s3494_s29   ;;  %s3494_s29 = sphi %s3571_s29, %s29_s29   ;;  %s3490_s28 = sphi %s3569_s28, %s5969_s28   ;;  %s3486_s27 = sphi %s3567_s27, %s5968_s27   ;;  %s3482_s26 = sphi %s3565_s26, %s5967_s26   ;;  %s3478_s25 = sphi %s3563_s25, %s5966_s25   ;;  %s3474_s24 = sphi %s3561_s24, %s5965_s24   ;;  %s3470_s23 = sphi %s3559_s23, %s5964_s23   ;;  %s3466_s22 = sphi %s3557_s22, %s5963_s22   ;;  %s3462_s21 = sphi %s3555_s21, %s5962_s21   ;;  %s3458_s20 = sphi %s3553_s20, %s5961_s20   ;;  %s3454_s0 = sphi %s3551_s0, %s5960_s0  }
  0x1c   : > { %5677 = sst [smem:[#allocation17_spill]] %s3482_s26  ;;  %s41_s5 = sadd.s32 1, %s3490_s28 }
  0x1d   : > { %s74_s6 = sadd.s32 1, %s3474_s24  ;;  %p81_p5 = scmp.ne.s32.totalorder %s3474_s24, %s3470_s23 }
  0x1e   : > { %p82_p6 = scmp.eq.s32.totalorder %s3494_s29, 0  ;;  %p87_p7 = scmp.ne.s32.totalorder %s3470_s23, %s3466_s22 }
  0x1f   : > { %p3613_p8 = scmp.eq.s32.totalorder %s2654_s30, 0  ;;  %p2831_p10 = scmp.lt.s32.totalorder %s3494_s29, 4 }
  0x20   : > { %p83_p9 = por %p82_p6, %p81_p5  ;;  %s176_s9 = sand.u32 1, %s3474_s24  }
  0x21   : > { %p3622_p11 = por %p3613_p8, %p87_p7  ;;  %s2658_s10 = sshll.u32 %s176_s9, 7 }
  0x22   : > { %s2797_s11 = sshll.u32 %s3490_s28, 11  ;;  %s5680_s2 = sld [smem:[#allocation100_spill]] }
  0x23   : > { %s180_s15 = scalar_lea.vmem [#allocation6], %s2658_s10  ;;  %p3633_p12 = pnand %p2831_p10, %p83_p9 }
  0x24   : > { %s187_s16 = sshll.u32 %s180_s15, 4  ;;  %p2666_p13 = scmp.ge.s32.totalorder %s3494_s29, 1  ;;  %s188_s16 = int_to_ptr.vmem [resolvable:$true] %s187_s16 }
  0x25   : > { %s177_s18 = scalar_lea.sflag [#allocation7], %s176_s9  ;;  %p3298_p0 = pneg %p3633_p12 }
  0x26   : > { %s3309_s19 = scalar_lea.vmem %s188_s16, 2048  ;;  %s3513_s22 = smov [#allocation6]  }
  0x27   : > { %p3310_p1 = scmp.ne.s32.totalorder %s188_s16, %s3309_s19  ;;  %s3314_s12 = sshll.u32 %s3513_s22, 4  ;;  %s3315_s12 = int_to_ptr.vmem [resolvable:$false] %s3314_s12 }
  0x28   : > { %s186_s14 = scalar_lea.hbm %s5680_s2, %s2797_s11  ;;  %s3316_s10 = scalar_lea.vmem %s3315_s12, 4096 }
  0x29   : > { %p3312_p2 = pnand %p3310_p1, %p3298_p0  ;;  %p3317_p4 = scmp.lt.s32.totalorder %s188_s16, %s3315_s12 }
  0x2a   : > { %p3318_p5 = scmp.lt.s32.totalorder %s3316_s10, %s3309_s19 }
  0x2b   : > { %p3313_p3 = pneg %p3312_p2 }
  0x2c   : > { %p3319_p7 = por %p3318_p5, %p3317_p4 }
  0x2e   : > { %p3320_p9 = pnand %p3319_p7, %p3313_p3 }
  0x30   : > { %3323 = shalt.err (!%p3320_p9)
}
  0x31   : > { %s3514_s11 = smov 128   ;;  %s3515_s9 = smov 8  }
  0x32   : > { %2823 = dma.hbm_to_vmem [thread:$0]  (!%p3633_p12), %s186_s14, 2048, %s188_s16, %s177_s18, %s3514_s11, %s3514_s11, %s3515_s9  }
  0x33   : > { %p219_p0 = scmp.lt.s32.totalorder %s3494_s29, 5  ;;  %s2655_s15 = sadd.s32 4294967294, %s3494_s29  }
  0x34   : > { %s38_s19 = sadd.s32 1, %s3486_s27  ;;  %s102_s22 = sadd.s32 1, %s3462_s21 }
  0x35   : > { %p3645_p1 = pnand %p2666_p13, %p219_p0  ;;  %p39_p2 = scmp.ge.s32.totalorder %s38_s19, 2 }
  0x36   : > { %p109_p3 = scmp.ne.s32.totalorder %s3462_s21, %s3458_s20  ;;  %p115_p4 = scmp.ne.s32.totalorder %s3458_s20, %s3454_s0 }
  0x37   : > { %s5971_s19 = smov (%p39_p2, %s38_s19), 0  ;;  %s5973_s5 = smov (!%p39_p2, %s41_s5), %s3490_s28 }
  0x38   : > { %5683 = sst [smem:[#allocation18_spill]] %s5971_s19  ;;  %s98_s14 = ssub.s32 %s3486_s27, %s5971_s19 }
  0x39   : > { %p3665_p12 = por %p109_p3, %p82_p6  ;;  %p43_p13 = scmp.ge.s32.totalorder %s5973_s5, 2 }
  0x3a   : > { %p3671_p5 = por %p115_p4, %p3613_p8  ;;  %p141_p7 = scmp.eq.s32.totalorder %s2654_s30, 3 }
  0x3b   : > { %p147_p9 = scmp.eq.s32.totalorder %s2655_s15, 3  ;;  %s5975_s5 = smov (%p43_p13, %s5973_s5), 0 }
  0x3c   : > { %5686 = sst [smem:[#allocation19_spill]] %s5975_s5  ;;  %p3679_p0 = por %p141_p7, %p109_p3 }
  0x3d   : > { %p3683_p6 = por %p147_p9, %p115_p4  ;;  %s71_s7 = ssub.s32 %s3490_s28, %s5975_s5 }
  0x3e   : > { %s5687_s18 = scalar_select %p3679_p0, 1, 0 }
  0x3f   : > { %s5689_s12 = scalar_select %p3683_p6, 1, 0 }
  0x40   : > { %5688 = sst [smem:[#allocation20_spill]] %s5687_s18  ;;  %s197_s10 = sand.u32 1, %s3462_s21  }
  0x41   : > { %5690 = sst [smem:[#allocation21_spill]] %s5689_s12  ;;  %p72_p8 = scmp.eq.s32.totalorder %s71_s7, 0 }
  0x42   : > { %s99_s11 = sor.u32 %s98_s14, %s71_s7  ;;  %s2661_s15 = sshll.u32 %s197_s10, 6 }
  0x43   : > { %p100_p2 = scmp.eq.s32.totalorder %s99_s11, 0  ;;  %s2798_s2 = sshll.u32 %s3486_s27, 3 }
  0x44   : > { %s3693_s30 = scalar_select %p72_p8, %s3474_s24, %s74_s6  }
  0x45   : > { %s3696_s9 = scalar_select %p100_p2, %s3462_s21, %s102_s22  }
  0x46   : > { %s2664_s19 = sshll.u32 %s3490_s28, 4  ;;  %s201_s4 = scalar_lea.vmem [#allocation9], %s2661_s15 }
  0x47   : > { %s208_s0 = sadd.s32 %s2798_s2, %s2664_s19  ;;  %s211_s18 = sshll.u32 %s201_s4, 4  ;;  %s212_s18 = int_to_ptr.vmem [resolvable:$true] %s211_s18 }
  0x48   : > { %s2665_s1 = sshll.u32 %s208_s0, 7  ;;  %p3707_p3 = pnand %p2831_p10, %p3665_p12 }
  0x49   : > { %s210_s26 = scalar_lea.hbm %s5562_s3, %s2665_s1  ;;  %s198_s6 = scalar_lea.sflag [#allocation10], %s197_s10 }
  0x4a   : > { %p3326_p4 = pneg %p3707_p3  ;;  %s3337_s22 = scalar_lea.vmem %s212_s18, 1024 }
  0x4b   : > { %p3338_p13 = scmp.ne.s32.totalorder %s212_s18, %s3337_s22  ;;  %s3516_s2 = smov [#allocation9]  }
  0x4c   : > { %s3342_s4 = sshll.u32 %s3516_s2, 4  ;;  %s3343_s4 = int_to_ptr.vmem [resolvable:$false] %s3342_s4 }
  0x4d   : > { %p3340_p7 = pnand %p3338_p13, %p3326_p4  ;;  %s3344_s0 = scalar_lea.vmem %s3343_s4, 2048 }
  0x4e   : > { %p3345_p8 = scmp.lt.s32.totalorder %s212_s18, %s3343_s4  ;;  %p3346_p2 = scmp.lt.s32.totalorder %s3344_s0, %s3337_s22 }
  0x4f   : > { %p3341_p9 = pneg %p3340_p7 }
  0x50   : > { %p3347_p6 = por %p3346_p2, %p3345_p8 }
  0x52   : > { %p3348_p0 = pnand %p3347_p6, %p3341_p9 }
  0x54   : > { %3351 = shalt.err (!%p3348_p0)
}
  0x55   : > { %s3517_s1 = smov 256   ;;  %s3518_s5 = smov 16  }
  0x56   : > { %2826 = dma.hbm_to_vmem [thread:$0]  (!%p3707_p3), %s210_s26, 1024, %s212_s18, %s198_s6, %s3517_s1, %s3517_s1, %s3518_s5  }
  0x57   : > { %223 = sbr.rel (%p3645_p1) target bundleno = 1184 (0x4a0), region = 32 }
  0x5c   : > { %s225_s19 = sand.u32 1, %s3470_s23  }
  0x5d   : > { %s3718_s16 = sshll.u32 %s225_s19, 7  ;;  %s226_s12 = scalar_lea.sflag [#allocation7], %s225_s19 }
  0x5e   : > { %s229_s7 = scalar_lea.vmem [#allocation6], %s3718_s16 }
  0x5f   : > { %3441 = dma.done.wait (%p3622_p11), %s226_s12, 2048  }
  0x60   : > { %3443 = vsyncadd (%p3622_p11), %s226_s12, 4294965248  ;;  %s3726_s10 = sand.u32 1, %s3458_s20  }
  0x61   : > { %s2668_s26 = sshll.u32 %s3726_s10, 6  ;;  %s235_s13 = scalar_lea.sflag [#allocation10], %s3726_s10 }
  0x62   : > { %s3730_s18 = scalar_lea.vmem [#allocation9], %s2668_s26 }
  0x63   : > { %3445 = dma.done.wait (%p3671_p5), %s235_s13, 1024  }
  0x64   : > { %3447 = vsyncadd (%p3671_p5), %s235_s13, 4294966272  ;;  %s2670_s8 = sshll.u32 %s3478_s25, 4  ;;  %s2669_s11 = sshll.u32 %s3726_s10, 3  ;;  %v3519_v0 = vmov 0.0  }
  0x65   : > { %p3740_p10 = scmp.lt.s32.totalorder %s2670_s8, 31  ;;  %296 = vst [vmem:[#allocation2] sm:$0xff] %v3519_v0  ;;  %297 = vst [vmem:[#allocation2 + $0x8] sm:$0xff] %v3519_v0  ;;  %s5693_s17 = sld [smem:[#allocation17_spill]] }
  0x66   : > { %298 = vst [vmem:[#allocation2 + $0x10] sm:$0xff] %v3519_v0  ;;  %299 = vst [vmem:[#allocation2 + $0x18] sm:$0xff] %v3519_v0  ;;  %s5694_s4 = sld [smem:[#allocation99_spill]]  ;;  %s3882_s1 = scalar_lea.vmem [#allocation11], %s2669_s11 }
  0x67   : > { %300 = vst [vmem:[#allocation2 + $0x20] sm:$0xff] %v3519_v0  ;;  %301 = vst [vmem:[#allocation2 + $0x28] sm:$0xff] %v3519_v0  ;;  %s5977_s8 = smov (!%p3740_p10, %s2670_s8), 31  ;;  %s3884_s5 = smov 0  }
  0x68   : > { %302 = vst [vmem:[#allocation2 + $0x30] sm:$0xff] %v3519_v0  ;;  %303 = vst [vmem:[#allocation2 + $0x38] sm:$0xff] %v3519_v0  ;;  %s2671_s6 = sshll.u32 %s5977_s8, 2 }
  0x69   : > { %304 = vst [vmem:[#allocation2 + $0x40] sm:$0xff] %v3519_v0  ;;  %305 = vst [vmem:[#allocation2 + $0x48] sm:$0xff] %v3519_v0 }
  0x6a   : > { %306 = vst [vmem:[#allocation2 + $0x50] sm:$0xff] %v3519_v0  ;;  %307 = vst [vmem:[#allocation2 + $0x58] sm:$0xff] %v3519_v0 }
  0x6b   : > { %308 = vst [vmem:[#allocation2 + $0x60] sm:$0xff] %v3519_v0  ;;  %309 = vst [vmem:[#allocation2 + $0x68] sm:$0xff] %v3519_v0  ;;  %s279_s14 = smul.u32 24, %s5693_s17 }
  0x6c   : > { %310 = vst [vmem:[#allocation2 + $0x70] sm:$0xff] %v3519_v0  ;;  %311 = vst [vmem:[#allocation2 + $0x78] sm:$0xff] %v3519_v0  ;;  %s275_s0 = scalar_lea.vmem %s5694_s4, %s2671_s6 }
  0x6d   : > { %312 = vst [vmem:[#allocation2 + $0x80] sm:$0xff] %v3519_v0  ;;  %313 = vst [vmem:[#allocation2 + $0x88] sm:$0xff] %v3519_v0  ;;  %v3848_v1 = vld [vmem:[%s275_s0] sm:$0xf]  ;;  %v3850_v2 = vld [vmem:[%s275_s0 + $0x4] sm:$0xf] }
  0x6e   : > { %314 = vst [vmem:[#allocation2 + $0x90] sm:$0xff] %v3519_v0  ;;  %315 = vst [vmem:[#allocation2 + $0x98] sm:$0xff] %v3519_v0  ;;  %v3852_v3 = vld [vmem:[%s275_s0 + $0x8] sm:$0xf]  ;;  %v3854_v4 = vld [vmem:[%s275_s0 + $0xc] sm:$0xf] }
  0x6f   : > { %316 = vst [vmem:[#allocation2 + $0xa0] sm:$0xff] %v3519_v0  ;;  %317 = vst [vmem:[#allocation2 + $0xa8] sm:$0xff] %v3519_v0  ;;  %v3856_v5 = vld [vmem:[%s275_s0 + $0x10] sm:$0xf]  ;;  %v3858_v6 = vld [vmem:[%s275_s0 + $0x14] sm:$0xf] }
  0x70   : > { %318 = vst [vmem:[#allocation2 + $0xb0] sm:$0xff] %v3519_v0  ;;  %319 = vst [vmem:[#allocation2 + $0xb8] sm:$0xff] %v3519_v0  ;;  %v3860_v7 = vld [vmem:[%s275_s0 + $0x18] sm:$0xf]  ;;  %v3862_v8 = vld [vmem:[%s275_s0 + $0x1c] sm:$0xf] }
  0x71   : > { %320 = vst [vmem:[#allocation2 + $0xc0] sm:$0xff] %v3519_v0  ;;  %321 = vst [vmem:[#allocation2 + $0xc8] sm:$0xff] %v3519_v0  ;;  %v3864_v9 = vld [vmem:[%s275_s0 + $0x20] sm:$0xf]  ;;  %v3866_v10 = vld [vmem:[%s275_s0 + $0x24] sm:$0xf] }
  0x72   : > { %322 = vst [vmem:[#allocation2 + $0xd0] sm:$0xff] %v3519_v0  ;;  %323 = vst [vmem:[#allocation2 + $0xd8] sm:$0xff] %v3519_v0  ;;  %v3868_v11 = vld [vmem:[%s275_s0 + $0x28] sm:$0xf]  ;;  %v3870_v12 = vld [vmem:[%s275_s0 + $0x2c] sm:$0xf] }
  0x73   : > { %324 = vst [vmem:[#allocation2 + $0xe0] sm:$0xff] %v3519_v0  ;;  %325 = vst [vmem:[#allocation2 + $0xe8] sm:$0xff] %v3519_v0  ;;  %v3872_v13 = vld [vmem:[%s275_s0 + $0x30] sm:$0xf]  ;;  %v3874_v14 = vld [vmem:[%s275_s0 + $0x34] sm:$0xf] }
  0x74   : > { %326 = vst [vmem:[#allocation2 + $0xf0] sm:$0xff] %v3519_v0  ;;  %327 = vst [vmem:[#allocation2 + $0xf8] sm:$0xff] %v3519_v0  ;;  %v3876_v15 = vld [vmem:[%s275_s0 + $0x38] sm:$0xf]  ;;  %v3878_v16 = vld [vmem:[%s275_s0 + $0x3c] sm:$0xf] }
  0x75   : > { %328 = vst [vmem:[#allocation2 + $0x100] sm:$0xff] %v3519_v0  ;;  %329 = vst [vmem:[#allocation2 + $0x108] sm:$0xff] %v3519_v0 }
  0x76   : > { %330 = vst [vmem:[#allocation2 + $0x110] sm:$0xff] %v3519_v0  ;;  %331 = vst [vmem:[#allocation2 + $0x118] sm:$0xff] %v3519_v0 }
  0x77   : > { %332 = vst [vmem:[#allocation2 + $0x120] sm:$0xff] %v3519_v0  ;;  %333 = vst [vmem:[#allocation2 + $0x128] sm:$0xff] %v3519_v0 }
  0x78   : > { %334 = vst [vmem:[#allocation2 + $0x130] sm:$0xff] %v3519_v0  ;;  %335 = vst [vmem:[#allocation2 + $0x138] sm:$0xff] %v3519_v0 }
  0x79   : > { %336 = vst [vmem:[#allocation2 + $0x140] sm:$0xff] %v3519_v0  ;;  %337 = vst [vmem:[#allocation2 + $0x148] sm:$0xff] %v3519_v0 }
  0x7a   : > { %338 = vst [vmem:[#allocation2 + $0x150] sm:$0xff] %v3519_v0  ;;  %339 = vst [vmem:[#allocation2 + $0x158] sm:$0xff] %v3519_v0 }
  0x7b   : > { %340 = vst [vmem:[#allocation2 + $0x160] sm:$0xff] %v3519_v0  ;;  %341 = vst [vmem:[#allocation2 + $0x168] sm:$0xff] %v3519_v0 }
  0x7c   : > { %342 = vst [vmem:[#allocation2 + $0x170] sm:$0xff] %v3519_v0  ;;  %343 = vst [vmem:[#allocation2 + $0x178] sm:$0xff] %v3519_v0 }
  0x7d   : > { %344 = vst [vmem:[#allocation2 + $0x180] sm:$0xff] %v3519_v0  ;;  %345 = vst [vmem:[#allocation2 + $0x188] sm:$0xff] %v3519_v0 }
  0x7e   : > { %346 = vst [vmem:[#allocation2 + $0x190] sm:$0xff] %v3519_v0  ;;  %347 = vst [vmem:[#allocation2 + $0x198] sm:$0xff] %v3519_v0 }
  0x7f   : > { %348 = vst [vmem:[#allocation2 + $0x1a0] sm:$0xff] %v3519_v0  ;;  %349 = vst [vmem:[#allocation2 + $0x1a8] sm:$0xff] %v3519_v0 }
  0x80   : > { %350 = vst [vmem:[#allocation2 + $0x1b0] sm:$0xff] %v3519_v0  ;;  %351 = vst [vmem:[#allocation2 + $0x1b8] sm:$0xff] %v3519_v0 }
  0x81   : > { %352 = vst [vmem:[#allocation2 + $0x1c0] sm:$0xff] %v3519_v0  ;;  %353 = vst [vmem:[#allocation2 + $0x1c8] sm:$0xff] %v3519_v0 }
  0x82   : > { %354 = vst [vmem:[#allocation2 + $0x1d0] sm:$0xff] %v3519_v0  ;;  %355 = vst [vmem:[#allocation2 + $0x1d8] sm:$0xff] %v3519_v0 }
  0x83   : > { %356 = vst [vmem:[#allocation2 + $0x1e0] sm:$0xff] %v3519_v0  ;;  %357 = vst [vmem:[#allocation2 + $0x1e8] sm:$0xff] %v3519_v0 }
  0x84   : > { %358 = vst [vmem:[#allocation2 + $0x1f0] sm:$0xff] %v3519_v0  ;;  %359 = vst [vmem:[#allocation2 + $0x1f8] sm:$0xff] %v3519_v0 }
  0x85   : > { %360 = vst [vmem:[#allocation2 + $0x200] sm:$0xff] %v3519_v0  ;;  %361 = vst [vmem:[#allocation2 + $0x208] sm:$0xff] %v3519_v0 }
  0x86   : > { %362 = vst [vmem:[#allocation2 + $0x210] sm:$0xff] %v3519_v0  ;;  %363 = vst [vmem:[#allocation2 + $0x218] sm:$0xff] %v3519_v0 }
  0x87   : > { %364 = vst [vmem:[#allocation2 + $0x220] sm:$0xff] %v3519_v0  ;;  %365 = vst [vmem:[#allocation2 + $0x228] sm:$0xff] %v3519_v0 }
  0x88   : > { %366 = vst [vmem:[#allocation2 + $0x230] sm:$0xff] %v3519_v0  ;;  %367 = vst [vmem:[#allocation2 + $0x238] sm:$0xff] %v3519_v0 }
  0x89   : > { %368 = vst [vmem:[#allocation2 + $0x240] sm:$0xff] %v3519_v0  ;;  %369 = vst [vmem:[#allocation2 + $0x248] sm:$0xff] %v3519_v0 }
  0x8a   : > { %370 = vst [vmem:[#allocation2 + $0x250] sm:$0xff] %v3519_v0  ;;  %371 = vst [vmem:[#allocation2 + $0x258] sm:$0xff] %v3519_v0 }
  0x8b   : > { %372 = vst [vmem:[#allocation2 + $0x260] sm:$0xff] %v3519_v0  ;;  %373 = vst [vmem:[#allocation2 + $0x268] sm:$0xff] %v3519_v0 }
  0x8c   : > { %374 = vst [vmem:[#allocation2 + $0x270] sm:$0xff] %v3519_v0  ;;  %375 = vst [vmem:[#allocation2 + $0x278] sm:$0xff] %v3519_v0 }
  0x8d   : > { %376 = vst [vmem:[#allocation2 + $0x280] sm:$0xff] %v3519_v0  ;;  %377 = vst [vmem:[#allocation2 + $0x288] sm:$0xff] %v3519_v0 }
  0x8e   : > { %378 = vst [vmem:[#allocation2 + $0x290] sm:$0xff] %v3519_v0  ;;  %379 = vst [vmem:[#allocation2 + $0x298] sm:$0xff] %v3519_v0 }
  0x8f   : > { %380 = vst [vmem:[#allocation2 + $0x2a0] sm:$0xff] %v3519_v0  ;;  %381 = vst [vmem:[#allocation2 + $0x2a8] sm:$0xff] %v3519_v0 }
  0x90   : > { %382 = vst [vmem:[#allocation2 + $0x2b0] sm:$0xff] %v3519_v0  ;;  %383 = vst [vmem:[#allocation2 + $0x2b8] sm:$0xff] %v3519_v0 }
  0x91   : > { %384 = vst [vmem:[#allocation2 + $0x2c0] sm:$0xff] %v3519_v0  ;;  %385 = vst [vmem:[#allocation2 + $0x2c8] sm:$0xff] %v3519_v0 }
  0x92   : > { %386 = vst [vmem:[#allocation2 + $0x2d0] sm:$0xff] %v3519_v0  ;;  %387 = vst [vmem:[#allocation2 + $0x2d8] sm:$0xff] %v3519_v0 }
  0x93   : > { %388 = vst [vmem:[#allocation2 + $0x2e0] sm:$0xff] %v3519_v0  ;;  %389 = vst [vmem:[#allocation2 + $0x2e8] sm:$0xff] %v3519_v0 }
  0x94   : > { %390 = vst [vmem:[#allocation2 + $0x2f0] sm:$0xff] %v3519_v0  ;;  %391 = vst [vmem:[#allocation2 + $0x2f8] sm:$0xff] %v3519_v0 }
  0x95 LB: >> { %v3520_v17 = vmov 0   ;;  %s2799_s19 = sshll.u32 %s3498_s5, 4  ;;  %v2674_v20 = vcombine.low %v3848_v1, %v3850_v2  ;;  %v2678_v21 = vcombine.low %v3864_v9, %v3866_v10  ;;  %vm453_vm0 = vcmask 130048   ;;  %s783_s13 = smul.u32 3, %s3498_s5  ;;  %s3498_s5 = sphi %s3884_s5, %s397_s5  }
  0x96   : >> { %510 = vmatprep.mubr.bf16.mxu0 %v3520_v17  ;;  %550 = vmatprep.mubr.bf16.mxu1 %v3520_v17  ;;  %s400_s12 = scalar_lea.vmem %s229_s7, %s2799_s19 [#allocation6]  ;;  %v2675_v22 = vcombine.low %v3852_v3, %v3854_v4  ;;  %v2679_v23 = vcombine.low %v3868_v11, %v3870_v12  ;;  %v2676_v24 = vcombine.low %v3856_v5, %v3858_v6  ;;  %s397_s5 = sadd.s32 1, %s3498_s5  }
  0x97   : >> { %v2961_v18 = vld [vmem:[%s400_s12 + $0x4] ss:$8 sps:$4 sm:$0xff]   ;;  %v2963_v19 = vld [vmem:[%s400_s12] ss:$8 sps:$4 sm:$0xff]   ;;  %v2680_v25 = vcombine.low %v3872_v13, %v3874_v14  ;;  %v2677_v26 = vcombine.low %v3860_v7, %v3862_v8  ;;  %v2681_v27 = vcombine.low %v3876_v15, %v3878_v16  ;;  %s784_s8 = sadd.s32 %s783_s13, %s279_s14  ;;  %p394_p11 = scmp.ge.s32.totalorder %s397_s5, 8  }
  0x98   : >> { %492 = vmatprep.subr.bf16.mxu0 %v2961_v18  ;;  %2802 = vmatprep.subr.bf16.mxu1 %v2961_v18  ;;  %s915_s11 = sadd.s32 1, %s784_s8  ;;  %s1047_s15 = sadd.s32 2, %s784_s8  ;;  %1315 = vst [vmem:[#allocation3 + $0xb0] sm:$0xff] (%p394_p11), %v3519_v0  ;;  %1316 = vst [vmem:[#allocation3 + $0x1b0] sm:$0xff] (%p394_p11), %v3519_v0  ;;  %v1182_v1 = vld [vmem:[%s3730_s18 + $0x18] sm:$0xff] (%p394_p11)  ;;  %v1183_v6 = vld [vmem:[%s3730_s18 + $0x20] sm:$0xff] (%p394_p11) }
  0x99   : >> { %493 = vmatpush1.bf16.msra.mxu0 %v2963_v19  ;;  %2803 = vmatpush1.bf16.msra.mxu1 %v2963_v19  ;;  %s3919_s17 = sld [smem:[#allocation5 + %s784_s8]]  ;;  %1317 = vst [vmem:[#allocation3 + $0xd8] sm:$0xff] (%p394_p11), %v3519_v0  ;;  %1318 = vst [vmem:[#allocation3 + $0x18] sm:$0xff] (%p394_p11), %v3519_v0  ;;  %v1184_v7 = vld [vmem:[%s3730_s18 + $0x28] sm:$0xff] (%p394_p11)  ;;  %v4220_v13 = vunpack.c.0.s8 (%p394_p11), %v1182_v1  ;;  %v4225_v15 = vunpack.c.1.s8 (%p394_p11), %v1182_v1  ;;  %v1185_v16 = vld [vmem:[%s3730_s18 + $0x30] sm:$0xff] (%p394_p11)  ;;  %s4463_s16 = smov (%p394_p11), 0  }
  0x9a   : >> { %s3921_s6 = sld [smem:[#allocation5 + %s915_s11]]  ;;  %1319 = vst [vmem:[#allocation3 + $0x50] sm:$0xff] (%p394_p11), %v3519_v0  ;;  %1320 = vst [vmem:[#allocation3 + $0x168] sm:$0xff] (%p394_p11), %v3519_v0 }
  0x9b   : >> { %s3923_s22 = sld [smem:[#allocation5 + %s1047_s15]]  ;;  %1321 = vst [vmem:[#allocation3 + $0x130] sm:$0xff] (%p394_p11), %v3519_v0  ;;  %1322 = vst [vmem:[#allocation3 + $0x48] sm:$0xff] (%p394_p11), %v3519_v0 }
  0x9c   : >> { %2684 = vmatmul.mubr.msk.bf16.vlgmr.msra.gmra.mxu0 %vm453_vm0, %v2674_v20  ;;  %2688 = vmatmul.mubr.msk.bf16.vlgmr.msra.gmra.mxu1 %vm453_vm0, %v2678_v21  ;;  %1323 = vst [vmem:[#allocation3 + $0x180] sm:$0xff] (%p394_p11), %v3519_v0  ;;  %1324 = vst [vmem:[#allocation3 + $0x110] sm:$0xff] (%p394_p11), %v3519_v0 }
  0x9d   : >> { %520 = vmatprep.mubr.bf16.mxu0 %v3520_v17  ;;  %560 = vmatprep.mubr.bf16.mxu1 %v3520_v17  ;;  %1325 = vst [vmem:[#allocation3 + $0x118] sm:$0xff] (%p394_p11), %v3519_v0  ;;  %1326 = vst [vmem:[#allocation3 + $0x98] sm:$0xff] (%p394_p11), %v3519_v0 }
  0x9e   : > { %1327 = vst [vmem:[#allocation3 + $0x120] sm:$0xff] (%p394_p11), %v3519_v0  ;;  %1328 = vst [vmem:[#allocation3 + $0x150] sm:$0xff] (%p394_p11), %v3519_v0 }
  0x9f   : > { %1329 = vst [vmem:[#allocation3 + $0x108] sm:$0xff] (%p394_p11), %v3519_v0  ;;  %1330 = vst [vmem:[#allocation3 + $0x60] sm:$0xff] (%p394_p11), %v3519_v0 }
  0xa0   : > { %1331 = vst [vmem:[#allocation3 + $0xe0] sm:$0xff] (%p394_p11), %v3519_v0  ;;  %1332 = vst [vmem:[#allocation3 + $0x188] sm:$0xff] (%p394_p11), %v3519_v0 }
  0xa1   : > { %1333 = vst [vmem:[#allocation3 + $0x138] sm:$0xff] (%p394_p11), %v3519_v0  ;;  %1334 = vst [vmem:[#allocation3 + $0x140] sm:$0xff] (%p394_p11), %v3519_v0 }
  0xa2   : > { %1335 = vst [vmem:[#allocation3 + $0x80] sm:$0xff] (%p394_p11), %v3519_v0  ;;  %1336 = vst [vmem:[#allocation3 + $0x1a8] sm:$0xff] (%p394_p11), %v3519_v0 }
  0xa3   : > { %1337 = vst [vmem:[#allocation3 + $0x1b8] sm:$0xff] (%p394_p11), %v3519_v0  ;;  %1338 = vst [vmem:[#allocation3 + $0x28] sm:$0xff] (%p394_p11), %v3519_v0 }
  0xa4   : >> { %2685 = vmatmul.mubr.msk.bf16.gmra.mxu0 %vm453_vm0, %v2675_v22  ;;  %2689 = vmatmul.mubr.msk.bf16.gmra.mxu1 %vm453_vm0, %v2679_v23  ;;  %1339 = vst [vmem:[#allocation3 + $0x1e8] sm:$0xff] (%p394_p11), %v3519_v0  ;;  %1340 = vst [vmem:[#allocation3 + $0xf8] sm:$0xff] (%p394_p11), %v3519_v0 }
  0xa5   : >> { %530 = vmatprep.mubr.bf16.mxu0 %v3520_v17  ;;  %570 = vmatprep.mubr.bf16.mxu1 %v3520_v17  ;;  %1341 = vst [vmem:[#allocation3 + $0x160] sm:$0xff] (%p394_p11), %v3519_v0  ;;  %1342 = vst [vmem:[#allocation3 + $0x30] sm:$0xff] (%p394_p11), %v3519_v0 }
  0xa6   : > { %1343 = vst [vmem:[#allocation3 + $0x1e0] sm:$0xff] (%p394_p11), %v3519_v0  ;;  %1344 = vst [vmem:[#allocation3] sm:$0xff] (%p394_p11), %v3519_v0 }
  0xa7   : > { %1345 = vst [vmem:[#allocation3 + $0xf0] sm:$0xff] (%p394_p11), %v3519_v0  ;;  %1346 = vst [vmem:[#allocation3 + $0x8] sm:$0xff] (%p394_p11), %v3519_v0 }
  0xa8   : > { %1347 = vst [vmem:[#allocation3 + $0x148] sm:$0xff] (%p394_p11), %v3519_v0  ;;  %1348 = vst [vmem:[#allocation3 + $0x1d0] sm:$0xff] (%p394_p11), %v3519_v0 }
  0xa9   : > { %1349 = vst [vmem:[#allocation3 + $0x100] sm:$0xff] (%p394_p11), %v3519_v0  ;;  %1350 = vst [vmem:[#allocation3 + $0xc8] sm:$0xff] (%p394_p11), %v3519_v0 }
  0xaa   : > { %1351 = vst [vmem:[#allocation3 + $0x40] sm:$0xff] (%p394_p11), %v3519_v0  ;;  %1352 = vst [vmem:[#allocation3 + $0x1f8] sm:$0xff] (%p394_p11), %v3519_v0 }
  0xab   : > { %1353 = vst [vmem:[#allocation3 + $0x20] sm:$0xff] (%p394_p11), %v3519_v0  ;;  %1354 = vst [vmem:[#allocation3 + $0x128] sm:$0xff] (%p394_p11), %v3519_v0 }
  0xac   : >> { %2686 = vmatmul.mubr.msk.bf16.gmra.mxu0 %vm453_vm0, %v2676_v24  ;;  %2690 = vmatmul.mubr.msk.bf16.gmra.mxu1 %vm453_vm0, %v2680_v25  ;;  %1355 = vst [vmem:[#allocation3 + $0x1a0] sm:$0xff] (%p394_p11), %v3519_v0  ;;  %1356 = vst [vmem:[#allocation3 + $0x1f0] sm:$0xff] (%p394_p11), %v3519_v0 }
  0xad   : >> { %540 = vmatprep.mubr.bf16.mxu0 %v3520_v17  ;;  %580 = vmatprep.mubr.bf16.mxu1 %v3520_v17  ;;  %1357 = vst [vmem:[#allocation3 + $0xe8] sm:$0xff] (%p394_p11), %v3519_v0  ;;  %1358 = vst [vmem:[#allocation3 + $0x78] sm:$0xff] (%p394_p11), %v3519_v0 }
  0xae   : > { %1359 = vst [vmem:[#allocation3 + $0x70] sm:$0xff] (%p394_p11), %v3519_v0  ;;  %1360 = vst [vmem:[#allocation3 + $0x90] sm:$0xff] (%p394_p11), %v3519_v0 }
  0xaf   : > { %1361 = vst [vmem:[#allocation3 + $0x1d8] sm:$0xff] (%p394_p11), %v3519_v0  ;;  %1362 = vst [vmem:[#allocation3 + $0xd0] sm:$0xff] (%p394_p11), %v3519_v0 }
  0xb0   : > { %1363 = vst [vmem:[#allocation3 + $0xb8] sm:$0xff] (%p394_p11), %v3519_v0  ;;  %1364 = vst [vmem:[#allocation3 + $0x88] sm:$0xff] (%p394_p11), %v3519_v0 }
  0xb1   : > { %1365 = vst [vmem:[#allocation3 + $0xa8] sm:$0xff] (%p394_p11), %v3519_v0  ;;  %1366 = vst [vmem:[#allocation3 + $0x1c8] sm:$0xff] (%p394_p11), %v3519_v0 }
  0xb2   : > { %1367 = vst [vmem:[#allocation3 + $0x170] sm:$0xff] (%p394_p11), %v3519_v0  ;;  %1368 = vst [vmem:[#allocation3 + $0x178] sm:$0xff] (%p394_p11), %v3519_v0 }
  0xb3   : > { %1369 = vst [vmem:[#allocation3 + $0x68] sm:$0xff] (%p394_p11), %v3519_v0  ;;  %1370 = vst [vmem:[#allocation3 + $0x190] sm:$0xff] (%p394_p11), %v3519_v0 }
  0xb4   : >> { %2687 = vmatmul.mubr.msk.bf16.gmra.mxu0 %vm453_vm0, %v2677_v26  ;;  %2691 = vmatmul.mubr.msk.bf16.gmra.mxu1 %vm453_vm0, %v2681_v27  ;;  %1371 = vst [vmem:[#allocation3 + $0x198] sm:$0xff] (%p394_p11), %v3519_v0  ;;  %1372 = vst [vmem:[#allocation3 + $0x38] sm:$0xff] (%p394_p11), %v3519_v0 }
  0xb5   : > { %1373 = vst [vmem:[#allocation3 + $0xc0] sm:$0xff] (%p394_p11), %v3519_v0  ;;  %1374 = vst [vmem:[#allocation3 + $0x1c0] sm:$0xff] (%p394_p11), %v3519_v0 }
  0xb6   : > { %1375 = vst [vmem:[#allocation3 + $0x158] sm:$0xff] (%p394_p11), %v3519_v0  ;;  %1376 = vst [vmem:[#allocation3 + $0x10] sm:$0xff] (%p394_p11), %v3519_v0 }
  0xb7   : > { %1377 = vst [vmem:[#allocation3 + $0x58] sm:$0xff] (%p394_p11), %v3519_v0  ;;  %1378 = vst [vmem:[#allocation3 + $0xa0] sm:$0xff] (%p394_p11), %v3519_v0 }
  0xb8   : > { %5705 = vst [vmem:[#allocation31_spill] sm:$0xff] (%p394_p11), %v4220_v13  ;;  %5707 = vst [vmem:[#allocation33_spill] sm:$0xff] (%p394_p11), %v4225_v15 }
 0x15c   : >> { %v512_v28 = vpop.f32.mrf.mxu0  ;;  %v552_v29 = vpop.f32.mrf.mxu1 }
 0x15d   : >> { %v2692_v30 = vmul.f32 -1.442695, %v512_v28  ;;  %v2708_v31 = vmul.f32 -1.442695, %v552_v29 }
 0x15e   : >> { %v514_v32 = vpop.f32.mrf.mxu0  ;;  %v554_v33 = vpop.f32.mrf.mxu1 }
 0x15f   : >> { %2964 = vpow2.f32 %v2692_v30  ;;  %v2693_v34 = vmul.f32 -1.442695, %v514_v32  ;;  %v2709_v35 = vmul.f32 -1.442695, %v554_v33 }
 0x160   : >> { %2966 = vpow2.f32 %v2708_v31  ;;  %v516_v36 = vpop.f32.mrf.mxu0  ;;  %v556_v37 = vpop.f32.mrf.mxu1 }
 0x161   : >> { %2968 = vpow2.f32 %v2693_v34  ;;  %v2694_v38 = vmul.f32 -1.442695, %v516_v36  ;;  %v2710_v39 = vmul.f32 -1.442695, %v556_v37 }
 0x162   : >> { %2970 = vpow2.f32 %v2709_v35  ;;  %v518_v40 = vpop.f32.mrf.mxu0  ;;  %v558_v41 = vpop.f32.mrf.mxu1 }
 0x163   : >> { %2972 = vpow2.f32 %v2694_v38  ;;  %v2695_v42 = vmul.f32 -1.442695, %v518_v40  ;;  %v2711_v43 = vmul.f32 -1.442695, %v558_v41  ;;  %v3926_v41 = vstv %s3919_s17 }
 0x164   : >> { %2974 = vpow2.f32 %v2710_v39  ;;  %v522_v44 = vpop.f32.mrf.mxu0  ;;  %v562_v45 = vpop.f32.mrf.mxu1 }
 0x165   : >> { %2976 = vpow2.f32 %v2695_v42  ;;  %v2696_v46 = vmul.f32 -1.442695, %v522_v44  ;;  %v2712_v47 = vmul.f32 -1.442695, %v562_v45 }
 0x166   : >> { %2978 = vpow2.f32 %v2711_v43  ;;  %v524_v48 = vpop.f32.mrf.mxu0  ;;  %v564_v49 = vpop.f32.mrf.mxu1 }
 0x167   : >> { %2980 = vpow2.f32 %v2696_v46  ;;  %v2697_v50 = vmul.f32 -1.442695, %v524_v48  ;;  %v2713_v51 = vmul.f32 -1.442695, %v564_v49  ;;  %v3929_v46 = vstv %s3921_s6  ;;  %v786_v48 = vld [vmem:[#allocation2] sm:$0xff] }
 0x168   : >> { %2982 = vpow2.f32 %v2712_v47  ;;  %v526_v52 = vpop.f32.mrf.mxu0  ;;  %v566_v53 = vpop.f32.mrf.mxu1  ;;  %v3932_v47 = vstv %s3923_s22 }
 0x169   : >> { %2984 = vpow2.f32 %v2697_v50  ;;  %v2698_v54 = vmul.f32 -1.442695, %v526_v52  ;;  %v2714_v55 = vmul.f32 -1.442695, %v566_v53 }
 0x16a   : >> { %2986 = vpow2.f32 %v2713_v51  ;;  %v528_v56 = vpop.f32.mrf.mxu0  ;;  %v568_v57 = vpop.f32.mrf.mxu1  ;;  %v918_v51 = vld [vmem:[#allocation2 + $0x100] sm:$0xff] }
 0x16b   : >> { %2988 = vpow2.f32 %v2698_v54  ;;  %v2699_v58 = vmul.f32 -1.442695, %v528_v56  ;;  %v2715_v59 = vmul.f32 -1.442695, %v568_v57  ;;  %v1050_v56 = vld [vmem:[#allocation2 + $0x200] sm:$0xff] }
 0x16c   : >> { %v2965_v60 = vpop.eup %2964  ;;  %2990 = vpow2.f32 %v2714_v55  ;;  %v532_v32 = vpop.f32.mrf.mxu0 }
 0x16d   : >> { %v2967_v61 = vpop.eup %2966  ;;  %v687_v62 = vadd.f32 1.0, %v2965_v60  ;;  %2992 = vpow2.f32 %v2699_v58  ;;  %v572_v33 = vpop.f32.mrf.mxu1  ;;  %v3934_v53 = vmul.f32 -1.442695, %v532_v32 }
 0x16e   : >> { %v2969_v63 = vpop.eup %2968  ;;  %v703_v17 = vadd.f32 1.0, %v2967_v61  ;;  %2994 = vpow2.f32 %v2715_v59  ;;  %v534_v43 = vpop.f32.mrf.mxu0  ;;  %v3936_v54 = vmul.f32 -1.442695, %v572_v33 }
 0x16f   : >> { %v2971_v18 = vpop.eup %2970  ;;  %2996 = vrcp.f32 %v687_v62  ;;  %v688_v19 = vadd.f32 1.0, %v2969_v63  ;;  %v574_v44 = vpop.f32.mrf.mxu1  ;;  %v3938_v58 = vmul.f32 -1.442695, %v534_v43 }
 0x170   : >> { %v2973_v20 = vpop.eup %2972  ;;  %2998 = vrcp.f32 %v703_v17  ;;  %v704_v21 = vadd.f32 1.0, %v2971_v18  ;;  %v3940_v59 = vmul.f32 -1.442695, %v574_v44  ;;  %v802_v17 = vld [vmem:[#allocation2 + $0x80] sm:$0xff] }
 0x171   : >> { %v2975_v22 = vpop.eup %2974  ;;  %3000 = vrcp.f32 %v688_v19  ;;  %v689_v23 = vadd.f32 1.0, %v2973_v20  ;;  %v934_v18 = vld [vmem:[#allocation2 + $0x180] sm:$0xff] }
 0x172   : >> { %v2977_v24 = vpop.eup %2976  ;;  %3002 = vrcp.f32 %v704_v21  ;;  %v705_v25 = vadd.f32 1.0, %v2975_v22  ;;  %v1066_v19 = vld [vmem:[#allocation2 + $0x280] sm:$0xff] }
 0x173   : >> { %v2979_v26 = vpop.eup %2978  ;;  %3004 = vrcp.f32 %v689_v23  ;;  %v690_v27 = vadd.f32 1.0, %v2977_v24  ;;  %v787_v24 = vld [vmem:[#allocation2 + $0x8] sm:$0xff] }
 0x174   : >> { %v2981_v28 = vpop.eup %2980  ;;  %3006 = vrcp.f32 %v705_v25  ;;  %v706_v29 = vadd.f32 1.0, %v2979_v26 }
 0x175   : >> { %v2983_v30 = vpop.eup %2982  ;;  %3008 = vrcp.f32 %v690_v27  ;;  %v691_v31 = vadd.f32 1.0, %v2981_v28 }
 0x176   : >> { %v2985_v34 = vpop.eup %2984  ;;  %3010 = vrcp.f32 %v706_v29  ;;  %v707_v35 = vadd.f32 1.0, %v2983_v30  ;;  %v919_v30 = vld [vmem:[#allocation2 + $0x108] sm:$0xff] }
 0x177   : >> { %v2987_v36 = vpop.eup %2986  ;;  %3012 = vrcp.f32 %v691_v31  ;;  %v692_v37 = vadd.f32 1.0, %v2985_v34 }
 0x178   : >> { %v2989_v38 = vpop.eup %2988  ;;  %3014 = vrcp.f32 %v707_v35  ;;  %v708_v39 = vadd.f32 1.0, %v2987_v36  ;;  %v1051_v36 = vld [vmem:[#allocation2 + $0x208] sm:$0xff] }
 0x179   : >> { %v2991_v40 = vpop.eup %2990  ;;  %3016 = vrcp.f32 %v692_v37  ;;  %v693_v42 = vadd.f32 1.0, %v2989_v38  ;;  %v803_v37 = vld [vmem:[#allocation2 + $0x88] sm:$0xff] }
 0x17a   : >> { %v2993_v45 = vpop.eup %2992  ;;  %3018 = vrcp.f32 %v708_v39  ;;  %v709_v49 = vadd.f32 1.0, %v2991_v40  ;;  %v935_v38 = vld [vmem:[#allocation2 + $0x188] sm:$0xff] }
 0x17b   : >> { %v2995_v50 = vpop.eup %2994  ;;  %3020 = vrcp.f32 %v693_v42  ;;  %v694_v52 = vadd.f32 1.0, %v2993_v45  ;;  %v1067_v45 = vld [vmem:[#allocation2 + $0x288] sm:$0xff] }
 0x17c   : >> { %v2997_v55 = vpop.eup %2996  ;;  %3022 = vrcp.f32 %v709_v49  ;;  %v710_v57 = vadd.f32 1.0, %v2995_v50  ;;  %v920_v49 = vld [vmem:[#allocation2 + $0x110] sm:$0xff] }
 0x17d   : >> { %v2999_v60 = vpop.eup %2998  ;;  %v819_v61 = vmul.f32 %v2997_v55, %v3926_v41  ;;  %v951_v62 = vmul.f32 %v2997_v55, %v3929_v46  ;;  %v1083_v63 = vmul.f32 %v2997_v55, %v3932_v47  ;;  %3024 = vrcp.f32 %v694_v52 }
 0x17e   : >> { %v3001_v20 = vpop.eup %3000  ;;  %v835_v21 = vmul.f32 %v2999_v60, %v3926_v41  ;;  %v967_v22 = vmul.f32 %v2999_v60, %v3929_v46  ;;  %v1099_v23 = vmul.f32 %v2999_v60, %v3932_v47  ;;  %3026 = vrcp.f32 %v710_v57  ;;  %v1052_v57 = vld [vmem:[#allocation2 + $0x210] sm:$0xff] }
 0x17f   : >> { %v3003_v25 = vpop.eup %3002  ;;  %v851_v26 = vadd.f32 %v819_v61, %v786_v48  ;;  %v983_v27 = vadd.f32 %v951_v62, %v918_v51  ;;  %v1115_v28 = vadd.f32 %v1083_v63, %v1050_v56  ;;  %v820_v29 = vmul.f32 %v3001_v20, %v3926_v41  ;;  %v788_v48 = vld [vmem:[#allocation2 + $0x10] sm:$0xff] }
 0x180   : >> { %v3005_v31 = vpop.eup %3004  ;;  %v867_v32 = vadd.f32 %v835_v21, %v802_v17  ;;  %v999_v33 = vadd.f32 %v967_v22, %v934_v18  ;;  %v1131_v34 = vadd.f32 %v1099_v23, %v1066_v19  ;;  %v952_v35 = vmul.f32 %v3001_v20, %v3929_v46  ;;  %v804_v18 = vld [vmem:[#allocation2 + $0x90] sm:$0xff] }
 0x181   : >> { %v3007_v39 = vpop.eup %3006  ;;  %883 = vst [vmem:[#allocation2] sm:$0xff] %v851_v26  ;;  %1015 = vst [vmem:[#allocation2 + $0x100] sm:$0xff] %v983_v27  ;;  %v852_v40 = vadd.f32 %v820_v29, %v787_v24  ;;  %v1084_v42 = vmul.f32 %v3001_v20, %v3932_v47  ;;  %v836_v43 = vmul.f32 %v3003_v25, %v3926_v41  ;;  %v936_v24 = vld [vmem:[#allocation2 + $0x190] sm:$0xff]  ;;  %v789_v26 = vld [vmem:[#allocation2 + $0x18] sm:$0xff]  ;;  %3028 = vpow2.f32 %v3934_v53 }
 0x182   : >> { %1147 = vst [vmem:[#allocation2 + $0x200] sm:$0xff] %v1115_v28  ;;  %v968_v44 = vmul.f32 %v3003_v25, %v3929_v46  ;;  %v3009_v50 = vpop.eup %3008  ;;  %899 = vst [vmem:[#allocation2 + $0x80] sm:$0xff] %v867_v32  ;;  %v984_v51 = vadd.f32 %v952_v35, %v919_v30  ;;  %v1100_v52 = vmul.f32 %v3003_v25, %v3932_v47  ;;  %v1068_v25 = vld [vmem:[#allocation2 + $0x290] sm:$0xff]  ;;  %v921_v32 = vld [vmem:[#allocation2 + $0x118] sm:$0xff]  ;;  %3030 = vpow2.f32 %v3936_v54 }
 0x183   : >> { %1031 = vst [vmem:[#allocation2 + $0x180] sm:$0xff] %v999_v33  ;;  %1163 = vst [vmem:[#allocation2 + $0x280] sm:$0xff] %v1131_v34  ;;  %v821_v55 = vmul.f32 %v3005_v31, %v3926_v41  ;;  %v953_v56 = vmul.f32 %v3005_v31, %v3929_v46  ;;  %v3011_v60 = vpop.eup %3010  ;;  %v1116_v61 = vadd.f32 %v1084_v42, %v1051_v36  ;;  %v1053_v33 = vld [vmem:[#allocation2 + $0x218] sm:$0xff]  ;;  %3032 = vpow2.f32 %v3938_v58 }
 0x184   : >> { %884 = vst [vmem:[#allocation2 + $0x8] sm:$0xff] %v852_v40  ;;  %v868_v62 = vadd.f32 %v836_v43, %v803_v37  ;;  %v1000_v63 = vadd.f32 %v968_v44, %v935_v38  ;;  %v1085_v17 = vmul.f32 %v3005_v31, %v3932_v47  ;;  %v3013_v19 = vpop.eup %3012  ;;  %1016 = vst [vmem:[#allocation2 + $0x108] sm:$0xff] %v984_v51  ;;  %v805_v34 = vld [vmem:[#allocation2 + $0x98] sm:$0xff]  ;;  %3034 = vpow2.f32 %v3940_v59 }
 0x185   : >> { %v1132_v20 = vadd.f32 %v1100_v52, %v1067_v45  ;;  %v853_v21 = vadd.f32 %v821_v55, %v788_v48  ;;  %v985_v22 = vadd.f32 %v953_v56, %v920_v49  ;;  %v837_v23 = vmul.f32 %v3007_v39, %v3926_v41  ;;  %v3015_v27 = vpop.eup %3014  ;;  %1148 = vst [vmem:[#allocation2 + $0x208] sm:$0xff] %v1116_v61  ;;  %v937_v42 = vld [vmem:[#allocation2 + $0x198] sm:$0xff]  ;;  %v922_v61 = vld [vmem:[#allocation2 + $0x120] sm:$0xff] }
 0x186   : >> { %900 = vst [vmem:[#allocation2 + $0x88] sm:$0xff] %v868_v62  ;;  %1032 = vst [vmem:[#allocation2 + $0x188] sm:$0xff] %v1000_v63  ;;  %v1117_v28 = vadd.f32 %v1085_v17, %v1052_v57  ;;  %v969_v29 = vmul.f32 %v3007_v39, %v3929_v46  ;;  %v1101_v30 = vmul.f32 %v3007_v39, %v3932_v47  ;;  %v3961_v35 = vpop.eup %3016  ;;  %v1069_v49 = vld [vmem:[#allocation2 + $0x298] sm:$0xff]  ;;  %v790_v57 = vld [vmem:[#allocation2 + $0x20] sm:$0xff]  ;;  %v3972_v63 = vpop.f32.mrf.mxu0 }
 0x187   : >> { %v822_v31 = vmul.f32 %v3009_v50, %v3926_v41  ;;  %1164 = vst [vmem:[#allocation2 + $0x288] sm:$0xff] %v1132_v20  ;;  %885 = vst [vmem:[#allocation2 + $0x10] sm:$0xff] %v853_v21  ;;  %v869_v36 = vadd.f32 %v837_v23, %v804_v18  ;;  %v954_v37 = vmul.f32 %v3009_v50, %v3929_v46  ;;  %v3966_v43 = vpop.eup %3018  ;;  %v1054_v62 = vld [vmem:[#allocation2 + $0x220] sm:$0xff] }
 0x188   : >> { %1017 = vst [vmem:[#allocation2 + $0x110] sm:$0xff] %v985_v22  ;;  %v1086_v38 = vmul.f32 %v3009_v50, %v3932_v47  ;;  %v838_v40 = vmul.f32 %v3011_v60, %v3926_v41  ;;  %1149 = vst [vmem:[#allocation2 + $0x210] sm:$0xff] %v1117_v28  ;;  %v1001_v39 = vadd.f32 %v969_v29, %v936_v24  ;;  %v3969_v51 = vpop.eup %3020  ;;  %v806_v23 = vld [vmem:[#allocation2 + $0xa0] sm:$0xff] }
 0x189   : >> { %v1133_v44 = vadd.f32 %v1101_v30, %v1068_v25  ;;  %v854_v45 = vadd.f32 %v822_v31, %v789_v26  ;;  %v970_v48 = vmul.f32 %v3011_v60, %v3929_v46  ;;  %901 = vst [vmem:[#allocation2 + $0x90] sm:$0xff] %v869_v36  ;;  %v986_v52 = vadd.f32 %v954_v37, %v921_v32  ;;  %v3974_v17 = vpop.eup %3022  ;;  %v938_v24 = vld [vmem:[#allocation2 + $0x1a0] sm:$0xff]  ;;  %v3979_v25 = vpop.f32.mrf.mxu1  ;;  %v791_v32 = vld [vmem:[#allocation2 + $0x28] sm:$0xff] }
 0x18a   : >> { %v1118_v55 = vadd.f32 %v1086_v38, %v1053_v33  ;;  %v870_v56 = vadd.f32 %v838_v40, %v805_v34  ;;  %v1102_v50 = vmul.f32 %v3011_v60, %v3932_v47  ;;  %1033 = vst [vmem:[#allocation2 + $0x190] sm:$0xff] %v1001_v39  ;;  %v823_v20 = vmul.f32 %v3013_v19, %v3926_v41  ;;  %v1070_v60 = vld [vmem:[#allocation2 + $0x2a0] sm:$0xff]  ;;  %v3981_v26 = vpop.eup %3024  ;;  %v923_v38 = vld [vmem:[#allocation2 + $0x128] sm:$0xff] }
 0x18b   : >> { %1165 = vst [vmem:[#allocation2 + $0x290] sm:$0xff] %v1133_v44  ;;  %886 = vst [vmem:[#allocation2 + $0x18] sm:$0xff] %v854_v45  ;;  %v1002_v18 = vadd.f32 %v970_v48, %v937_v42  ;;  %v955_v21 = vmul.f32 %v3013_v19, %v3929_v46  ;;  %v1087_v22 = vmul.f32 %v3013_v19, %v3932_v47  ;;  %v3986_v33 = vpop.eup %3026  ;;  %v1055_v45 = vld [vmem:[#allocation2 + $0x228] sm:$0xff] }
 0x18c   : >> { %1018 = vst [vmem:[#allocation2 + $0x118] sm:$0xff] %v986_v52  ;;  %1150 = vst [vmem:[#allocation2 + $0x218] sm:$0xff] %v1118_v55  ;;  %v1134_v28 = vadd.f32 %v1102_v50, %v1069_v49  ;;  %v839_v29 = vmul.f32 %v3015_v27, %v3926_v41  ;;  %v971_v30 = vmul.f32 %v3015_v27, %v3929_v46  ;;  %v939_v48 = vld [vmem:[#allocation2 + $0x1a8] sm:$0xff]  ;;  %v3992_v49 = vpop.f32.mrf.mxu0 }
 0x18d   : >> { %902 = vst [vmem:[#allocation2 + $0x98] sm:$0xff] %v870_v56  ;;  %v1103_v31 = vmul.f32 %v3015_v27, %v3932_v47  ;;  %1034 = vst [vmem:[#allocation2 + $0x198] sm:$0xff] %v1002_v18  ;;  %v855_v19 = vadd.f32 %v823_v20, %v790_v57  ;;  %v987_v34 = vadd.f32 %v955_v21, %v922_v61  ;;  %v807_v27 = vld [vmem:[#allocation2 + $0xa8] sm:$0xff]  ;;  %v792_v61 = vld [vmem:[#allocation2 + $0x30] sm:$0xff]  ;;  %v4000_v18 = vpop.f32.mrf.mxu1 }
 0x18e   : >> { %v1119_v36 = vadd.f32 %v1087_v22, %v1054_v62  ;;  %v824_v37 = vmul.f32 %v3961_v35, %v3926_v41  ;;  %1166 = vst [vmem:[#allocation2 + $0x298] sm:$0xff] %v1134_v28  ;;  %v871_v40 = vadd.f32 %v839_v29, %v806_v23  ;;  %v1003_v42 = vadd.f32 %v971_v30, %v938_v24  ;;  %v1071_v57 = vld [vmem:[#allocation2 + $0x2a8] sm:$0xff]  ;;  %v924_v62 = vld [vmem:[#allocation2 + $0x130] sm:$0xff] }
 0x18f   : >> { %v1135_v39 = vadd.f32 %v1103_v31, %v1070_v60  ;;  %v956_v44 = vmul.f32 %v3961_v35, %v3929_v46  ;;  %887 = vst [vmem:[#allocation2 + $0x20] sm:$0xff] %v855_v19  ;;  %1019 = vst [vmem:[#allocation2 + $0x120] sm:$0xff] %v987_v34  ;;  %v1088_v55 = vmul.f32 %v3961_v35, %v3932_v47  ;;  %v1056_v23 = vld [vmem:[#allocation2 + $0x230] sm:$0xff]  ;;  %v2719_v53 = vmul.f32 -1.442695, %v4000_v18 }
 0x190   : >> { %1151 = vst [vmem:[#allocation2 + $0x220] sm:$0xff] %v1119_v36  ;;  %v856_v52 = vadd.f32 %v824_v37, %v791_v32  ;;  %v840_v56 = vmul.f32 %v3966_v43, %v3926_v41  ;;  %v972_v50 = vmul.f32 %v3966_v43, %v3929_v46  ;;  %903 = vst [vmem:[#allocation2 + $0xa0] sm:$0xff] %v871_v40  ;;  %v808_v30 = vld [vmem:[#allocation2 + $0xb0] sm:$0xff]  ;;  %v793_v37 = vld [vmem:[#allocation2 + $0x38] sm:$0xff] }
 0x191   : >> { %1035 = vst [vmem:[#allocation2 + $0x1a0] sm:$0xff] %v1003_v42  ;;  %1167 = vst [vmem:[#allocation2 + $0x2a0] sm:$0xff] %v1135_v39  ;;  %v988_v20 = vadd.f32 %v956_v44, %v923_v38  ;;  %v1104_v21 = vmul.f32 %v3966_v43, %v3932_v47  ;;  %v825_v35 = vmul.f32 %v3969_v51, %v3926_v41  ;;  %v940_v34 = vld [vmem:[#allocation2 + $0x1b0] sm:$0xff]  ;;  %v542_v38 = vpop.f32.mrf.mxu0  ;;  %v925_v44 = vld [vmem:[#allocation2 + $0x138] sm:$0xff] }
 0x192   : >> { %v957_v22 = vmul.f32 %v3969_v51, %v3929_v46  ;;  %888 = vst [vmem:[#allocation2 + $0x28] sm:$0xff] %v856_v52  ;;  %v1120_v24 = vadd.f32 %v1088_v55, %v1055_v45  ;;  %v872_v60 = vadd.f32 %v840_v56, %v807_v27  ;;  %v1004_v28 = vadd.f32 %v972_v50, %v939_v48  ;;  %v1072_v36 = vld [vmem:[#allocation2 + $0x2b0] sm:$0xff]  ;;  %v1057_v45 = vld [vmem:[#allocation2 + $0x238] sm:$0xff]  ;;  %v582_v48 = vpop.f32.mrf.mxu1 }
 0x193   : >> { %v1089_v29 = vmul.f32 %v3969_v51, %v3932_v47  ;;  %1020 = vst [vmem:[#allocation2 + $0x128] sm:$0xff] %v988_v20  ;;  %v1136_v31 = vadd.f32 %v1104_v21, %v1071_v57  ;;  %v857_v32 = vadd.f32 %v825_v35, %v792_v61  ;;  %v841_v43 = vmul.f32 %v3974_v17, %v3926_v41  ;;  %v809_v27 = vld [vmem:[#allocation2 + $0xb8] sm:$0xff] }
 0x194   : >> { %v989_v19 = vadd.f32 %v957_v22, %v924_v62  ;;  %1152 = vst [vmem:[#allocation2 + $0x228] sm:$0xff] %v1120_v24  ;;  %904 = vst [vmem:[#allocation2 + $0xa8] sm:$0xff] %v872_v60  ;;  %v973_v42 = vmul.f32 %v3974_v17, %v3929_v46  ;;  %v1105_v51 = vmul.f32 %v3974_v17, %v3932_v47  ;;  %v941_v50 = vld [vmem:[#allocation2 + $0x1b8] sm:$0xff] }
 0x195   : >> { %1036 = vst [vmem:[#allocation2 + $0x1a8] sm:$0xff] %v1004_v28  ;;  %v1121_v40 = vadd.f32 %v1089_v29, %v1056_v23  ;;  %v826_v39 = vmul.f32 %v3981_v26, %v3926_v41  ;;  %1168 = vst [vmem:[#allocation2 + $0x2a8] sm:$0xff] %v1136_v31  ;;  %v873_v52 = vadd.f32 %v841_v43, %v808_v30  ;;  %v1073_v21 = vld [vmem:[#allocation2 + $0x2b8] sm:$0xff]  ;;  %v2702_v28 = vmul.f32 -1.442695, %v3972_v63  ;;  %v584_v29 = vpop.f32.mrf.mxu1 }
 0x196   : >> { %889 = vst [vmem:[#allocation2 + $0x30] sm:$0xff] %v857_v32  ;;  %1021 = vst [vmem:[#allocation2 + $0x130] sm:$0xff] %v989_v19  ;;  %v958_v55 = vmul.f32 %v3981_v26, %v3929_v46  ;;  %v1090_v56 = vmul.f32 %v3981_v26, %v3932_v47  ;;  %v842_v17 = vmul.f32 %v3986_v33, %v3926_v41  ;;  %v544_v26 = vpop.f32.mrf.mxu0  ;;  %v2718_v31 = vmul.f32 -1.442695, %v3979_v25 }
 0x197   : >> { %1153 = vst [vmem:[#allocation2 + $0x230] sm:$0xff] %v1121_v40  ;;  %v1005_v57 = vadd.f32 %v973_v42, %v940_v34  ;;  %v1137_v61 = vadd.f32 %v1105_v51, %v1072_v36  ;;  %v858_v62 = vadd.f32 %v826_v39, %v793_v37  ;;  %v974_v20 = vmul.f32 %v3986_v33, %v3929_v46  ;;  %v586_v19 = vpop.f32.mrf.mxu1  ;;  %v3029_v37 = vpop.eup %3028 }
 0x198   : >> { %905 = vst [vmem:[#allocation2 + $0xb0] sm:$0xff] %v873_v52  ;;  %v990_v35 = vadd.f32 %v958_v55, %v925_v44  ;;  %v1122_v22 = vadd.f32 %v1090_v56, %v1057_v45  ;;  %v874_v23 = vadd.f32 %v842_v17, %v809_v27  ;;  %v1106_v24 = vmul.f32 %v3986_v33, %v3932_v47  ;;  %v546_v63 = vpop.f32.mrf.mxu0 }
 0x199   : >> { %1037 = vst [vmem:[#allocation2 + $0x1b0] sm:$0xff] %v1005_v57  ;;  %1169 = vst [vmem:[#allocation2 + $0x2b0] sm:$0xff] %v1137_v61  ;;  %v1006_v60 = vadd.f32 %v974_v20, %v941_v50  ;;  %v2703_v33 = vmul.f32 -1.442695, %v3992_v49  ;;  %3036 = vpow2.f32 %v2702_v28  ;;  %v2704_v32 = vmul.f32 -1.442695, %v542_v38  ;;  %v588_v36 = vpop.f32.mrf.mxu1  ;;  %v3031_v38 = vpop.eup %3030 }
 0x19a   : >> { %890 = vst [vmem:[#allocation2 + $0x38] sm:$0xff] %v858_v62  ;;  %1022 = vst [vmem:[#allocation2 + $0x138] sm:$0xff] %v990_v35  ;;  %v1138_v30 = vadd.f32 %v1106_v24, %v1073_v21  ;;  %3038 = vpow2.f32 %v2718_v31  ;;  %v2720_v43 = vmul.f32 -1.442695, %v582_v48  ;;  %v2705_v54 = vmul.f32 -1.442695, %v544_v26  ;;  %v548_v34 = vpop.f32.mrf.mxu0  ;;  %v3033_v42 = vpop.eup %3032 }
 0x19b   : >> { %1154 = vst [vmem:[#allocation2 + $0x238] sm:$0xff] %v1122_v22  ;;  %906 = vst [vmem:[#allocation2 + $0xb8] sm:$0xff] %v874_v23  ;;  %3040 = vpow2.f32 %v2703_v33  ;;  %v2721_v25 = vmul.f32 -1.442695, %v584_v29  ;;  %v2706_v58 = vmul.f32 -1.442695, %v546_v63  ;;  %v3035_v39 = vpop.eup %3034 }
 0x19c   : >> { %1038 = vst [vmem:[#allocation2 + $0x1b8] sm:$0xff] %v1006_v60  ;;  %1170 = vst [vmem:[#allocation2 + $0x2b8] sm:$0xff] %v1138_v30  ;;  %3042 = vpow2.f32 %v2719_v53  ;;  %v2722_v49 = vmul.f32 -1.442695, %v586_v19  ;;  %v2707_v59 = vmul.f32 -1.442695, %v548_v34 }
 0x19d   : >> { %3044 = vpow2.f32 %v2704_v32  ;;  %v2723_v18 = vmul.f32 -1.442695, %v588_v36  ;;  %v695_v40 = vadd.f32 1.0, %v3029_v37  ;;  %v711_v51 = vadd.f32 1.0, %v3031_v38  ;;  %v794_v63 = vld [vmem:[#allocation2 + $0x40] sm:$0xff] }
 0x19e   : >> { %3046 = vpow2.f32 %v2720_v43  ;;  %v696_v44 = vadd.f32 1.0, %v3033_v42  ;;  %v712_v27 = vadd.f32 1.0, %v3035_v39  ;;  %v926_v32 = vld [vmem:[#allocation2 + $0x140] sm:$0xff]  ;;  %v795_v42 = vld [vmem:[#allocation2 + $0x48] sm:$0xff] }
 0x19f   : >> { %3048 = vpow2.f32 %v2705_v54  ;;  %v1058_v19 = vld [vmem:[#allocation2 + $0x240] sm:$0xff] }
 0x1a0   : >> { %3050 = vpow2.f32 %v2721_v25  ;;  %v810_v36 = vld [vmem:[#allocation2 + $0xc0] sm:$0xff] }
 0x1a1   : >> { %3052 = vpow2.f32 %v2706_v58 }
 0x1a2   : >> { %3054 = vpow2.f32 %v2722_v49  ;;  %v942_v49 = vld [vmem:[#allocation2 + $0x1c0] sm:$0xff] }
 0x1a3   : >> { %3056 = vpow2.f32 %v2707_v59  ;;  %v1074_v59 = vld [vmem:[#allocation2 + $0x2c0] sm:$0xff] }
 0x1a4   : >> { %3058 = vpow2.f32 %v2723_v18 }
 0x1a5   : >> { %3060 = vrcp.f32 %v695_v40 }
 0x1a6   : >> { %v3037_v45 = vpop.eup %3036  ;;  %3062 = vrcp.f32 %v711_v51 }
 0x1a7   : >> { %v3039_v48 = vpop.eup %3038  ;;  %3064 = vrcp.f32 %v696_v44  ;;  %v697_v52 = vadd.f32 1.0, %v3037_v45 }
 0x1a8   : >> { %v3041_v55 = vpop.eup %3040  ;;  %3066 = vrcp.f32 %v712_v27  ;;  %v713_v56 = vadd.f32 1.0, %v3039_v48  ;;  %v927_v48 = vld [vmem:[#allocation2 + $0x148] sm:$0xff] }
 0x1a9   : >> { %v3043_v17 = vpop.eup %3042  ;;  %3068 = vrcp.f32 %v697_v52  ;;  %v698_v50 = vadd.f32 1.0, %v3041_v55 }
 0x1aa   : >> { %v3045_v57 = vpop.eup %3044  ;;  %3070 = vrcp.f32 %v713_v56  ;;  %v714_v61 = vadd.f32 1.0, %v3043_v17 }
 0x1ab   : >> { %v3047_v62 = vpop.eup %3046  ;;  %3072 = vrcp.f32 %v698_v50  ;;  %v699_v20 = vadd.f32 1.0, %v3045_v57  ;;  %v1059_v57 = vld [vmem:[#allocation2 + $0x248] sm:$0xff] }
 0x1ac   : >> { %v3049_v21 = vpop.eup %3048  ;;  %3074 = vrcp.f32 %v714_v61  ;;  %v715_v35 = vadd.f32 1.0, %v3047_v62  ;;  %v811_v61 = vld [vmem:[#allocation2 + $0xc8] sm:$0xff] }
 0x1ad   : >> { %v3051_v22 = vpop.eup %3050  ;;  %3076 = vrcp.f32 %v699_v20  ;;  %v700_v23 = vadd.f32 1.0, %v3049_v21  ;;  %v943_v62 = vld [vmem:[#allocation2 + $0x1c8] sm:$0xff] }
 0x1ae   : >> { %v3053_v24 = vpop.eup %3052  ;;  %3078 = vrcp.f32 %v715_v35  ;;  %v716_v26 = vadd.f32 1.0, %v3051_v22 }
 0x1af   : >> { %v3055_v60 = vpop.eup %3054  ;;  %3080 = vrcp.f32 %v700_v23  ;;  %v701_v28 = vadd.f32 1.0, %v3053_v24  ;;  %v1075_v24 = vld [vmem:[#allocation2 + $0x2c8] sm:$0xff] }
 0x1b0   : >> { %v3057_v29 = vpop.eup %3056  ;;  %3082 = vrcp.f32 %v716_v26  ;;  %v717_v30 = vadd.f32 1.0, %v3055_v60  ;;  %v796_v26 = vld [vmem:[#allocation2 + $0x50] sm:$0xff] }
 0x1b1   : >> { %v3059_v31 = vpop.eup %3058  ;;  %3084 = vrcp.f32 %v701_v28  ;;  %v702_v33 = vadd.f32 1.0, %v3057_v29  ;;  %v928_v60 = vld [vmem:[#allocation2 + $0x150] sm:$0xff] }
 0x1b2   : >> { %v3061_v53 = vpop.eup %3060  ;;  %3086 = vrcp.f32 %v717_v30  ;;  %v718_v43 = vadd.f32 1.0, %v3059_v31 }
 0x1b3   : >> { %v3063_v54 = vpop.eup %3062  ;;  %v827_v25 = vmul.f32 %v3061_v53, %v3926_v41  ;;  %v959_v34 = vmul.f32 %v3061_v53, %v3929_v46  ;;  %v1091_v58 = vmul.f32 %v3061_v53, %v3932_v47  ;;  %3088 = vrcp.f32 %v702_v33  ;;  %v1060_v53 = vld [vmem:[#allocation2 + $0x250] sm:$0xff] }
 0x1b4   : >> { %v3065_v18 = vpop.eup %3064  ;;  %v843_v37 = vmul.f32 %v3063_v54, %v3926_v41  ;;  %v975_v38 = vmul.f32 %v3063_v54, %v3929_v46  ;;  %v1107_v40 = vmul.f32 %v3063_v54, %v3932_v47  ;;  %3090 = vrcp.f32 %v718_v43 }
 0x1b5   : >> { %v3067_v51 = vpop.eup %3066  ;;  %v859_v39 = vadd.f32 %v827_v25, %v794_v63  ;;  %v991_v44 = vadd.f32 %v959_v34, %v926_v32  ;;  %v1123_v45 = vadd.f32 %v1091_v58, %v1058_v19  ;;  %v828_v27 = vmul.f32 %v3065_v18, %v3926_v41  ;;  %v812_v25 = vld [vmem:[#allocation2 + $0xd0] sm:$0xff] }
 0x1b6   : >> { %v3069_v52 = vpop.eup %3068  ;;  %v875_v55 = vadd.f32 %v843_v37, %v810_v36  ;;  %v1007_v56 = vadd.f32 %v975_v38, %v942_v49  ;;  %v1139_v17 = vadd.f32 %v1107_v40, %v1074_v59  ;;  %v960_v50 = vmul.f32 %v3065_v18, %v3929_v46  ;;  %v1076_v37 = vld [vmem:[#allocation2 + $0x2d0] sm:$0xff]  ;;  %v797_v38 = vld [vmem:[#allocation2 + $0x58] sm:$0xff] }
 0x1b7   : >> { %v3071_v20 = vpop.eup %3070  ;;  %891 = vst [vmem:[#allocation2 + $0x40] sm:$0xff] %v859_v39  ;;  %1023 = vst [vmem:[#allocation2 + $0x140] sm:$0xff] %v991_v44  ;;  %v860_v21 = vadd.f32 %v828_v27, %v795_v42  ;;  %v1092_v35 = vmul.f32 %v3065_v18, %v3932_v47  ;;  %v844_v22 = vmul.f32 %v3067_v51, %v3926_v41  ;;  %v944_v18 = vld [vmem:[#allocation2 + $0x1d0] sm:$0xff]  ;;  %v1061_v27 = vld [vmem:[#allocation2 + $0x258] sm:$0xff] }
 0x1b8   : >> { %1155 = vst [vmem:[#allocation2 + $0x240] sm:$0xff] %v1123_v45  ;;  %v976_v23 = vmul.f32 %v3067_v51, %v3929_v46  ;;  %v3073_v28 = vpop.eup %3072  ;;  %907 = vst [vmem:[#allocation2 + $0xc0] sm:$0xff] %v875_v55  ;;  %v992_v29 = vadd.f32 %v960_v50, %v927_v48  ;;  %v1108_v30 = vmul.f32 %v3067_v51, %v3932_v47  ;;  %v929_v45 = vld [vmem:[#allocation2 + $0x158] sm:$0xff] }
 0x1b9   : >> { %1039 = vst [vmem:[#allocation2 + $0x1c0] sm:$0xff] %v1007_v56  ;;  %1171 = vst [vmem:[#allocation2 + $0x2c0] sm:$0xff] %v1139_v17  ;;  %v829_v31 = vmul.f32 %v3069_v52, %v3926_v41  ;;  %v961_v33 = vmul.f32 %v3069_v52, %v3929_v46  ;;  %v3075_v63 = vpop.eup %3074  ;;  %v1124_v32 = vadd.f32 %v1092_v35, %v1059_v57  ;;  %v813_v48 = vld [vmem:[#allocation2 + $0xd8] sm:$0xff] }
 0x1ba   : >> { %892 = vst [vmem:[#allocation2 + $0x48] sm:$0xff] %v860_v21  ;;  %v876_v19 = vadd.f32 %v844_v22, %v811_v61  ;;  %v1008_v43 = vadd.f32 %v976_v23, %v943_v62  ;;  %v1093_v54 = vmul.f32 %v3069_v52, %v3932_v47  ;;  %v3077_v34 = vpop.eup %3076  ;;  %1024 = vst [vmem:[#allocation2 + $0x148] sm:$0xff] %v992_v29  ;;  %v945_v57 = vld [vmem:[#allocation2 + $0x1d8] sm:$0xff]  ;;  %v798_v29 = vld [vmem:[#allocation2 + $0x60] sm:$0xff] }
 0x1bb   : >> { %v1140_v58 = vadd.f32 %v1108_v30, %v1075_v24  ;;  %v861_v36 = vadd.f32 %v829_v31, %v796_v26  ;;  %v993_v49 = vadd.f32 %v961_v33, %v928_v60  ;;  %v845_v59 = vmul.f32 %v3071_v20, %v3926_v41  ;;  %v3079_v40 = vpop.eup %3078  ;;  %1156 = vst [vmem:[#allocation2 + $0x248] sm:$0xff] %v1124_v32  ;;  %v1077_v22 = vld [vmem:[#allocation2 + $0x2d8] sm:$0xff]  ;;  %v930_v30 = vld [vmem:[#allocation2 + $0x160] sm:$0xff] }
 0x1bc   : >> { %908 = vst [vmem:[#allocation2 + $0xc8] sm:$0xff] %v876_v19  ;;  %1040 = vst [vmem:[#allocation2 + $0x1c8] sm:$0xff] %v1008_v43  ;;  %v1125_v42 = vadd.f32 %v1093_v54, %v1060_v53  ;;  %v977_v51 = vmul.f32 %v3071_v20, %v3929_v46  ;;  %v1109_v39 = vmul.f32 %v3071_v20, %v3932_v47  ;;  %v4055_v52 = vpop.eup %3080  ;;  %v1062_v31 = vld [vmem:[#allocation2 + $0x260] sm:$0xff] }
 0x1bd   : >> { %v830_v44 = vmul.f32 %v3073_v28, %v3926_v41  ;;  %1172 = vst [vmem:[#allocation2 + $0x2c8] sm:$0xff] %v1140_v58  ;;  %893 = vst [vmem:[#allocation2 + $0x50] sm:$0xff] %v861_v36  ;;  %v877_v55 = vadd.f32 %v845_v59, %v812_v25  ;;  %v962_v56 = vmul.f32 %v3073_v28, %v3929_v46  ;;  %v4060_v61 = vpop.eup %3082  ;;  %v814_v54 = vld [vmem:[#allocation2 + $0xe0] sm:$0xff] }
 0x1be   : >> { %1025 = vst [vmem:[#allocation2 + $0x150] sm:$0xff] %v993_v49  ;;  %v1094_v17 = vmul.f32 %v3073_v28, %v3932_v47  ;;  %v846_v50 = vmul.f32 %v3075_v63, %v3926_v41  ;;  %1157 = vst [vmem:[#allocation2 + $0x250] sm:$0xff] %v1125_v42  ;;  %v1009_v62 = vadd.f32 %v977_v51, %v944_v18  ;;  %v4063_v23 = vpop.eup %3084  ;;  %v946_v25 = vld [vmem:[#allocation2 + $0x1e0] sm:$0xff] }
 0x1bf   : >> { %v1141_v20 = vadd.f32 %v1109_v39, %v1076_v37  ;;  %v862_v21 = vadd.f32 %v830_v44, %v797_v38  ;;  %v978_v35 = vmul.f32 %v3075_v63, %v3929_v46  ;;  %909 = vst [vmem:[#allocation2 + $0xd0] sm:$0xff] %v877_v55  ;;  %v994_v24 = vadd.f32 %v962_v56, %v929_v45  ;;  %v4066_v33 = vpop.eup %3086  ;;  %v1078_v58 = vld [vmem:[#allocation2 + $0x2e0] sm:$0xff]  ;;  %v799_v37 = vld [vmem:[#allocation2 + $0x68] sm:$0xff] }
 0x1c0   : >> { %v1126_v26 = vadd.f32 %v1094_v17, %v1061_v27  ;;  %v878_v60 = vadd.f32 %v846_v50, %v813_v48  ;;  %v1110_v28 = vmul.f32 %v3075_v63, %v3932_v47  ;;  %1041 = vst [vmem:[#allocation2 + $0x1d0] sm:$0xff] %v1009_v62  ;;  %v831_v32 = vmul.f32 %v3077_v34, %v3926_v41  ;;  %v4071_v36 = vpop.eup %3088  ;;  %v931_v44 = vld [vmem:[#allocation2 + $0x168] sm:$0xff] }
 0x1c1   : >> { %1173 = vst [vmem:[#allocation2 + $0x2d0] sm:$0xff] %v1141_v20  ;;  %894 = vst [vmem:[#allocation2 + $0x58] sm:$0xff] %v862_v21  ;;  %v1010_v53 = vadd.f32 %v978_v35, %v945_v57  ;;  %v963_v19 = vmul.f32 %v3077_v34, %v3929_v46  ;;  %v1095_v43 = vmul.f32 %v3077_v34, %v3932_v47  ;;  %v4076_v38 = vpop.eup %3090  ;;  %v1063_v56 = vld [vmem:[#allocation2 + $0x268] sm:$0xff]  ;;  %v800_v35 = vld [vmem:[#allocation2 + $0x70] sm:$0xff] }
 0x1c2   : >> { %1026 = vst [vmem:[#allocation2 + $0x158] sm:$0xff] %v994_v24  ;;  %1158 = vst [vmem:[#allocation2 + $0x258] sm:$0xff] %v1126_v26  ;;  %v1142_v63 = vadd.f32 %v1110_v28, %v1077_v22  ;;  %v847_v49 = vmul.f32 %v3079_v40, %v3926_v41  ;;  %v979_v59 = vmul.f32 %v3079_v40, %v3929_v46  ;;  %v947_v17 = vld [vmem:[#allocation2 + $0x1e8] sm:$0xff]  ;;  %v932_v22 = vld [vmem:[#allocation2 + $0x170] sm:$0xff] }
 0x1c3   : >> { %910 = vst [vmem:[#allocation2 + $0xd8] sm:$0xff] %v878_v60  ;;  %v1111_v18 = vmul.f32 %v3079_v40, %v3932_v47  ;;  %1042 = vst [vmem:[#allocation2 + $0x1d8] sm:$0xff] %v1010_v53  ;;  %v863_v34 = vadd.f32 %v831_v32, %v798_v29  ;;  %v995_v42 = vadd.f32 %v963_v19, %v930_v30  ;;  %v815_v40 = vld [vmem:[#allocation2 + $0xe8] sm:$0xff]  ;;  %v1064_v28 = vld [vmem:[#allocation2 + $0x270] sm:$0xff] }
 0x1c4   : >> { %v1127_v51 = vadd.f32 %v1095_v43, %v1062_v31  ;;  %v832_v39 = vmul.f32 %v4055_v52, %v3926_v41  ;;  %1174 = vst [vmem:[#allocation2 + $0x2d8] sm:$0xff] %v1142_v63  ;;  %v879_v45 = vadd.f32 %v847_v49, %v814_v54  ;;  %v1011_v27 = vadd.f32 %v979_v59, %v946_v25  ;;  %v1079_v21 = vld [vmem:[#allocation2 + $0x2e8] sm:$0xff]  ;;  %v816_v32 = vld [vmem:[#allocation2 + $0xf0] sm:$0xff]  ;;  %v801_v63 = vld [vmem:[#allocation2 + $0x78] sm:$0xff] }
 0x1c5   : >> { %v1143_v48 = vadd.f32 %v1111_v18, %v1078_v58  ;;  %v964_v55 = vmul.f32 %v4055_v52, %v3929_v46  ;;  %895 = vst [vmem:[#allocation2 + $0x60] sm:$0xff] %v863_v34  ;;  %1027 = vst [vmem:[#allocation2 + $0x160] sm:$0xff] %v995_v42  ;;  %v1096_v57 = vmul.f32 %v4055_v52, %v3932_v47  ;;  %v948_v25 = vld [vmem:[#allocation2 + $0x1f0] sm:$0xff]  ;;  %v1065_v34 = vld [vmem:[#allocation2 + $0x278] sm:$0xff] }
 0x1c6   : >> { %1159 = vst [vmem:[#allocation2 + $0x260] sm:$0xff] %v1127_v51  ;;  %v864_v50 = vadd.f32 %v832_v39, %v799_v37  ;;  %v848_v62 = vmul.f32 %v4060_v61, %v3926_v41  ;;  %v980_v20 = vmul.f32 %v4060_v61, %v3929_v46  ;;  %911 = vst [vmem:[#allocation2 + $0xe0] sm:$0xff] %v879_v45  ;;  %v1080_v58 = vld [vmem:[#allocation2 + $0x2f0] sm:$0xff]  ;;  %v933_v37 = vld [vmem:[#allocation2 + $0x178] sm:$0xff] }
 0x1c7   : >> { %1043 = vst [vmem:[#allocation2 + $0x1e0] sm:$0xff] %v1011_v27  ;;  %1175 = vst [vmem:[#allocation2 + $0x2e0] sm:$0xff] %v1143_v48  ;;  %v996_v24 = vadd.f32 %v964_v55, %v931_v44  ;;  %v1112_v26 = vmul.f32 %v4060_v61, %v3932_v47  ;;  %v833_v60 = vmul.f32 %v4063_v23, %v3926_v41  ;;  %v817_v42 = vld [vmem:[#allocation2 + $0xf8] sm:$0xff] }
 0x1c8   : >> { %v965_v52 = vmul.f32 %v4063_v23, %v3929_v46  ;;  %896 = vst [vmem:[#allocation2 + $0x68] sm:$0xff] %v864_v50  ;;  %v1128_v29 = vadd.f32 %v1096_v57, %v1063_v56  ;;  %v880_v30 = vadd.f32 %v848_v62, %v815_v40  ;;  %v1012_v31 = vadd.f32 %v980_v20, %v947_v17  ;;  %v1081_v40 = vld [vmem:[#allocation2 + $0x2f8] sm:$0xff] }
 0x1c9   : >> { %v1097_v53 = vmul.f32 %v4063_v23, %v3932_v47  ;;  %1028 = vst [vmem:[#allocation2 + $0x168] sm:$0xff] %v996_v24  ;;  %v1144_v19 = vadd.f32 %v1112_v26, %v1079_v21  ;;  %v865_v43 = vadd.f32 %v833_v60, %v800_v35  ;;  %v849_v61 = vmul.f32 %v4066_v33, %v3926_v41  ;;  %v1186_v20 = vld [vmem:[%s3730_s18 + $0x38] sm:$0xff] (%p394_p11) }
 0x1ca   : >> { %v997_v54 = vadd.f32 %v965_v52, %v932_v22  ;;  %1160 = vst [vmem:[#allocation2 + $0x268] sm:$0xff] %v1128_v29  ;;  %912 = vst [vmem:[#allocation2 + $0xe8] sm:$0xff] %v880_v30  ;;  %v981_v59 = vmul.f32 %v4066_v33, %v3929_v46  ;;  %v1113_v23 = vmul.f32 %v4066_v33, %v3932_v47  ;;  %v949_v33 = vld [vmem:[#allocation2 + $0x1f8] sm:$0xff]  ;;  %v4232_v35 = vunpack.c.2.s8 (%p394_p11), %v1182_v1 }
 0x1cb   : >> { %1044 = vst [vmem:[#allocation2 + $0x1e8] sm:$0xff] %v1012_v31  ;;  %v1129_v49 = vadd.f32 %v1097_v53, %v1064_v28  ;;  %v834_v18 = vmul.f32 %v4071_v36, %v3926_v41  ;;  %1176 = vst [vmem:[#allocation2 + $0x2e8] sm:$0xff] %v1144_v19  ;;  %v881_v51 = vadd.f32 %v849_v61, %v816_v32  ;;  %v4237_v24 = vunpack.c.3.s8 (%p394_p11), %v1182_v1 }
 0x1cc   : >> { %897 = vst [vmem:[#allocation2 + $0x70] sm:$0xff] %v865_v43  ;;  %1029 = vst [vmem:[#allocation2 + $0x170] sm:$0xff] %v997_v54  ;;  %v966_v39 = vmul.f32 %v4071_v36, %v3929_v46  ;;  %v1098_v44 = vmul.f32 %v4071_v36, %v3932_v47  ;;  %v850_v45 = vmul.f32 %v4076_v38, %v3926_v41  ;;  %v4239_v26 = vunpack.c.0.s8 (%p394_p11), %v1183_v6 }
 0x1cd   : >> { %1161 = vst [vmem:[#allocation2 + $0x270] sm:$0xff] %v1129_v49  ;;  %v1013_v27 = vadd.f32 %v981_v59, %v948_v25  ;;  %v1145_v48 = vadd.f32 %v1113_v23, %v1080_v58  ;;  %v866_v55 = vadd.f32 %v834_v18, %v801_v63  ;;  %v982_v56 = vmul.f32 %v4076_v38, %v3929_v46  ;;  %v4118_v46 = vld [vmem:[%s3730_s18] sm:$0xff] (%p394_p11) }
 0x1ce   : >> { %913 = vst [vmem:[#allocation2 + $0xf0] sm:$0xff] %v881_v51  ;;  %v998_v17 = vadd.f32 %v966_v39, %v933_v37  ;;  %v1130_v50 = vadd.f32 %v1098_v44, %v1065_v34  ;;  %v882_v57 = vadd.f32 %v850_v45, %v817_v42  ;;  %v1114_v62 = vmul.f32 %v4076_v38, %v3932_v47  ;;  %396 = sbr.rel (!%p394_p11) target bundleno = 149 (0x95), region = 121  ;;  %v4121_v47 = vld [vmem:[%s3730_s18 + $0x8] sm:$0xff] (%p394_p11)  ;;  %v4124_v38 = vld [vmem:[%s3730_s18 + $0x10] sm:$0xff] (%p394_p11) }
 0x1cf   : >> { %1045 = vst [vmem:[#allocation2 + $0x1f0] sm:$0xff] %v1013_v27  ;;  %1177 = vst [vmem:[#allocation2 + $0x2f0] sm:$0xff] %v1145_v48  ;;  %v1014_v41 = vadd.f32 %v982_v56, %v949_v33  ;;  %v4192_v2 = vunpack.c.0.s8 (%p394_p11), %v4118_v46  ;;  %v4195_v3 = vunpack.c.0.s8 (%p394_p11), %v4121_v47  ;;  %v4198_v4 = vunpack.c.1.s8 (%p394_p11), %v4118_v46 }
 0x1d0   : >> { %898 = vst [vmem:[#allocation2 + $0x78] sm:$0xff] %v866_v55  ;;  %1030 = vst [vmem:[#allocation2 + $0x178] sm:$0xff] %v998_v17  ;;  %v1146_v36 = vadd.f32 %v1114_v62, %v1081_v40  ;;  %v4201_v5 = vunpack.c.1.s8 (%p394_p11), %v4121_v47  ;;  %v4206_v8 = vunpack.c.2.s8 (%p394_p11), %v4118_v46  ;;  %v4209_v9 = vunpack.c.2.s8 (%p394_p11), %v4121_v47 }
 0x1d1   : >> { %1162 = vst [vmem:[#allocation2 + $0x278] sm:$0xff] %v1130_v50  ;;  %914 = vst [vmem:[#allocation2 + $0xf8] sm:$0xff] %v882_v57  ;;  %v4212_v10 = vunpack.c.3.s8 (%p394_p11), %v4118_v46  ;;  %v4215_v11 = vunpack.c.3.s8 (%p394_p11), %v4121_v47  ;;  %v4218_v12 = vunpack.c.0.s8 (%p394_p11), %v4124_v38  ;;  %v4223_v14 = vunpack.c.1.s8 (%p394_p11), %v4124_v38 }
 0x1d2   : >> { %1046 = vst [vmem:[#allocation2 + $0x1f8] sm:$0xff] %v1014_v41  ;;  %1178 = vst [vmem:[#allocation2 + $0x2f8] sm:$0xff] %v1146_v36  ;;  %v4230_v21 = vunpack.c.2.s8 (%p394_p11), %v4124_v38  ;;  %v4235_v22 = vunpack.c.3.s8 (%p394_p11), %v4124_v38  ;;  %v4241_v60 = vunpack.c.0.s8 (%p394_p11), %v1184_v7  ;;  %v4243_v52 = vunpack.c.1.s8 (%p394_p11), %v1183_v6 }
 0x1d3   : > { %5696 = vst [vmem:[#allocation22_spill] sm:$0xff] %v4192_v2  ;;  %5697 = vst [vmem:[#allocation23_spill] sm:$0xff] %v4195_v3  ;;  %v4245_v28 = vunpack.c.1.s8 %v1184_v7  ;;  %v4247_v29 = vunpack.c.2.s8 %v1183_v6  ;;  %v4249_v30 = vunpack.c.2.s8 %v1184_v7  ;;  %v4251_v31 = vunpack.c.3.s8 %v1183_v6 }
 0x1d4   : > { %5698 = vst [vmem:[#allocation24_spill] sm:$0xff] %v4198_v4  ;;  %5699 = vst [vmem:[#allocation25_spill] sm:$0xff] %v4201_v5  ;;  %v4253_v53 = vunpack.c.3.s8 %v1184_v7  ;;  %v4255_v32 = vunpack.c.0.s8 %v1185_v16  ;;  %v4257_v19 = vunpack.c.0.s8 %v1186_v20  ;;  %v4259_v43 = vunpack.c.1.s8 %v1185_v16 }
 0x1d5   : > { %5700 = vst [vmem:[#allocation26_spill] sm:$0xff] %v4206_v8  ;;  %5701 = vst [vmem:[#allocation27_spill] sm:$0xff] %v4209_v9  ;;  %v4261_v54 = vunpack.c.1.s8 %v1186_v20  ;;  %v4263_v61 = vunpack.c.2.s8 %v1185_v16  ;;  %v4265_v25 = vunpack.c.2.s8 %v1186_v20  ;;  %v4267_v58 = vunpack.c.3.s8 %v1185_v16 }
 0x1d6   : > { %5702 = vst [vmem:[#allocation28_spill] sm:$0xff] %v4212_v10  ;;  %5703 = vst [vmem:[#allocation29_spill] sm:$0xff] %v4215_v11  ;;  %v4269_v63 = vunpack.c.3.s8 %v1186_v20  ;;  %vm1219_vm1 = vcmp.ge.s32.totalorder %v4192_v2, 0  ;;  %vm1220_vm2 = vcmp.ge.s32.totalorder %v4195_v3, 0  ;;  %vm1221_vm3 = vcmp.ge.s32.totalorder %v4198_v4, 0 }
 0x1d7   : > { %5704 = vst [vmem:[#allocation30_spill] sm:$0xff] %v4218_v12  ;;  %5706 = vst [vmem:[#allocation32_spill] sm:$0xff] %v4223_v14  ;;  %vm1222_vm4 = vcmp.ge.s32.totalorder %v4201_v5, 0  ;;  %vm1223_vm5 = vcmp.ge.s32.totalorder %v4206_v8, 0  ;;  %vm1224_vm6 = vcmp.ge.s32.totalorder %v4209_v9, 0  ;;  %vm1241_vm13 = vcmp.ge.s32.totalorder %v4251_v31, 0 }
 0x1d8   : > { %5708 = vst [vmem:[#allocation34_spill] sm:$0xff] %v4230_v21  ;;  %5709 = vst [vmem:[#allocation35_spill] sm:$0xff] %v4232_v35  ;;  %vm1242_vm14 = vcmp.ge.s32.totalorder %v4253_v53, 0  ;;  %vm1243_vm15 = vcmp.ge.s32.totalorder %v4255_v32, 0  ;;  %vm1244_vm0 = vcmp.ge.s32.totalorder %v4257_v19, 0  ;;  %vm1245_vm7 = vcmp.ge.s32.totalorder %v4259_v43, 0 }
 0x1d9   : > { %5710 = vst [vmem:[#allocation36_spill] sm:$0xff] %v4235_v22  ;;  %5711 = vst [vmem:[#allocation37_spill] sm:$0xff] %v4237_v24  ;;  %vm1246_vm8 = vcmp.ge.s32.totalorder %v4261_v54, 0  ;;  %vm1247_vm9 = vcmp.ge.s32.totalorder %v4263_v61, 0  ;;  %vm1248_vm10 = vcmp.ge.s32.totalorder %v4265_v25, 0  ;;  %vm1249_vm11 = vcmp.ge.s32.totalorder %v4267_v58, 0 }
 0x1da   : > { %5712 = vst [vmem:[#allocation38_spill] sm:$0xff] %v4239_v26  ;;  %5713 = vst [vmem:[#allocation39_spill] sm:$0xff] %v4241_v60  ;;  %vm1250_vm12 = vcmp.ge.s32.totalorder %v4269_v63, 0  ;;  %v4306_v49 = vsel %vm1219_vm1, 1.0, %v3519_v0  ;;  %v4311_v59 = vsel %vm1220_vm2, 1.0, %v3519_v0  ;;  %v4316_v23 = vsel %vm1221_vm3, 1.0, %v3519_v0 }
 0x1db   : > { %5714 = vst [vmem:[#allocation40_spill] sm:$0xff] %v4243_v52  ;;  %5715 = vst [vmem:[#allocation41_spill] sm:$0xff] %v4245_v28  ;;  %v4321_v18 = vsel %vm1222_vm4, 1.0, %v3519_v0  ;;  %v4326_v37 = vsel %vm1223_vm5, 1.0, %v3519_v0  ;;  %v4331_v34 = vsel %vm1224_vm6, 1.0, %v3519_v0  ;;  %vm5734_vm1 = vcmp.ge.s32.totalorder %v4212_v10, 0 }
 0x1dc   : > { %5716 = vst [vmem:[#allocation42_spill] sm:$0xff] %v4247_v29  ;;  %5717 = vst [vmem:[#allocation43_spill] sm:$0xff] %v4249_v30  ;;  %v4336_v42 = vsel %vm5734_vm1, 1.0, %v3519_v0  ;;  %vm5736_vm2 = vcmp.ge.s32.totalorder %v4215_v11, 0  ;;  %vm5738_vm3 = vcmp.ge.s32.totalorder %v4218_v12, 0  ;;  %vm5740_vm4 = vcmp.ge.s32.totalorder %v4220_v13, 0 }
 0x1dd   : > { %5718 = vst [vmem:[#allocation44_spill] sm:$0xff] %v4251_v31  ;;  %5719 = vst [vmem:[#allocation45_spill] sm:$0xff] %v4253_v53  ;;  %v4341_v51 = vsel %vm5736_vm2, 1.0, %v3519_v0  ;;  %v4346_v39 = vsel %vm5738_vm3, 1.0, %v3519_v0  ;;  %v4351_v44 = vsel %vm5740_vm4, 1.0, %v3519_v0  ;;  %vm5742_vm5 = vcmp.ge.s32.totalorder %v4223_v14, 0 }
 0x1de   : > { %5720 = vst [vmem:[#allocation46_spill] sm:$0xff] %v4255_v32  ;;  %5721 = vst [vmem:[#allocation47_spill] sm:$0xff] %v4257_v19  ;;  %v4356_v45 = vsel %vm5742_vm5, 1.0, %v3519_v0  ;;  %vm5744_vm6 = vcmp.ge.s32.totalorder %v4225_v15, 0  ;;  %vm5746_vm1 = vcmp.ge.s32.totalorder %v4230_v21, 0  ;;  %vm5748_vm2 = vcmp.ge.s32.totalorder %v4232_v35, 0 }
 0x1df   : > { %5722 = vst [vmem:[#allocation48_spill] sm:$0xff] %v4259_v43  ;;  %5723 = vst [vmem:[#allocation49_spill] sm:$0xff] %v4261_v54  ;;  %v4361_v33 = vsel %vm5744_vm6, 1.0, %v3519_v0  ;;  %v4366_v27 = vsel %vm5746_vm1, 1.0, %v3519_v0  ;;  %v4371_v48 = vsel %vm5748_vm2, 1.0, %v3519_v0  ;;  %vm5750_vm3 = vcmp.ge.s32.totalorder %v4235_v22, 0 }
 0x1e0   : > { %5724 = vst [vmem:[#allocation50_spill] sm:$0xff] %v4263_v61  ;;  %5725 = vst [vmem:[#allocation51_spill] sm:$0xff] %v4265_v25  ;;  %v4376_v55 = vsel %vm5750_vm3, 1.0, %v3519_v0  ;;  %vm5752_vm4 = vcmp.ge.s32.totalorder %v4237_v24, 0  ;;  %vm5754_vm5 = vcmp.ge.s32.totalorder %v4239_v26, 0  ;;  %vm5756_vm6 = vcmp.ge.s32.totalorder %v4241_v60, 0 }
 0x1e1   : > { %5726 = vst [vmem:[#allocation52_spill] sm:$0xff] %v4267_v58  ;;  %5727 = vst [vmem:[#allocation53_spill] sm:$0xff] %v4269_v63  ;;  %v4381_v56 = vsel %vm5752_vm4, 1.0, %v3519_v0  ;;  %v4386_v40 = vsel %vm5754_vm5, 1.0, %v3519_v0  ;;  %v4391_v17 = vsel %vm5756_vm6, 1.0, %v3519_v0  ;;  %vm5758_vm1 = vcmp.ge.s32.totalorder %v4243_v52, 0 }
 0x1e2   : > { %5728 = vst [vmem:[#allocation54_spill] sm:$0xff] %v4306_v49  ;;  %5729 = vst [vmem:[#allocation55_spill] sm:$0xff] %v4311_v59  ;;  %v4396_v50 = vsel %vm5758_vm1, 1.0, %v3519_v0  ;;  %vm5760_vm2 = vcmp.ge.s32.totalorder %v4245_v28, 0  ;;  %vm5762_vm3 = vcmp.ge.s32.totalorder %v4247_v29, 0  ;;  %vm5764_vm4 = vcmp.ge.s32.totalorder %v4249_v30, 0 }
 0x1e3   : > { %5730 = vst [vmem:[#allocation56_spill] sm:$0xff] %v4316_v23  ;;  %5731 = vst [vmem:[#allocation57_spill] sm:$0xff] %v4321_v18  ;;  %v4401_v57 = vsel %vm5760_vm2, 1.0, %v3519_v0  ;;  %v4406_v62 = vsel %vm5762_vm3, 1.0, %v3519_v0  ;;  %v4411_v41 = vsel %vm5764_vm4, 1.0, %v3519_v0  ;;  %v4416_v36 = vsel %vm1241_vm13, 1.0, %v3519_v0 }
 0x1e4   : > { %5732 = vst [vmem:[#allocation58_spill] sm:$0xff] %v4326_v37  ;;  %5733 = vst [vmem:[#allocation59_spill] sm:$0xff] %v4331_v34  ;;  %v4421_v46 = vsel %vm1242_vm14, 1.0, %v3519_v0  ;;  %v4426_v47 = vsel %vm1243_vm15, 1.0, %v3519_v0  ;;  %v4431_v38 = vsel %vm1244_vm0, 1.0, %v3519_v0  ;;  %v4436_v1 = vsel %vm1245_vm7, 1.0, %v3519_v0 }
 0x1e5   : > { %5735 = vst [vmem:[#allocation60_spill] sm:$0xff] %v4336_v42  ;;  %5737 = vst [vmem:[#allocation61_spill] sm:$0xff] %v4341_v51  ;;  %v4441_v6 = vsel %vm1246_vm8, 1.0, %v3519_v0  ;;  %v4446_v7 = vsel %vm1247_vm9, 1.0, %v3519_v0  ;;  %v4451_v16 = vsel %vm1248_vm10, 1.0, %v3519_v0  ;;  %v4456_v20 = vsel %vm1249_vm11, 1.0, %v3519_v0 }
 0x1e6   : > { %5739 = vst [vmem:[#allocation62_spill] sm:$0xff] %v4346_v39  ;;  %5741 = vst [vmem:[#allocation63_spill] sm:$0xff] %v4351_v44 }
 0x1e7   : > { %5743 = vst [vmem:[#allocation64_spill] sm:$0xff] %v4356_v45  ;;  %5745 = vst [vmem:[#allocation65_spill] sm:$0xff] %v4361_v33 }
 0x1e8   : > { %5747 = vst [vmem:[#allocation66_spill] sm:$0xff] %v4366_v27  ;;  %5749 = vst [vmem:[#allocation67_spill] sm:$0xff] %v4371_v48 }
 0x1e9   : > { %5751 = vst [vmem:[#allocation68_spill] sm:$0xff] %v4376_v55  ;;  %5753 = vst [vmem:[#allocation69_spill] sm:$0xff] %v4381_v56 }
 0x1ea   : > { %5755 = vst [vmem:[#allocation70_spill] sm:$0xff] %v4386_v40  ;;  %5757 = vst [vmem:[#allocation71_spill] sm:$0xff] %v4391_v17 }
 0x1eb   : > { %5759 = vst [vmem:[#allocation72_spill] sm:$0xff] %v4396_v50  ;;  %5761 = vst [vmem:[#allocation73_spill] sm:$0xff] %v4401_v57 }
 0x1ec   : > { %5763 = vst [vmem:[#allocation74_spill] sm:$0xff] %v4406_v62  ;;  %5765 = vst [vmem:[#allocation75_spill] sm:$0xff] %v4411_v41 }
 0x1ed   : > { %5766 = vst [vmem:[#allocation76_spill] sm:$0xff] %v4416_v36  ;;  %5767 = vst [vmem:[#allocation77_spill] sm:$0xff] %v4421_v46 }
 0x1ee   : > { %5768 = vst [vmem:[#allocation78_spill] sm:$0xff] %v4426_v47  ;;  %5769 = vst [vmem:[#allocation79_spill] sm:$0xff] %v4431_v38 }
 0x1ef   : > { %5770 = vst [vmem:[#allocation80_spill] sm:$0xff] %v4436_v1  ;;  %5771 = vst [vmem:[#allocation81_spill] sm:$0xff] %v4441_v6  ;;  %v4461_v1 = vsel %vm1250_vm12, 1.0, %v3519_v0 }
 0x1f0   : > { %5772 = vst [vmem:[#allocation82_spill] sm:$0xff] %v4446_v7  ;;  %5773 = vst [vmem:[#allocation83_spill] sm:$0xff] %v4451_v16 }
 0x1f1   : > { %5774 = vst [vmem:[#allocation84_spill] sm:$0xff] %v4456_v20  ;;  %5775 = vst [vmem:[#allocation85_spill] sm:$0xff] %v4461_v1 }
 0x1f2 LB: >> { %v5776_v26 = vld [vmem:[#allocation38_spill] sm:$0xff]  ;;  %v5777_v13 = vld [vmem:[#allocation31_spill] sm:$0xff]  ;;  %v5778_v11 = vld [vmem:[#allocation29_spill] sm:$0xff]  ;;  %s2800_s7 = sshll.u32 %s3502_s16, 8  ;;  %v4470_v16 = vstv %s3502_s16  ;;  %s1384_s16 = sadd.s32 1, %s3502_s16   ;;  %s3502_s16 = sphi %s4463_s16, %s1384_s16  }
 0x1f3   : >> { %v5779_v12 = vld [vmem:[#allocation30_spill] sm:$0xff]  ;;  %v5780_v10 = vld [vmem:[#allocation28_spill] sm:$0xff]  ;;  %v5782_v9 = vld [vmem:[#allocation27_spill] sm:$0xff]  ;;  %s4480_s18 = scalar_lea.vmem [#allocation2], %s2800_s7  ;;  %vm1653_vm14 = vcmp.eq.s32.totalorder %v5778_v11, %v4470_v16  ;;  %vm1655_vm0 = vcmp.eq.s32.totalorder %v5777_v13, %v4470_v16  ;;  %p1381_p1 = scmp.ge.s32.totalorder %s1384_s16, 3  }
 0x1f4   : >> { %v5781_v8 = vld [vmem:[#allocation26_spill] sm:$0xff]  ;;  %v5783_v5 = vld [vmem:[#allocation25_spill] sm:$0xff]  ;;  %v5784_v4 = vld [vmem:[#allocation24_spill] sm:$0xff]  ;;  %vm1651_vm12 = vcmp.eq.s32.totalorder %v5782_v9, %v4470_v16  ;;  %vm1652_vm13 = vcmp.eq.s32.totalorder %v5780_v10, %v4470_v16  ;;  %vm1654_vm15 = vcmp.eq.s32.totalorder %v5779_v12, %v4470_v16  ;;  %s5113_s4 = smov (%p1381_p1), 0  }
 0x1f5   : >> { %v5785_v3 = vld [vmem:[#allocation23_spill] sm:$0xff]  ;;  %v5786_v2 = vld [vmem:[#allocation22_spill] sm:$0xff]  ;;  %vm1648_vm9 = vcmp.eq.s32.totalorder %v5784_v4, %v4470_v16  ;;  %vm1649_vm10 = vcmp.eq.s32.totalorder %v5783_v5, %v4470_v16  ;;  %v1388_v0 = vld [vmem:[%s4480_s18] sm:$0xff]  ;;  %vm1650_vm11 = vcmp.eq.s32.totalorder %v5781_v8, %v4470_v16 }
 0x1f6   : >> { %vm1646_vm7 = vcmp.eq.s32.totalorder %v5786_v2, %v4470_v16  ;;  %vm1647_vm8 = vcmp.eq.s32.totalorder %v5785_v3, %v4470_v16  ;;  %v1389_v1 = vld [vmem:[%s4480_s18 + $0x8] sm:$0xff]  ;;  %v1390_v20 = vld [vmem:[%s4480_s18 + $0x10] sm:$0xff]  ;;  %v1420_v7 = vmul.f32 1.442695, %v1388_v0  ;;  %v1391_v47 = vld [vmem:[%s4480_s18 + $0x18] sm:$0xff] }
 0x1f7   : >> { %v1422_v6 = vmul.f32 1.442695, %v1389_v1  ;;  %v1424_v38 = vmul.f32 1.442695, %v1390_v20  ;;  %v1392_v46 = vld [vmem:[%s4480_s18 + $0x20] sm:$0xff]  ;;  %v1393_v36 = vld [vmem:[%s4480_s18 + $0x28] sm:$0xff] }
 0x1f8   : >> { %v4501_v41 = vsel %vm1646_vm7, %v1388_v0, 0.0  ;;  %v4506_v62 = vsel %vm1647_vm8, %v1389_v1, 0.0  ;;  %v4511_v57 = vsel %vm1648_vm9, %v1390_v20, 0.0  ;;  %3092 = vpow2.f32 %v1420_v7  ;;  %v1394_v17 = vld [vmem:[%s4480_s18 + $0x30] sm:$0xff]  ;;  %v1395_v3 = vld [vmem:[%s4480_s18 + $0x38] sm:$0xff]  ;;  %v1396_v1 = vld [vmem:[%s4480_s18 + $0x40] sm:$0xff] }
 0x1f9   : >> { %v1426_v50 = vmul.f32 1.442695, %v1391_v47  ;;  %v1428_v2 = vmul.f32 1.442695, %v1392_v46  ;;  %v1430_v0 = vmul.f32 1.442695, %v1393_v36  ;;  %3094 = vpow2.f32 %v1422_v6 }
 0x1fa   : >> { %v4521_v4 = vsel %vm1649_vm10, %v1391_v47, 0.0  ;;  %v4526_v20 = vsel %vm1650_vm11, %v1392_v46, 0.0  ;;  %v4531_v7 = vsel %vm1651_vm12, %v1393_v36, 0.0  ;;  %3096 = vpow2.f32 %v1424_v38  ;;  %v1397_v47 = vld [vmem:[%s4480_s18 + $0x48] sm:$0xff]  ;;  %v1398_v5 = vld [vmem:[%s4480_s18 + $0x50] sm:$0xff]  ;;  %v1399_v55 = vld [vmem:[%s4480_s18 + $0x58] sm:$0xff] }
 0x1fb   : >> { %v1432_v6 = vmul.f32 1.442695, %v1394_v17  ;;  %v1434_v40 = vmul.f32 1.442695, %v1395_v3  ;;  %v1436_v56 = vmul.f32 1.442695, %v1396_v1  ;;  %3098 = vpow2.f32 %v1426_v50 }
 0x1fc   : >> { %v4539_v46 = vsel %vm1652_vm13, %v1394_v17, 0.0  ;;  %v4544_v36 = vsel %vm1653_vm14, %v1395_v3, 0.0  ;;  %v4549_v38 = vsel %vm1654_vm15, %v1396_v1, 0.0  ;;  %3100 = vpow2.f32 %v1428_v2  ;;  %v1400_v17 = vld [vmem:[%s4480_s18 + $0x60] sm:$0xff]  ;;  %v1401_v10 = vld [vmem:[%s4480_s18 + $0x68] sm:$0xff]  ;;  %v1402_v48 = vld [vmem:[%s4480_s18 + $0x70] sm:$0xff] }
 0x1fd   : >> { %v1438_v50 = vmul.f32 1.442695, %v1397_v47  ;;  %v1440_v9 = vmul.f32 1.442695, %v1398_v5  ;;  %v1442_v8 = vmul.f32 1.442695, %v1399_v55  ;;  %3102 = vpow2.f32 %v1430_v0 }
 0x1fe   : >> { %v4557_v3 = vsel %vm1655_vm0, %v1397_v47, 0.0  ;;  %v5787_v14 = vld [vmem:[#allocation32_spill] sm:$0xff]  ;;  %v5788_v15 = vld [vmem:[#allocation33_spill] sm:$0xff]  ;;  %3104 = vpow2.f32 %v1432_v6  ;;  %v1444_v2 = vmul.f32 1.442695, %v1400_v17  ;;  %v1403_v12 = vld [vmem:[%s4480_s18 + $0x78] sm:$0xff]  ;;  %vm1662_vm7 = vcmp.eq.s32.totalorder %v5776_v26, %v4470_v16 }
 0x1ff   : >> { %vm1656_vm5 = vcmp.eq.s32.totalorder %v5787_v14, %v4470_v16  ;;  %vm1657_vm6 = vcmp.eq.s32.totalorder %v5788_v15, %v4470_v16  ;;  %v1446_v1 = vmul.f32 1.442695, %v1401_v10  ;;  %v1448_v0 = vmul.f32 1.442695, %v1402_v48  ;;  %v1404_v11 = vld [vmem:[%s4480_s18 + $0x80] sm:$0xff]  ;;  %v4566_v27 = vld [vmem:[%s4480_s18 + $0x88] sm:$0xff] }
 0x200   : >> { %3106 = vpow2.f32 %v1434_v40  ;;  %v4568_v47 = vsel %vm1656_vm5, %v1398_v5, 0.0  ;;  %v4570_v13 = vsel %vm1657_vm6, %v1399_v55, 0.0  ;;  %v5789_v21 = vld [vmem:[#allocation34_spill] sm:$0xff]  ;;  %v1450_v6 = vmul.f32 1.442695, %v1403_v12  ;;  %v4579_v33 = vld [vmem:[%s4480_s18 + $0x98] sm:$0xff] }
 0x201   : >> { %vm1658_vm1 = vcmp.eq.s32.totalorder %v5789_v21, %v4470_v16  ;;  %3108 = vpow2.f32 %v1436_v56  ;;  %v1452_v15 = vmul.f32 1.442695, %v1404_v11  ;;  %v1454_v14 = vmul.f32 1.442695, %v4566_v27  ;;  %v4576_v40 = vld [vmem:[%s4480_s18 + $0x90] sm:$0xff]  ;;  %v4582_v5 = vld [vmem:[%s4480_s18 + $0xa0] sm:$0xff] }
 0x202   : >> { %3110 = vpow2.f32 %v1438_v50  ;;  %v4584_v55 = vsel %vm1658_vm1, %v1400_v17, 0.0  ;;  %v5790_v35 = vld [vmem:[#allocation35_spill] sm:$0xff]  ;;  %v5791_v22 = vld [vmem:[#allocation36_spill] sm:$0xff]  ;;  %v1456_v56 = vmul.f32 1.442695, %v4576_v40  ;;  %v1516_v45 = vld [vmem:[#allocation3 + $0xb0] sm:$0xff]  ;;  %vm1663_vm8 = vcmp.eq.s32.totalorder %v4241_v60, %v4470_v16 }
 0x203   : >> { %vm1659_vm2 = vcmp.eq.s32.totalorder %v5790_v35, %v4470_v16  ;;  %vm1660_vm3 = vcmp.eq.s32.totalorder %v5791_v22, %v4470_v16  ;;  %3112 = vpow2.f32 %v1440_v9  ;;  %v4592_v50 = vmul.f32 1.442695, %v4579_v33  ;;  %v1517_v44 = vld [vmem:[#allocation3 + $0x1b0] sm:$0xff]  ;;  %v4598_v17 = vld [vmem:[%s4480_s18 + $0xa8] sm:$0xff]  ;;  %v4604_v22 = vld [vmem:[%s4480_s18 + $0xb8] sm:$0xff] }
 0x204   : >> { %v4595_v21 = vmul.f32 1.442695, %v4582_v5  ;;  %3114 = vpow2.f32 %v1442_v8  ;;  %v4601_v35 = vld [vmem:[%s4480_s18 + $0xb0] sm:$0xff]  ;;  %v4606_v9 = vsel %vm1659_vm2, %v1401_v10, 0.0  ;;  %v4608_v39 = vsel %vm1660_vm3, %v1402_v48, 0.0  ;;  %v5792_v24 = vld [vmem:[#allocation37_spill] sm:$0xff] }
 0x205   : >> { %vm1661_vm4 = vcmp.eq.s32.totalorder %v5792_v24, %v4470_v16  ;;  %3116 = vpow2.f32 %v1444_v2  ;;  %v4613_v51 = vmul.f32 1.442695, %v4598_v17  ;;  %v4616_v8 = vmul.f32 1.442695, %v4601_v35  ;;  %v1518_v34 = vld [vmem:[#allocation3 + $0xd8] sm:$0xff]  ;;  %v3093_v10 = vpop.eup %3092  ;;  %v4622_v48 = vld [vmem:[%s4480_s18 + $0xc0] sm:$0xff] }
 0x206   : >> { %v4619_v42 = vmul.f32 1.442695, %v4604_v22  ;;  %v1519_v37 = vld [vmem:[#allocation3 + $0x18] sm:$0xff]  ;;  %3118 = vpow2.f32 %v1446_v1  ;;  %5793 = vst [vmem:[#allocation86_spill] sm:$0xff] %v4622_v48  ;;  %v4625_v18 = vld [vmem:[%s4480_s18 + $0xc8] sm:$0xff]  ;;  %v4628_v2 = vld [vmem:[%s4480_s18 + $0xd0] sm:$0xff]  ;;  %v3095_v1 = vpop.eup %3094  ;;  %v1548_v54 = vadd.f32 %v3093_v10, %v1516_v45  ;;  %vm1664_vm9 = vcmp.eq.s32.totalorder %v4243_v52, %v4470_v16 }
 0x207   : >> { %5794 = vst [vmem:[#allocation87_spill] sm:$0xff] %v4625_v18  ;;  %5795 = vst [vmem:[#allocation88_spill] sm:$0xff] %v4628_v2  ;;  %v1520_v24 = vld [vmem:[#allocation3 + $0x50] sm:$0xff]  ;;  %v4630_v23 = vsel %vm1661_vm4, %v1403_v12, 0.0  ;;  %3120 = vpow2.f32 %v1448_v0  ;;  %v4638_v59 = vmul.f32 1.442695, %v4622_v48  ;;  %v3097_v58 = vpop.eup %3096  ;;  %v1549_v43 = vadd.f32 %v3095_v1, %v1517_v44 }
 0x208   : >> { %1484 = vst [vmem:[%s4480_s18] sm:$0xff] %v3093_v10  ;;  %v4641_v49 = vmul.f32 1.442695, %v4625_v18  ;;  %v4644_v63 = vmul.f32 1.442695, %v4628_v2  ;;  %v1521_v12 = vld [vmem:[#allocation3 + $0x168] sm:$0xff]  ;;  %1485 = vst [vmem:[%s4480_s18 + $0x8] sm:$0xff] %v3095_v1  ;;  %3122 = vpow2.f32 %v1450_v6  ;;  %v3099_v18 = vpop.eup %3098  ;;  %vm1665_vm10 = vcmp.eq.s32.totalorder %v4245_v28, %v4470_v16 }
 0x209   : >> { %v4648_v25 = vld [vmem:[%s4480_s18 + $0xd8] sm:$0xff]  ;;  %v4651_v61 = vld [vmem:[%s4480_s18 + $0xe0] sm:$0xff]  ;;  %v4654_v0 = vld [vmem:[%s4480_s18 + $0xe8] sm:$0xff]  ;;  %v4659_v2 = vsel %vm1662_vm7, %v1404_v11, 0.0  ;;  %1486 = vst [vmem:[%s4480_s18 + $0x10] sm:$0xff] %v3097_v58  ;;  %3124 = vpow2.f32 %v1452_v15  ;;  %v3101_v45 = vpop.eup %3100  ;;  %v1550_v15 = vadd.f32 %v3097_v58, %v1518_v34  ;;  %v1551_v10 = vadd.f32 %v3099_v18, %v1519_v37 }
 0x20a   : >> { %5796 = vst [vmem:[#allocation89_spill] sm:$0xff] %v4651_v61  ;;  %5797 = vst [vmem:[#allocation90_spill] sm:$0xff] %v4654_v0  ;;  %v4663_v6 = vmul.f32 1.442695, %v4648_v25  ;;  %v4666_v19 = vmul.f32 1.442695, %v4651_v61  ;;  %3126 = vpow2.f32 %v1454_v14  ;;  %vm1666_vm11 = vcmp.eq.s32.totalorder %v4247_v29, %v4470_v16 }
 0x20b   : >> { %v4669_v48 = vmul.f32 1.442695, %v4654_v0  ;;  %1487 = vst [vmem:[%s4480_s18 + $0x18] sm:$0xff] %v3099_v18  ;;  %v4673_v44 = vld [vmem:[%s4480_s18 + $0xf0] sm:$0xff]  ;;  %v4676_v11 = vld [vmem:[%s4480_s18 + $0xf8] sm:$0xff]  ;;  %1580 = vst [vmem:[#allocation3 + $0xb0] sm:$0xff] %v1548_v54  ;;  %v3103_v0 = vpop.eup %3102  ;;  %3128 = vpow2.f32 %v1456_v56  ;;  %vm1667_vm12 = vcmp.eq.s32.totalorder %v4249_v30, %v4470_v16  ;;  %vm1668_vm13 = vcmp.eq.s32.totalorder %v4251_v31, %v4470_v16 }
 0x20c   : >> { %1581 = vst [vmem:[#allocation3 + $0x1b0] sm:$0xff] %v1549_v43  ;;  %v1522_v1 = vld [vmem:[#allocation3 + $0x130] sm:$0xff]  ;;  %v4682_v26 = vsel %vm1663_vm8, %v4566_v27, 0.0  ;;  %1488 = vst [vmem:[%s4480_s18 + $0x20] sm:$0xff] %v3101_v45  ;;  %v4686_v14 = vmul.f32 1.442695, %v4673_v44  ;;  %v1552_v43 = vadd.f32 %v3101_v45, %v1520_v24  ;;  %v3105_v58 = vpop.eup %3104  ;;  %3130 = vpow2.f32 %v4592_v50 }
 0x20d   : >> { %v4689_v61 = vmul.f32 1.442695, %v4676_v11  ;;  %v1523_v54 = vld [vmem:[#allocation3 + $0x48] sm:$0xff]  ;;  %1489 = vst [vmem:[%s4480_s18 + $0x28] sm:$0xff] %v3103_v0  ;;  %1582 = vst [vmem:[#allocation3 + $0xd8] sm:$0xff] %v1550_v15  ;;  %v1553_v18 = vadd.f32 %v3103_v0, %v1521_v12  ;;  %v1524_v37 = vld [vmem:[#allocation3 + $0x180] sm:$0xff]  ;;  %v3107_v34 = vpop.eup %3106  ;;  %3132 = vpow2.f32 %v4595_v21  ;;  %v1554_v24 = vadd.f32 %v3105_v58, %v1522_v1 }
 0x20e   : >> { %1583 = vst [vmem:[#allocation3 + $0x18] sm:$0xff] %v1551_v10  ;;  %1490 = vst [vmem:[%s4480_s18 + $0x30] sm:$0xff] %v3105_v58  ;;  %v1525_v27 = vld [vmem:[#allocation3 + $0x110] sm:$0xff]  ;;  %v4700_v56 = vsel %vm1664_vm9, %v4576_v40, 0.0  ;;  %v4703_v50 = vsel %vm1665_vm10, %v4579_v33, 0.0  ;;  %v3109_v12 = vpop.eup %3108  ;;  %3134 = vpow2.f32 %v4613_v51  ;;  %v1555_v0 = vadd.f32 %v3107_v34, %v1523_v54  ;;  %v1526_v45 = vld [vmem:[#allocation3 + $0x118] sm:$0xff] }
 0x20f   : >> { %1584 = vst [vmem:[#allocation3 + $0x50] sm:$0xff] %v1552_v43  ;;  %1491 = vst [vmem:[%s4480_s18 + $0x38] sm:$0xff] %v3107_v34  ;;  %v3111_v21 = vpop.eup %3110  ;;  %3136 = vpow2.f32 %v4616_v8  ;;  %v1556_v33 = vadd.f32 %v3109_v12, %v1524_v37  ;;  %v1527_v40 = vld [vmem:[#allocation3 + $0x98] sm:$0xff]  ;;  %v4714_v15 = vsel %vm1666_vm11, %v4582_v5, 0.0  ;;  %v4717_v51 = vsel %vm1667_vm12, %v4598_v17, 0.0  ;;  %v1528_v43 = vld [vmem:[#allocation3 + $0x120] sm:$0xff] }
 0x210   : >> { %1585 = vst [vmem:[#allocation3 + $0x168] sm:$0xff] %v1553_v18  ;;  %1492 = vst [vmem:[%s4480_s18 + $0x40] sm:$0xff] %v3109_v12  ;;  %v3113_v10 = vpop.eup %3112  ;;  %3138 = vpow2.f32 %v4619_v42  ;;  %v1557_v1 = vadd.f32 %v3111_v21, %v1525_v27  ;;  %v1529_v54 = vld [vmem:[#allocation3 + $0x150] sm:$0xff]  ;;  %vm1669_vm14 = vcmp.eq.s32.totalorder %v4253_v53, %v4470_v16  ;;  %v1530_v8 = vld [vmem:[#allocation3 + $0x108] sm:$0xff]  ;;  %v4728_v18 = vsel %vm1668_vm13, %v4601_v35, 0.0 }
 0x211   : >> { %1586 = vst [vmem:[#allocation3 + $0x130] sm:$0xff] %v1554_v24  ;;  %1493 = vst [vmem:[%s4480_s18 + $0x48] sm:$0xff] %v3111_v21  ;;  %v3115_v5 = vpop.eup %3114  ;;  %3140 = vpow2.f32 %v4638_v59  ;;  %v1558_v17 = vadd.f32 %v3113_v10, %v1526_v45  ;;  %v1531_v58 = vld [vmem:[#allocation3 + $0x60] sm:$0xff]  ;;  %v1613_v42 = vld [vmem:[#allocation3 + $0x148] sm:$0xff]  ;;  %v4731_v37 = vsel %vm1669_vm14, %v4604_v22, 0.0  ;;  %vm1670_vm15 = vcmp.eq.s32.totalorder %v4255_v32, %v4470_v16 }
 0x212   : >> { %1587 = vst [vmem:[#allocation3 + $0x48] sm:$0xff] %v1555_v0  ;;  %1494 = vst [vmem:[%s4480_s18 + $0x50] sm:$0xff] %v3113_v10  ;;  %v3117_v34 = vpop.eup %3116  ;;  %3142 = vpow2.f32 %v4641_v49  ;;  %v1559_v24 = vadd.f32 %v3115_v5, %v1527_v40  ;;  %v1532_v27 = vld [vmem:[#allocation3 + $0xe0] sm:$0xff]  ;;  %v1710_v59 = vadd.f32 %v4501_v41, %v1613_v42  ;;  %v1614_v12 = vld [vmem:[#allocation3 + $0x1d0] sm:$0xff] }
 0x213   : >> { %1588 = vst [vmem:[#allocation3 + $0x180] sm:$0xff] %v1556_v33  ;;  %1495 = vst [vmem:[%s4480_s18 + $0x58] sm:$0xff] %v3115_v5  ;;  %v1615_v0 = vld [vmem:[#allocation3 + $0x100] sm:$0xff]  ;;  %v1616_v45 = vld [vmem:[#allocation3 + $0xc8] sm:$0xff]  ;;  %v3119_v35 = vpop.eup %3118  ;;  %3144 = vpow2.f32 %v4644_v63  ;;  %v1560_v22 = vadd.f32 %v3117_v34, %v1528_v43  ;;  %v1711_v49 = vadd.f32 %v4506_v62, %v1614_v12 }
 0x214   : >> { %1589 = vst [vmem:[#allocation3 + $0x110] sm:$0xff] %v1557_v1  ;;  %1496 = vst [vmem:[%s4480_s18 + $0x60] sm:$0xff] %v3117_v34  ;;  %v1533_v21 = vld [vmem:[#allocation3 + $0x188] sm:$0xff]  ;;  %v1712_v33 = vadd.f32 %v4511_v57, %v1615_v0  ;;  %v1617_v40 = vld [vmem:[#allocation3 + $0x40] sm:$0xff]  ;;  %v3121_v1 = vpop.eup %3120  ;;  %3146 = vpow2.f32 %v4663_v6  ;;  %v1561_v5 = vadd.f32 %v3119_v35, %v1529_v54  ;;  %v1713_v63 = vadd.f32 %v4521_v4, %v1616_v45 }
 0x215   : >> { %1590 = vst [vmem:[#allocation3 + $0x118] sm:$0xff] %v1558_v17  ;;  %v1618_v41 = vld [vmem:[#allocation3 + $0x1f8] sm:$0xff]  ;;  %v1619_v10 = vld [vmem:[#allocation3 + $0x20] sm:$0xff]  ;;  %1497 = vst [vmem:[%s4480_s18 + $0x68] sm:$0xff] %v3119_v35  ;;  %v1714_v43 = vadd.f32 %v4526_v20, %v1617_v40  ;;  %v3123_v34 = vpop.eup %3122  ;;  %3148 = vpow2.f32 %v4666_v19  ;;  %v1562_v12 = vadd.f32 %v3121_v1, %v1530_v8 }
 0x216   : >> { %1591 = vst [vmem:[#allocation3 + $0x98] sm:$0xff] %v1559_v24  ;;  %v1534_v42 = vld [vmem:[#allocation3 + $0x138] sm:$0xff]  ;;  %1742 = vst [vmem:[#allocation3 + $0x148] sm:$0xff] %v1710_v59  ;;  %v1620_v17 = vld [vmem:[#allocation3 + $0x128] sm:$0xff]  ;;  %v1715_v6 = vadd.f32 %v4531_v7, %v1618_v41  ;;  %v1716_v54 = vadd.f32 %v4539_v46, %v1619_v10  ;;  %v3125_v59 = vpop.eup %3124  ;;  %3150 = vpow2.f32 %v4669_v48  ;;  %v1563_v45 = vadd.f32 %v3123_v34, %v1531_v58 }
 0x217   : >> { %v1621_v62 = vld [vmem:[#allocation3 + $0x1a0] sm:$0xff]  ;;  %v1622_v57 = vld [vmem:[#allocation3 + $0x1f0] sm:$0xff]  ;;  %1498 = vst [vmem:[%s4480_s18 + $0x70] sm:$0xff] %v3121_v1  ;;  %1592 = vst [vmem:[#allocation3 + $0x120] sm:$0xff] %v1560_v22  ;;  %v1717_v8 = vadd.f32 %v4544_v36, %v1620_v17  ;;  %3152 = vpow2.f32 %v4686_v14 }
 0x218   : >> { %v1535_v0 = vld [vmem:[#allocation3 + $0x140] sm:$0xff]  ;;  %1743 = vst [vmem:[#allocation3 + $0x1d0] sm:$0xff] %v1711_v49  ;;  %1744 = vst [vmem:[#allocation3 + $0x100] sm:$0xff] %v1712_v33  ;;  %v1623_v4 = vld [vmem:[#allocation3 + $0xe8] sm:$0xff]  ;;  %v1718_v35 = vadd.f32 %v4549_v38, %v1621_v62  ;;  %v3127_v49 = vpop.eup %3126  ;;  %v1564_v33 = vadd.f32 %v3125_v59, %v1532_v27  ;;  %v1719_v48 = vadd.f32 %v4557_v3, %v1622_v57  ;;  %3154 = vpow2.f32 %v4689_v61 }
 0x219   : >> { %v1624_v24 = vld [vmem:[#allocation3 + $0x78] sm:$0xff]  ;;  %v1625_v20 = vld [vmem:[#allocation3 + $0x70] sm:$0xff]  ;;  %1499 = vst [vmem:[%s4480_s18 + $0x78] sm:$0xff] %v3123_v34  ;;  %1593 = vst [vmem:[#allocation3 + $0x150] sm:$0xff] %v1561_v5  ;;  %v1720_v58 = vadd.f32 %v4568_v47, %v1623_v4  ;;  %v3129_v41 = vpop.eup %3128  ;;  %v1565_v10 = vadd.f32 %v3127_v49, %v1533_v21 }
 0x21a   : >> { %v1536_v19 = vld [vmem:[#allocation3 + $0x80] sm:$0xff]  ;;  %1745 = vst [vmem:[#allocation3 + $0xc8] sm:$0xff] %v1713_v63  ;;  %1746 = vst [vmem:[#allocation3 + $0x40] sm:$0xff] %v1714_v43  ;;  %v1626_v7 = vld [vmem:[#allocation3 + $0x90] sm:$0xff]  ;;  %v1721_v14 = vadd.f32 %v4570_v13, %v1624_v24  ;;  %v1722_v27 = vadd.f32 %v4584_v55, %v1625_v20  ;;  %v3131_v5 = vpop.eup %3130  ;;  %v1566_v63 = vadd.f32 %v3129_v41, %v1534_v42 }
 0x21b   : >> { %v1627_v46 = vld [vmem:[#allocation3 + $0x1d8] sm:$0xff]  ;;  %v1628_v22 = vld [vmem:[#allocation3 + $0xd0] sm:$0xff]  ;;  %1500 = vst [vmem:[%s4480_s18 + $0x80] sm:$0xff] %v3125_v59  ;;  %1594 = vst [vmem:[#allocation3 + $0x108] sm:$0xff] %v1562_v12  ;;  %v1723_v61 = vadd.f32 %v4606_v9, %v1626_v7  ;;  %v3133_v62 = vpop.eup %3132  ;;  %v1567_v57 = vadd.f32 %v3131_v5, %v1535_v0 }
 0x21c   : >> { %1747 = vst [vmem:[#allocation3 + $0x1f8] sm:$0xff] %v1715_v6  ;;  %1748 = vst [vmem:[#allocation3 + $0x20] sm:$0xff] %v1716_v54  ;;  %v1629_v40 = vld [vmem:[#allocation3 + $0xb8] sm:$0xff]  ;;  %v1630_v36 = vld [vmem:[#allocation3 + $0x88] sm:$0xff]  ;;  %v1724_v21 = vadd.f32 %v4608_v39, %v1627_v46  ;;  %v1725_v13 = vadd.f32 %v4630_v23, %v1628_v22  ;;  %v3135_v6 = vpop.eup %3134  ;;  %v1568_v23 = vadd.f32 %v3133_v62, %v1536_v19 }
 0x21d   : >> { %v1631_v38 = vld [vmem:[#allocation3 + $0xa8] sm:$0xff]  ;;  %1501 = vst [vmem:[%s4480_s18 + $0x88] sm:$0xff] %v3127_v49  ;;  %1595 = vst [vmem:[#allocation3 + $0x60] sm:$0xff] %v1563_v45  ;;  %v1633_v3 = vld [vmem:[#allocation3 + $0x170] sm:$0xff]  ;;  %v1726_v42 = vadd.f32 %v4659_v2, %v1629_v40  ;;  %v1727_v12 = vadd.f32 %v4682_v26, %v1630_v36  ;;  %v3137_v24 = vpop.eup %3136 }
 0x21e   : >> { %1749 = vst [vmem:[#allocation3 + $0x128] sm:$0xff] %v1717_v8  ;;  %1750 = vst [vmem:[#allocation3 + $0x1a0] sm:$0xff] %v1718_v35  ;;  %v1632_v1 = vld [vmem:[#allocation3 + $0x1c8] sm:$0xff]  ;;  %v1634_v47 = vld [vmem:[#allocation3 + $0x178] sm:$0xff]  ;;  %v1728_v9 = vadd.f32 %v4700_v56, %v1631_v38  ;;  %v1730_v4 = vadd.f32 %v4714_v15, %v1633_v3  ;;  %v3139_v19 = vpop.eup %3138 }
 0x21f   : >> { %1502 = vst [vmem:[%s4480_s18 + $0x90] sm:$0xff] %v3129_v41  ;;  %1596 = vst [vmem:[#allocation3 + $0xe0] sm:$0xff] %v1564_v33  ;;  %v1537_v43 = vld [vmem:[#allocation3 + $0x1a8] sm:$0xff]  ;;  %v1636_v55 = vld [vmem:[#allocation3 + $0x190] sm:$0xff]  ;;  %v1729_v0 = vadd.f32 %v4703_v50, %v1632_v1  ;;  %v1731_v2 = vadd.f32 %v4717_v51, %v1634_v47  ;;  %v3141_v22 = vpop.eup %3140 }
 0x220   : >> { %1751 = vst [vmem:[#allocation3 + $0x1f0] sm:$0xff] %v1719_v48  ;;  %1752 = vst [vmem:[#allocation3 + $0xe8] sm:$0xff] %v1720_v58  ;;  %v1635_v17 = vld [vmem:[#allocation3 + $0x68] sm:$0xff]  ;;  %v1538_v34 = vld [vmem:[#allocation3 + $0x1b8] sm:$0xff]  ;;  %v1569_v26 = vadd.f32 %v3135_v6, %v1537_v43  ;;  %v1733_v59 = vadd.f32 %v4731_v37, %v1636_v55  ;;  %v3143_v41 = vpop.eup %3142 }
 0x221   : >> { %1503 = vst [vmem:[%s4480_s18 + $0x98] sm:$0xff] %v3131_v5  ;;  %1597 = vst [vmem:[#allocation3 + $0x188] sm:$0xff] %v1565_v10  ;;  %v1637_v39 = vld [vmem:[#allocation3 + $0x198] sm:$0xff]  ;;  %v1539_v54 = vld [vmem:[#allocation3 + $0x28] sm:$0xff]  ;;  %v1732_v20 = vadd.f32 %v4728_v18, %v1635_v17  ;;  %v1570_v8 = vadd.f32 %v3137_v24, %v1538_v34 }
 0x222   : >> { %1753 = vst [vmem:[#allocation3 + $0x78] sm:$0xff] %v1721_v14  ;;  %1754 = vst [vmem:[#allocation3 + $0x70] sm:$0xff] %v1722_v27  ;;  %v1540_v56 = vld [vmem:[#allocation3 + $0x1e8] sm:$0xff]  ;;  %v5798_v45 = vld [vmem:[#allocation86_spill] sm:$0xff]  ;;  %v1571_v49 = vadd.f32 %v3139_v19, %v1539_v54 }
 0x223   : >> { %1504 = vst [vmem:[%s4480_s18 + $0xa0] sm:$0xff] %v3133_v62  ;;  %1598 = vst [vmem:[#allocation3 + $0x138] sm:$0xff] %v1566_v63  ;;  %v1702_v50 = vsel %vm1670_vm15, %v5798_v45, 0.0  ;;  %v1638_v15 = vld [vmem:[#allocation3 + $0x38] sm:$0xff]  ;;  %v1639_v51 = vld [vmem:[#allocation3 + $0xc0] sm:$0xff]  ;;  %v1572_v10 = vadd.f32 %v3141_v22, %v1540_v56  ;;  %v3145_v63 = vpop.eup %3144 }
 0x224   : >> { %1755 = vst [vmem:[#allocation3 + $0x90] sm:$0xff] %v1723_v61  ;;  %1756 = vst [vmem:[#allocation3 + $0x1d8] sm:$0xff] %v1724_v21  ;;  %v1541_v35 = vld [vmem:[#allocation3 + $0xf8] sm:$0xff]  ;;  %v1734_v18 = vadd.f32 %v1702_v50, %v1637_v39  ;;  %v5800_v7 = vld [vmem:[#allocation48_spill] sm:$0xff]  ;;  %v3147_v62 = vpop.eup %3146 }
 0x225   : >> { %1757 = vst [vmem:[#allocation3 + $0xd0] sm:$0xff] %v1725_v13  ;;  %1505 = vst [vmem:[%s4480_s18 + $0xa8] sm:$0xff] %v3135_v6  ;;  %v5799_v37 = vld [vmem:[#allocation47_spill] sm:$0xff]  ;;  %vm1672_vm5 = vcmp.eq.s32.totalorder %v5800_v7, %v4470_v16  ;;  %v1640_v46 = vld [vmem:[#allocation3 + $0x1c0] sm:$0xff]  ;;  %v1573_v43 = vadd.f32 %v3143_v41, %v1541_v35  ;;  %v3149_v6 = vpop.eup %3148 }
 0x226   : >> { %1599 = vst [vmem:[#allocation3 + $0x140] sm:$0xff] %v1567_v57  ;;  %1758 = vst [vmem:[#allocation3 + $0xb8] sm:$0xff] %v1726_v42  ;;  %vm1671_vm0 = vcmp.eq.s32.totalorder %v5799_v37, %v4470_v16  ;;  %v1542_v33 = vld [vmem:[#allocation3 + $0x160] sm:$0xff]  ;;  %v5801_v48 = vld [vmem:[#allocation87_spill] sm:$0xff] }
 0x227   : >> { %1759 = vst [vmem:[#allocation3 + $0x88] sm:$0xff] %v1727_v12  ;;  %1760 = vst [vmem:[#allocation3 + $0xa8] sm:$0xff] %v1728_v9  ;;  %v1703_v58 = vsel %vm1671_vm0, %v5801_v48, 0.0  ;;  %v5802_v40 = vld [vmem:[#allocation88_spill] sm:$0xff]  ;;  %v5803_v38 = vld [vmem:[#allocation49_spill] sm:$0xff] }
 0x228   : >> { %1506 = vst [vmem:[%s4480_s18 + $0xb0] sm:$0xff] %v3137_v24  ;;  %1600 = vst [vmem:[#allocation3 + $0x80] sm:$0xff] %v1568_v23  ;;  %v1704_v36 = vsel %vm1672_vm5, %v5802_v40, 0.0  ;;  %vm1673_vm6 = vcmp.eq.s32.totalorder %v5803_v38, %v4470_v16  ;;  %v1543_v14 = vld [vmem:[#allocation3 + $0x30] sm:$0xff]  ;;  %v1735_v27 = vadd.f32 %v1703_v58, %v1638_v15  ;;  %v1641_v47 = vld [vmem:[#allocation3 + $0x158] sm:$0xff] }
 0x229   : >> { %1761 = vst [vmem:[#allocation3 + $0x1c8] sm:$0xff] %v1729_v0  ;;  %1762 = vst [vmem:[#allocation3 + $0x170] sm:$0xff] %v1730_v4  ;;  %v1736_v1 = vadd.f32 %v1704_v36, %v1639_v51  ;;  %v1705_v3 = vsel %vm1673_vm6, %v4648_v25, 0.0  ;;  %v1642_v5 = vld [vmem:[#allocation3 + $0x10] sm:$0xff]  ;;  %v1544_v61 = vld [vmem:[#allocation3 + $0x1e0] sm:$0xff]  ;;  %v1574_v25 = vadd.f32 %v3145_v63, %v1542_v33  ;;  %v1575_v23 = vadd.f32 %v3147_v62, %v1543_v14 }
 0x22a   : >> { %1763 = vst [vmem:[#allocation3 + $0x178] sm:$0xff] %v1731_v2  ;;  %1507 = vst [vmem:[%s4480_s18 + $0xb8] sm:$0xff] %v3139_v19  ;;  %v1737_v21 = vadd.f32 %v1705_v3, %v1640_v46  ;;  %v5804_v13 = vld [vmem:[#allocation50_spill] sm:$0xff]  ;;  %v5805_v17 = vld [vmem:[#allocation51_spill] sm:$0xff]  ;;  %v1576_v56 = vadd.f32 %v3149_v6, %v1544_v61 }
 0x22b   : >> { %1601 = vst [vmem:[#allocation3 + $0x1a8] sm:$0xff] %v1569_v26  ;;  %1764 = vst [vmem:[#allocation3 + $0x68] sm:$0xff] %v1732_v20  ;;  %vm1674_vm1 = vcmp.eq.s32.totalorder %v5804_v13, %v4470_v16  ;;  %vm1675_vm2 = vcmp.eq.s32.totalorder %v5805_v17, %v4470_v16  ;;  %v1643_v55 = vld [vmem:[#allocation3 + $0x58] sm:$0xff]  ;;  %v1545_v57 = vld [vmem:[#allocation3] sm:$0xff]  ;;  %v3151_v26 = vpop.eup %3150 }
 0x22c   : >> { %1765 = vst [vmem:[#allocation3 + $0x190] sm:$0xff] %v1733_v59  ;;  %1508 = vst [vmem:[%s4480_s18 + $0xc0] sm:$0xff] %v3141_v22  ;;  %v5806_v34 = vld [vmem:[#allocation89_spill] sm:$0xff]  ;;  %v5807_v12 = vld [vmem:[#allocation90_spill] sm:$0xff]  ;;  %v3153_v50 = vpop.eup %3152  ;;  %v1577_v15 = vadd.f32 %v3151_v26, %v1545_v57 }
 0x22d   : >> { %1602 = vst [vmem:[#allocation3 + $0x1b8] sm:$0xff] %v1570_v8  ;;  %1766 = vst [vmem:[#allocation3 + $0x198] sm:$0xff] %v1734_v18  ;;  %v1706_v42 = vsel %vm1674_vm1, %v5806_v34, 0.0  ;;  %v1707_v9 = vsel %vm1675_vm2, %v5807_v12, 0.0  ;;  %v5808_v39 = vld [vmem:[#allocation52_spill] sm:$0xff]  ;;  %v1546_v54 = vld [vmem:[#allocation3 + $0xf0] sm:$0xff]  ;;  %v3155_v51 = vpop.eup %3154 }
 0x22e   : >> { %1509 = vst [vmem:[%s4480_s18 + $0xc8] sm:$0xff] %v3143_v41  ;;  %1603 = vst [vmem:[#allocation3 + $0x28] sm:$0xff] %v1571_v49  ;;  %vm1676_vm3 = vcmp.eq.s32.totalorder %v5808_v39, %v4470_v16  ;;  %v1738_v0 = vadd.f32 %v1706_v42, %v1641_v47  ;;  %v1739_v4 = vadd.f32 %v1707_v9, %v1642_v5  ;;  %v1644_v24 = vld [vmem:[#allocation3 + $0xa0] sm:$0xff]  ;;  %v1547_v20 = vld [vmem:[#allocation3 + $0x8] sm:$0xff] }
 0x22f   : >> { %1510 = vst [vmem:[%s4480_s18 + $0xd0] sm:$0xff] %v3145_v63  ;;  %1604 = vst [vmem:[#allocation3 + $0x1e8] sm:$0xff] %v1572_v10  ;;  %v1708_v2 = vsel %vm1676_vm3, %v4673_v44, 0.0  ;;  %v5809_v45 = vld [vmem:[#allocation53_spill] sm:$0xff]  ;;  %v1578_v19 = vadd.f32 %v3153_v50, %v1546_v54  ;;  %v1579_v35 = vadd.f32 %v3155_v51, %v1547_v20  ;;  %v4820_v18 = vld [vmem:[#allocation3 + $0x18] sm:$0xff] (%p1381_p1) }
 0x230   : >> { %1767 = vst [vmem:[#allocation3 + $0x38] sm:$0xff] %v1735_v27  ;;  %1768 = vst [vmem:[#allocation3 + $0xc0] sm:$0xff] %v1736_v1  ;;  %v1740_v59 = vadd.f32 %v1708_v2, %v1643_v55  ;;  %vm1677_vm4 = vcmp.eq.s32.totalorder %v5809_v45, %v4470_v16  ;;  %v4815_v16 = vld [vmem:[#allocation3 + $0x1b0] sm:$0xff] (%p1381_p1)  ;;  %v4826_v7 = vld [vmem:[#allocation3 + $0x168] sm:$0xff] (%p1381_p1) }
 0x231   : >> { %1511 = vst [vmem:[%s4480_s18 + $0xd8] sm:$0xff] %v3147_v62  ;;  %1605 = vst [vmem:[#allocation3 + $0xf8] sm:$0xff] %v1573_v43  ;;  %v1709_v44 = vsel %vm1677_vm4, %v4676_v11, 0.0  ;;  %v4817_v11 = vld [vmem:[#allocation3 + $0xd8] sm:$0xff] (%p1381_p1)  ;;  %3156 = vrcp.f32 (%p1381_p1), %v4815_v16  ;;  %v4823_v37 = vld [vmem:[#allocation3 + $0x50] sm:$0xff] (%p1381_p1) }
 0x232   : >> { %1769 = vst [vmem:[#allocation3 + $0x1c0] sm:$0xff] %v1737_v21  ;;  %1512 = vst [vmem:[%s4480_s18 + $0xe0] sm:$0xff] %v3149_v6  ;;  %v1741_v8 = vadd.f32 %v1709_v44, %v1644_v24  ;;  %3158 = vrcp.f32 (%p1381_p1), %v4817_v11  ;;  %v4829_v46 = vld [vmem:[#allocation3 + $0x130] sm:$0xff] (%p1381_p1)  ;;  %v5811_v49 = vld [vmem:[#allocation55_spill] sm:$0xff] (%p1381_p1) }
 0x233   : >> { %1606 = vst [vmem:[#allocation3 + $0x160] sm:$0xff] %v1574_v25  ;;  %1513 = vst [vmem:[%s4480_s18 + $0xe8] sm:$0xff] %v3151_v26  ;;  %3160 = vrcp.f32 (%p1381_p1), %v4820_v18  ;;  %v5810_v22 = vld [vmem:[#allocation54_spill] sm:$0xff] (%p1381_p1)  ;;  %v4834_v48 = vld [vmem:[#allocation3 + $0x48] sm:$0xff] (%p1381_p1) }
 0x234   : >> { %1607 = vst [vmem:[#allocation3 + $0x30] sm:$0xff] %v1575_v23  ;;  %1770 = vst [vmem:[#allocation3 + $0x158] sm:$0xff] %v1738_v0  ;;  %3162 = vrcp.f32 (%p1381_p1), %v4823_v37  ;;  %v2039_v33 = vadd.f32 (%p1381_p1), %v5811_v49, %v5810_v22  ;;  %v4837_v58 = vld [vmem:[#allocation3 + $0x180] sm:$0xff] (%p1381_p1)  ;;  %v4840_v40 = vld [vmem:[#allocation3 + $0x110] sm:$0xff] (%p1381_p1) }
 0x235   : >> { %1771 = vst [vmem:[#allocation3 + $0x10] sm:$0xff] %v1739_v4  ;;  %1514 = vst [vmem:[%s4480_s18 + $0xf0] sm:$0xff] %v3153_v50  ;;  %1383 = sbr.rel (!%p1381_p1) target bundleno = 498 (0x1f2), region = 132  ;;  %3164 = vrcp.f32 (%p1381_p1), %v4826_v7  ;;  %v4843_v36 = vld [vmem:[#allocation3 + $0x118] sm:$0xff] (%p1381_p1)  ;;  %v5812_v38 = vld [vmem:[#allocation56_spill] sm:$0xff] (%p1381_p1) }
 0x236   : >> { %1608 = vst [vmem:[#allocation3 + $0x1e0] sm:$0xff] %v1576_v56  ;;  %1772 = vst [vmem:[#allocation3 + $0x58] sm:$0xff] %v1740_v59  ;;  %3166 = vrcp.f32 (%p1381_p1), %v4829_v46  ;;  %v2040_v41 = vadd.f32 (%p1381_p1), %v5812_v38, %v2039_v33  ;;  %v4847_v10 = vld [vmem:[#allocation3 + $0x98] sm:$0xff] (%p1381_p1)  ;;  %v4850_v14 = vld [vmem:[#allocation3 + $0x120] sm:$0xff] (%p1381_p1) }
 0x237   : >> { %1515 = vst [vmem:[%s4480_s18 + $0xf8] sm:$0xff] %v3155_v51  ;;  %1609 = vst [vmem:[#allocation3] sm:$0xff] %v1577_v15  ;;  %3168 = vrcp.f32 (%p1381_p1), %v4834_v48  ;;  %v4853_v27 = vld [vmem:[#allocation3 + $0x150] sm:$0xff] (%p1381_p1)  ;;  %v4856_v1 = vld [vmem:[#allocation3 + $0x108] sm:$0xff] (%p1381_p1) }
 0x238   : >> { %1610 = vst [vmem:[#allocation3 + $0xf0] sm:$0xff] %v1578_v19  ;;  %1773 = vst [vmem:[#allocation3 + $0xa0] sm:$0xff] %v1741_v8  ;;  %3170 = vrcp.f32 (%p1381_p1), %v4837_v58  ;;  %v5813_v3 = vld [vmem:[#allocation57_spill] sm:$0xff] (%p1381_p1)  ;;  %v4860_v63 = vld [vmem:[#allocation3 + $0x60] sm:$0xff] (%p1381_p1) }
 0x239   : >> { %1611 = vst [vmem:[#allocation3 + $0x8] sm:$0xff] %v1579_v35  ;;  %3172 = vrcp.f32 (%p1381_p1), %v4840_v40  ;;  %v2041_v47 = vadd.f32 (%p1381_p1), %v5813_v3, %v2040_v41  ;;  %v4863_v61 = vld [vmem:[#allocation3 + $0xe0] sm:$0xff] (%p1381_p1)  ;;  %v4869_v17 = vld [vmem:[#allocation3 + $0x188] sm:$0xff] (%p1381_p1)  ;;  %v4875_v25 = vld [vmem:[#allocation3 + $0x138] sm:$0xff] (%p1381_p1) }
 0x23a   : > { %3174 = vrcp.f32 %v4843_v36  ;;  %v5817_v34 = vld [vmem:[#allocation58_spill] sm:$0xff]  ;;  %v4882_v9 = vld [vmem:[#allocation3 + $0x140] sm:$0xff]  ;;  %v5819_v54 = vld [vmem:[#allocation59_spill] sm:$0xff] }
 0x23b   : > { %3176 = vrcp.f32 %v4847_v10  ;;  %v2042_v42 = vadd.f32 %v5817_v34, %v2041_v47  ;;  %v4888_v23 = vld [vmem:[#allocation3 + $0x80] sm:$0xff]  ;;  %v4894_v2 = vld [vmem:[#allocation3 + $0x1a8] sm:$0xff]  ;;  %v4900_v20 = vld [vmem:[#allocation3 + $0x1b8] sm:$0xff] }
 0x23c   : > { %3178 = vrcp.f32 %v4850_v14  ;;  %v5821_v24 = vld [vmem:[#allocation60_spill] sm:$0xff]  ;;  %v5823_v59 = vld [vmem:[#allocation61_spill] sm:$0xff]  ;;  %v5825_v51 = vld [vmem:[#allocation62_spill] sm:$0xff] }
 0x23d   : > { %3180 = vrcp.f32 %v4853_v27  ;;  %v2043_v50 = vadd.f32 %v5819_v54, %v2042_v42  ;;  %v4907_v44 = vld [vmem:[#allocation3 + $0x28] sm:$0xff]  ;;  %v5827_v33 = vld [vmem:[#allocation63_spill] sm:$0xff]  ;;  %v4925_v42 = vld [vmem:[#allocation3 + $0x160] sm:$0xff] }
 0x23e   : > { %v3157_v5 = vpop.eup %3156  ;;  %3182 = vrcp.f32 %v4856_v1  ;;  %v4913_v35 = vld [vmem:[#allocation3 + $0x1e8] sm:$0xff]  ;;  %v5834_v32 = vld [vmem:[#allocation66_spill] sm:$0xff]  ;;  %v4938_v31 = vld [vmem:[#allocation3 + $0x1e0] sm:$0xff] }
 0x23f   : > { %v3159_v43 = vpop.eup %3158  ;;  %3184 = vrcp.f32 %v4860_v63  ;;  %v4867_v21 = vmul.f32 %v3157_v5, %v5811_v49  ;;  %v4919_v5 = vld [vmem:[#allocation3 + $0xf8] sm:$0xff]  ;;  %5836 = vst [vmem:[#allocation91_spill] sm:$0xff] %v4938_v31  ;;  %v4950_v52 = vld [vmem:[#allocation3 + $0xf0] sm:$0xff] }
 0x240   : > { %v3161_v13 = vpop.eup %3160  ;;  %3186 = vrcp.f32 %v4863_v61  ;;  %v4873_v55 = vmul.f32 %v3159_v43, %v5812_v38  ;;  %v5829_v43 = vld [vmem:[#allocation64_spill] sm:$0xff]  ;;  %v5837_v30 = vld [vmem:[#allocation67_spill] sm:$0xff]  ;;  %5842 = vst [vmem:[#allocation93_spill] sm:$0xff] %v4950_v52  ;;  %v5846_v60 = vld [vmem:[#allocation70_spill] sm:$0xff] }
 0x241   : > { %5814 = vst [vmem:[#allocation54_spill] sm:$0xff] %v4867_v21  ;;  %v3163_v62 = vpop.eup %3162  ;;  %3188 = vrcp.f32 %v4869_v17  ;;  %v4879_v57 = vmul.f32 %v3161_v13, %v5813_v3 }
 0x242   : > { %5815 = vst [vmem:[#allocation55_spill] sm:$0xff] %v4873_v55  ;;  %v3165_v12 = vpop.eup %3164  ;;  %3190 = vrcp.f32 %v4875_v25  ;;  %v4886_v39 = vmul.f32 %v3163_v62, %v5817_v34 }
 0x243   : > { %5816 = vst [vmem:[#allocation56_spill] sm:$0xff] %v4879_v57  ;;  %v3167_v6 = vpop.eup %3166  ;;  %3192 = vrcp.f32 %v4882_v9  ;;  %v4892_v0 = vmul.f32 %v3165_v12, %v5819_v54  ;;  %v5831_v12 = vld [vmem:[#allocation65_spill] sm:$0xff] }
 0x244   : > { %5818 = vst [vmem:[#allocation57_spill] sm:$0xff] %v4886_v39  ;;  %v3169_v4 = vpop.eup %3168  ;;  %3194 = vrcp.f32 %v4888_v23  ;;  %v4898_v26 = vmul.f32 %v3167_v6, %v5821_v24  ;;  %v5852_v39 = vld [vmem:[#allocation73_spill] sm:$0xff] }
 0x245   : > { %5820 = vst [vmem:[#allocation58_spill] sm:$0xff] %v4892_v0  ;;  %v3171_v56 = vpop.eup %3170  ;;  %3196 = vrcp.f32 %v4894_v2  ;;  %v4904_v45 = vmul.f32 %v3169_v4, %v5823_v59  ;;  %v2044_v4 = vadd.f32 %v5821_v24, %v2043_v50  ;;  %v5840_v50 = vld [vmem:[#allocation68_spill] sm:$0xff]  ;;  %v4967_v0 = vld [vmem:[#allocation3 + $0xb0] sm:$0xff] }
 0x246   : > { %5822 = vst [vmem:[#allocation59_spill] sm:$0xff] %v4898_v26  ;;  %v3173_v15 = vpop.eup %3172  ;;  %3198 = vrcp.f32 %v4900_v20  ;;  %v4911_v19 = vmul.f32 %v3171_v56, %v5825_v51 }
 0x247   : > { %5824 = vst [vmem:[#allocation60_spill] sm:$0xff] %v4904_v45  ;;  %v3175_v8 = vpop.eup %3174  ;;  %3200 = vrcp.f32 %v4907_v44  ;;  %v4917_v41 = vmul.f32 %v3173_v15, %v5827_v33  ;;  %v4932_v15 = vld [vmem:[#allocation3 + $0x30] sm:$0xff] }
 0x248   : > { %5826 = vst [vmem:[#allocation61_spill] sm:$0xff] %v4911_v19  ;;  %v3177_v47 = vpop.eup %3176  ;;  %3202 = vrcp.f32 %v4913_v35  ;;  %v4923_v13 = vmul.f32 %v3175_v8, %v5829_v43  ;;  %5833 = vst [vmem:[#allocation65_spill] sm:$0xff] %v4932_v15 }
 0x249   : > { %5828 = vst [vmem:[#allocation62_spill] sm:$0xff] %v4917_v41  ;;  %v3179_v62 = vpop.eup %3178  ;;  %3204 = vrcp.f32 %v4919_v5  ;;  %v4929_v6 = vmul.f32 %v3177_v47, %v5831_v12  ;;  %v2045_v41 = vadd.f32 %v5823_v59, %v2044_v4 }
 0x24a   : > { %5830 = vst [vmem:[#allocation63_spill] sm:$0xff] %v4923_v13  ;;  %v3181_v56 = vpop.eup %3180  ;;  %3206 = vrcp.f32 %v4925_v42  ;;  %v4936_v53 = vmul.f32 %v3179_v62, %v5834_v32  ;;  %v5843_v62 = vld [vmem:[#allocation69_spill] sm:$0xff] }
 0x24b   : > { %5832 = vst [vmem:[#allocation64_spill] sm:$0xff] %v4929_v6  ;;  %v3183_v8 = vpop.eup %3182  ;;  %3208 = vrcp.f32 %v4932_v15  ;;  %v4942_v29 = vmul.f32 %v3181_v56, %v5837_v30  ;;  %v4944_v6 = vld [vmem:[#allocation3] sm:$0xff]  ;;  %v2046_v55 = vadd.f32 %v5825_v51, %v2045_v41 }
 0x24c   : > { %5835 = vst [vmem:[#allocation66_spill] sm:$0xff] %v4936_v53  ;;  %v3185_v47 = vpop.eup %3184  ;;  %5839 = vst [vmem:[#allocation92_spill] sm:$0xff] %v4944_v6  ;;  %3210 = vrcp.f32 %v4938_v31  ;;  %v4948_v28 = vmul.f32 %v3183_v8, %v5840_v50 }
 0x24d   : > { %5838 = vst [vmem:[#allocation67_spill] sm:$0xff] %v4942_v29  ;;  %v3187_v13 = vpop.eup %3186  ;;  %3212 = vrcp.f32 %v4944_v6  ;;  %v4954_v53 = vmul.f32 %v3185_v47, %v5843_v62  ;;  %v4957_v29 = vld [vmem:[#allocation3 + $0x8] sm:$0xff]  ;;  %v5850_v47 = vld [vmem:[#allocation72_spill] sm:$0xff]  ;;  %v2047_v41 = vadd.f32 %v5827_v33, %v2046_v55 }
 0x24e   : > { %5841 = vst [vmem:[#allocation68_spill] sm:$0xff] %v4948_v28  ;;  %v3189_v56 = vpop.eup %3188  ;;  %5845 = vst [vmem:[#allocation94_spill] sm:$0xff] %v4957_v29  ;;  %3214 = vrcp.f32 %v4950_v52  ;;  %v4961_v19 = vmul.f32 %v3187_v13, %v5846_v60  ;;  %v5848_v28 = vld [vmem:[#allocation71_spill] sm:$0xff] }
 0x24f   : > { %5844 = vst [vmem:[#allocation69_spill] sm:$0xff] %v4954_v53  ;;  %v3191_v8 = vpop.eup %3190  ;;  %3216 = vrcp.f32 %v4957_v29  ;;  %v4965_v45 = vmul.f32 %v3189_v56, %v5848_v28  ;;  %v5856_v56 = vld [vmem:[#allocation75_spill] sm:$0xff]  ;;  %v2048_v55 = vadd.f32 %v5829_v43, %v2047_v41 }
 0x250   : > { %5847 = vst [vmem:[#allocation70_spill] sm:$0xff] %v4961_v19  ;;  %v3193_v26 = vpop.eup %3192  ;;  %v4970_v53 = vmul.f32 %v3191_v8, %v5850_v47  ;;  %v5854_v19 = vld [vmem:[#allocation74_spill] sm:$0xff]  ;;  %3218 = vlog2.f32 %v4967_v0  ;;  %v5858_v8 = vld [vmem:[#allocation76_spill] sm:$0xff] }
 0x251   : > { %5849 = vst [vmem:[#allocation71_spill] sm:$0xff] %v4965_v45  ;;  %v3195_v4 = vpop.eup %3194  ;;  %v4973_v57 = vmul.f32 %v3193_v26, %v5852_v39  ;;  %3220 = vlog2.f32 %v4815_v16  ;;  %v2049_v41 = vadd.f32 %v5831_v12, %v2048_v55 }
 0x252   : > { %5851 = vst [vmem:[#allocation72_spill] sm:$0xff] %v4970_v53  ;;  %v3197_v13 = vpop.eup %3196  ;;  %v4977_v21 = vmul.f32 %v3195_v4, %v5854_v19  ;;  %3222 = vlog2.f32 %v4817_v11 }
 0x253   : > { %5853 = vst [vmem:[#allocation73_spill] sm:$0xff] %v4973_v57  ;;  %v3199_v29 = vpop.eup %3198  ;;  %v4981_v45 = vmul.f32 %v3197_v13, %v5856_v56  ;;  %v5860_v57 = vld [vmem:[#allocation77_spill] sm:$0xff]  ;;  %3224 = vlog2.f32 %v4820_v18 }
 0x254   : > { %5855 = vst [vmem:[#allocation74_spill] sm:$0xff] %v4977_v21  ;;  %v3201_v52 = vpop.eup %3200  ;;  %v4985_v53 = vmul.f32 %v3199_v29, %v5858_v8  ;;  %v5862_v21 = vld [vmem:[#allocation78_spill] sm:$0xff]  ;;  %v5866_v29 = vld [vmem:[#allocation80_spill] sm:$0xff]  ;;  %3226 = vlog2.f32 %v4823_v37 }
 0x255   : > { %5857 = vst [vmem:[#allocation75_spill] sm:$0xff] %v4981_v45  ;;  %v3203_v26 = vpop.eup %3202  ;;  %v4988_v6 = vmul.f32 %v3201_v52, %v5860_v57  ;;  %v5864_v45 = vld [vmem:[#allocation79_spill] sm:$0xff]  ;;  %3228 = vlog2.f32 %v4826_v7 }
 0x256   : > { %5859 = vst [vmem:[#allocation76_spill] sm:$0xff] %v4985_v53  ;;  %v3205_v4 = vpop.eup %3204  ;;  %v4993_v31 = vmul.f32 %v3203_v26, %v5862_v21  ;;  %v5870_v26 = vld [vmem:[#allocation82_spill] sm:$0xff]  ;;  %3230 = vlog2.f32 %v4829_v46 }
 0x257   : > { %5861 = vst [vmem:[#allocation95_spill] sm:$0xff] %v4988_v6  ;;  %v3207_v13 = vpop.eup %3206  ;;  %v4996_v15 = vmul.f32 %v3205_v4, %v5864_v45  ;;  %v5868_v6 = vld [vmem:[#allocation81_spill] sm:$0xff]  ;;  %3232 = vlog2.f32 %v4834_v48 }
 0x258   : > { %5863 = vst [vmem:[#allocation78_spill] sm:$0xff] %v4993_v31  ;;  %v3209_v16 = vpop.eup %3208  ;;  %v5000_v53 = vmul.f32 %v3207_v13, %v5866_v29  ;;  %v5874_v13 = vld [vmem:[#allocation84_spill] sm:$0xff]  ;;  %3234 = vlog2.f32 %v4837_v58 }
 0x259   : > { %5865 = vst [vmem:[#allocation96_spill] sm:$0xff] %v4996_v15  ;;  %v3211_v52 = vpop.eup %3210  ;;  %v5003_v57 = vmul.f32 %v3209_v16, %v5868_v6  ;;  %v5872_v15 = vld [vmem:[#allocation83_spill] sm:$0xff]  ;;  %v5876_v16 = vld [vmem:[#allocation85_spill] sm:$0xff]  ;;  %3236 = vlog2.f32 %v4840_v40 }
 0x25a   : > { %5867 = vst [vmem:[#allocation80_spill] sm:$0xff] %v5000_v53  ;;  %v3213_v11 = vpop.eup %3212  ;;  %v5008_v31 = vmul.f32 %v3211_v52, %v5870_v26  ;;  %3238 = vlog2.f32 %v4843_v36  ;;  %v1809_v36 = vld [vmem:[#allocation3 + $0x100] sm:$0xff] }
 0x25b   : > { %5869 = vst [vmem:[#allocation81_spill] sm:$0xff] %v5003_v57  ;;  %v3215_v4 = vpop.eup %3214  ;;  %v5011_v45 = vmul.f32 %v3213_v11, %v5872_v15  ;;  %v2050_v11 = vadd.f32 %v5834_v32, %v2049_v41  ;;  %3240 = vlog2.f32 %v4847_v10 }
 0x25c   : > { %5871 = vst [vmem:[#allocation82_spill] sm:$0xff] %v5008_v31  ;;  %v3217_v18 = vpop.eup %3216  ;;  %v5015_v53 = vmul.f32 %v3215_v4, %v5874_v13  ;;  %3242 = vlog2.f32 %v4850_v14  ;;  %v1811_v13 = vld [vmem:[#allocation3 + $0x40] sm:$0xff] }
 0x25d   : > { %5873 = vst [vmem:[#allocation83_spill] sm:$0xff] %v5011_v45  ;;  %v5018_v57 = vmul.f32 %v3217_v18, %v5876_v16  ;;  %v3219_v37 = vpop.eup %3218  ;;  %v2051_v18 = vadd.f32 %v5837_v30, %v2050_v11  ;;  %3244 = vlog2.f32 %v4853_v27 }
 0x25e   : > { %5875 = vst [vmem:[#allocation97_spill] sm:$0xff] %v5015_v53  ;;  %v3221_v52 = vpop.eup %3220  ;;  %v1872_v7 = vmul.f32 0.6931472, %v3219_v37  ;;  %v1807_v53 = vld [vmem:[#allocation3 + $0x148] sm:$0xff]  ;;  %v1808_v37 = vld [vmem:[#allocation3 + $0x1d0] sm:$0xff]  ;;  %3246 = vlog2.f32 %v4856_v1 }
 0x25f   : > { %5877 = vst [vmem:[#allocation98_spill] sm:$0xff] %v5018_v57  ;;  %v3223_v45 = vpop.eup %3222  ;;  %v1874_v31 = vmul.f32 0.6931472, %v3221_v52  ;;  %v2052_v52 = vadd.f32 %v5840_v50, %v2051_v18  ;;  %3248 = vlog2.f32 %v4860_v63 }
 0x260   : > { %v3225_v4 = vpop.eup %3224  ;;  %v1876_v57 = vmul.f32 0.6931472, %v3223_v45  ;;  %v1935_v48 = vmul.f32 %v5810_v22, %v1872_v7  ;;  %3250 = vlog2.f32 %v4863_v61 }
 0x261   : > { %v3227_v46 = vpop.eup %3226  ;;  %v1878_v55 = vmul.f32 0.6931472, %v3225_v4  ;;  %v1936_v41 = vmul.f32 %v5811_v49, %v1874_v31  ;;  %v1810_v49 = vld [vmem:[#allocation3 + $0xc8] sm:$0xff]  ;;  %v2053_v18 = vadd.f32 %v5843_v62, %v2052_v52  ;;  %3252 = vrcp.f32 %v4967_v0 }
 0x262   : > { %v3229_v58 = vpop.eup %3228  ;;  %v1880_v40 = vmul.f32 0.6931472, %v3227_v46  ;;  %v1937_v45 = vmul.f32 %v5812_v38, %v1876_v57  ;;  %v1967_v7 = vsub.f32 %v1935_v48, %v1807_v53  ;;  %3254 = vlog2.f32 %v4869_v17 }
 0x263   : > { %v3231_v11 = vpop.eup %3230  ;;  %v1882_v4 = vmul.f32 0.6931472, %v3229_v58  ;;  %v1938_v10 = vmul.f32 %v5813_v3, %v1878_v55  ;;  %v1968_v16 = vsub.f32 %v1936_v41, %v1808_v37  ;;  %v1812_v41 = vld [vmem:[#allocation3 + $0x1f8] sm:$0xff]  ;;  %v2054_v1 = vadd.f32 %v5846_v60, %v2053_v18 }
 0x264   : > { %v3233_v31 = vpop.eup %3232  ;;  %v1884_v46 = vmul.f32 0.6931472, %v3231_v11  ;;  %v1939_v38 = vmul.f32 %v5817_v34, %v1880_v40  ;;  %v1969_v14 = vsub.f32 %v1937_v45, %v1809_v36  ;;  %v1813_v40 = vld [vmem:[#allocation3 + $0x20] sm:$0xff]  ;;  %v1814_v36 = vld [vmem:[#allocation3 + $0x128] sm:$0xff]  ;;  %3256 = vlog2.f32 %v4875_v25 }
 0x265   : > { %v3235_v57 = vpop.eup %3234  ;;  %v1886_v27 = vmul.f32 0.6931472, %v3233_v31  ;;  %v1940_v53 = vmul.f32 %v5819_v54, %v1882_v4  ;;  %v1970_v3 = vsub.f32 %v1938_v10, %v1810_v49  ;;  %v1999_v55 = vadd.f32 %v1968_v16, %v1967_v7  ;;  %v1815_v31 = vld [vmem:[#allocation3 + $0x1a0] sm:$0xff] }
 0x266   : > { %v3237_v48 = vpop.eup %3236  ;;  %v1888_v58 = vmul.f32 0.6931472, %v3235_v57  ;;  %v1941_v63 = vmul.f32 %v5821_v24, %v1884_v46  ;;  %v1971_v34 = vsub.f32 %v1939_v38, %v1811_v13  ;;  %v2055_v0 = vadd.f32 %v5848_v28, %v2054_v1  ;;  %v1816_v38 = vld [vmem:[#allocation3 + $0x1f0] sm:$0xff] }
 0x267   : > { %v2000_v37 = vadd.f32 %v1999_v55, %v1969_v14  ;;  %v3239_v52 = vpop.eup %3238  ;;  %v1890_v61 = vmul.f32 0.6931472, %v3237_v48  ;;  %v1942_v54 = vmul.f32 %v5823_v59, %v1886_v27  ;;  %v1972_v45 = vsub.f32 %v1940_v53, %v1812_v41  ;;  %v1817_v55 = vld [vmem:[#allocation3 + $0xe8] sm:$0xff] }
 0x268   : > { %v3241_v11 = vpop.eup %3240  ;;  %v1892_v4 = vmul.f32 0.6931472, %v3239_v52  ;;  %v1943_v24 = vmul.f32 %v5825_v51, %v1888_v58  ;;  %v1973_v13 = vsub.f32 %v1941_v63, %v1813_v40  ;;  %3258 = vlog2.f32 %v4882_v9  ;;  %v1818_v58 = vld [vmem:[#allocation3 + $0x78] sm:$0xff]  ;;  %v1819_v40 = vld [vmem:[#allocation3 + $0x70] sm:$0xff] }
 0x269   : > { %v2001_v16 = vadd.f32 %v2000_v37, %v1970_v3  ;;  %v3243_v7 = vpop.eup %3242  ;;  %v1894_v49 = vmul.f32 0.6931472, %v3241_v11  ;;  %v1944_v59 = vmul.f32 %v5827_v33, %v1890_v61  ;;  %v1974_v18 = vsub.f32 %v1942_v54, %v1814_v36 }
 0x26a   : > { %v3245_v17 = vpop.eup %3244  ;;  %3260 = vlog2.f32 %v4888_v23  ;;  %v2056_v25 = vadd.f32 %v5850_v47, %v2055_v0  ;;  %v1896_v57 = vmul.f32 0.6931472, %v3243_v7  ;;  %v1945_v51 = vmul.f32 %v5829_v43, %v1892_v4 }
 0x26b   : > { %v2002_v10 = vadd.f32 %v2001_v16, %v1971_v34  ;;  %v3247_v14 = vpop.eup %3246  ;;  %v1975_v27 = vsub.f32 %v1943_v24, %v1815_v31  ;;  %3262 = vlog2.f32 %v4894_v2  ;;  %v1898_v48 = vmul.f32 0.6931472, %v3245_v17  ;;  %v1820_v16 = vld [vmem:[#allocation3 + $0x90] sm:$0xff]  ;;  %v1821_v24 = vld [vmem:[#allocation3 + $0x1d8] sm:$0xff] }
 0x26c   : > { %v3249_v3 = vpop.eup %3248  ;;  %v1946_v33 = vmul.f32 %v5831_v12, %v1894_v49  ;;  %v1976_v41 = vsub.f32 %v1944_v59, %v1816_v38  ;;  %3264 = vlog2.f32 %v4900_v20  ;;  %v2057_v23 = vadd.f32 %v5852_v39, %v2056_v25  ;;  %v1822_v31 = vld [vmem:[#allocation3 + $0xd0] sm:$0xff]  ;;  %v5878_v38 = vld [vmem:[#allocation65_spill] sm:$0xff] }
 0x26d   : > { %v2003_v46 = vadd.f32 %v2002_v10, %v1972_v45  ;;  %v3251_v9 = vpop.eup %3250  ;;  %v1900_v34 = vmul.f32 0.6931472, %v3247_v14  ;;  %v1947_v43 = vmul.f32 %v5834_v32, %v1896_v57  ;;  %v1977_v37 = vsub.f32 %v1945_v51, %v1817_v55  ;;  %v1824_v51 = vld [vmem:[#allocation3 + $0x88] sm:$0xff] }
 0x26e   : > { %v3253_v63 = vpop.eup %3252  ;;  %3266 = vlog2.f32 %v4907_v44  ;;  %v1902_v61 = vmul.f32 0.6931472, %v3249_v3  ;;  %v1948_v54 = vmul.f32 %v5837_v30, %v1898_v48  ;;  %v1978_v45 = vsub.f32 %v1946_v33, %v1818_v58  ;;  %v1825_v48 = vld [vmem:[#allocation3 + $0xa8] sm:$0xff]  ;;  %v5880_v33 = vld [vmem:[#allocation92_spill] sm:$0xff] }
 0x26f   : > { %v2004_v53 = vadd.f32 %v2003_v46, %v1973_v13  ;;  %v5062_v2 = vmul.f32 %v3253_v63, %v5810_v22  ;;  %v3255_v12 = vpop.eup %3254  ;;  %3268 = vlog2.f32 %v4913_v35  ;;  %v2058_v11 = vadd.f32 %v5854_v19, %v2057_v23  ;;  %v1823_v46 = vld [vmem:[#allocation3 + $0xb8] sm:$0xff]  ;;  %v1826_v63 = vld [vmem:[#allocation3 + $0x1c8] sm:$0xff] }
 0x270   : > { %v1904_v36 = vmul.f32 0.6931472, %v3251_v9  ;;  %v1949_v0 = vmul.f32 %v5840_v50, %v1900_v34  ;;  %v1979_v4 = vsub.f32 %v1947_v43, %v1819_v40  ;;  %3270 = vlog2.f32 %v4919_v5  ;;  %v5881_v34 = vld [vmem:[#allocation93_spill] sm:$0xff]  ;;  %v5882_v43 = vld [vmem:[#allocation77_spill] sm:$0xff] }
 0x271   : > { %v2005_v1 = vadd.f32 %v2004_v53, %v1974_v18  ;;  %v3257_v32 = vpop.eup %3256  ;;  %v1906_v13 = vmul.f32 0.6931472, %v3255_v12  ;;  %v1950_v30 = vmul.f32 %v5843_v62, %v1902_v61  ;;  %v1980_v10 = vsub.f32 %v1948_v54, %v1820_v16  ;;  %v1827_v54 = vld [vmem:[#allocation3 + $0x170] sm:$0xff] }
 0x272   : > { %3272 = vlog2.f32 %v4925_v42  ;;  %v2059_v35 = vadd.f32 %v5856_v56, %v2058_v11  ;;  %v1908_v49 = vmul.f32 0.6931472, %v3257_v32  ;;  %v1951_v50 = vmul.f32 %v5846_v60, %v1904_v36  ;;  %v1828_v36 = vld [vmem:[#allocation3 + $0x178] sm:$0xff] }
 0x273   : > { %v2006_v52 = vadd.f32 %v2005_v1, %v1975_v27  ;;  %v1981_v59 = vsub.f32 %v1949_v0, %v1821_v24  ;;  %3274 = vlog2.f32 %v5878_v38  ;;  %v1952_v62 = vmul.f32 %v5848_v28, %v1906_v13  ;;  %v5879_v27 = vld [vmem:[#allocation91_spill] sm:$0xff]  ;;  %v1829_v13 = vld [vmem:[#allocation3 + $0x68] sm:$0xff] }
 0x274   : > { %v1982_v14 = vsub.f32 %v1950_v30, %v1822_v31  ;;  %3276 = vlog2.f32 %v5879_v27  ;;  %v2060_v42 = vadd.f32 %v5858_v8, %v2059_v35  ;;  %v1953_v60 = vmul.f32 %v5850_v47, %v1908_v49 }
 0x275   : > { %v2007_v20 = vadd.f32 %v2006_v52, %v1976_v41  ;;  %v3259_v22 = vpop.eup %3258  ;;  %v1983_v55 = vsub.f32 %v1951_v50, %v1823_v46  ;;  %3278 = vlog2.f32 %v5880_v33  ;;  %v1984_v58 = vsub.f32 %v1952_v62, %v1824_v51  ;;  %v1832_v51 = vld [vmem:[#allocation3 + $0x38] sm:$0xff] }
 0x276   : > { %v1910_v25 = vmul.f32 0.6931472, %v3259_v22  ;;  %3280 = vlog2.f32 %v5881_v34  ;;  %v1985_v12 = vsub.f32 %v1953_v60, %v1825_v48 }
 0x277   : > { %v2008_v44 = vadd.f32 %v2007_v20, %v1977_v37  ;;  %v3261_v17 = vpop.eup %3260  ;;  %v2061_v37 = vadd.f32 %v5882_v43, %v2060_v42 }
 0x278   : > { %v3263_v5 = vpop.eup %3262  ;;  %v1912_v3 = vmul.f32 0.6931472, %v3261_v17  ;;  %v1954_v28 = vmul.f32 %v5852_v39, %v1910_v25  ;;  %v1830_v17 = vld [vmem:[#allocation3 + $0x190] sm:$0xff] }
 0x279   : > { %v2009_v7 = vadd.f32 %v2008_v44, %v1978_v45  ;;  %v3265_v53 = vpop.eup %3264  ;;  %v1914_v1 = vmul.f32 0.6931472, %v3263_v5  ;;  %v5883_v45 = vld [vmem:[#allocation94_spill] sm:$0xff]  ;;  %v2062_v0 = vadd.f32 %v5862_v21, %v2061_v37  ;;  %v1831_v5 = vld [vmem:[#allocation3 + $0x198] sm:$0xff] }
 0x27a   : > { %v1916_v40 = vmul.f32 0.6931472, %v3265_v53  ;;  %v1955_v47 = vmul.f32 %v5854_v19, %v1912_v3  ;;  %3282 = vlog2.f32 %v5883_v45  ;;  %v1986_v11 = vsub.f32 %v1954_v28, %v1826_v63  ;;  %v1834_v28 = vld [vmem:[#allocation3 + $0x1c0] sm:$0xff]  ;;  %v1835_v37 = vld [vmem:[#allocation3 + $0x158] sm:$0xff] }
 0x27b   : > { %v2010_v18 = vadd.f32 %v2009_v7, %v1979_v4  ;;  %v3267_v41 = vpop.eup %3266  ;;  %v1956_v39 = vmul.f32 %v5856_v56, %v1914_v1  ;;  %v5884_v56 = vld [vmem:[#allocation79_spill] sm:$0xff] }
 0x27c   : > { %v3269_v52 = vpop.eup %3268  ;;  %v1918_v16 = vmul.f32 0.6931472, %v3267_v41  ;;  %v1957_v24 = vmul.f32 %v5858_v8, %v1916_v40  ;;  %v1987_v22 = vsub.f32 %v1955_v47, %v1827_v54  ;;  %v2063_v49 = vadd.f32 %v5884_v56, %v2062_v0  ;;  %v1838_v0 = vld [vmem:[#allocation3 + $0xa0] sm:$0xff] }
 0x27d   : > { %v2011_v57 = vadd.f32 %v2010_v18, %v1980_v10  ;;  %v3271_v20 = vpop.eup %3270  ;;  %v1920_v44 = vmul.f32 0.6931472, %v3269_v52  ;;  %v1988_v31 = vsub.f32 %v1956_v39, %v1828_v36  ;;  %v1837_v39 = vld [vmem:[#allocation3 + $0x58] sm:$0xff] }
 0x27e   : > { %v1922_v10 = vmul.f32 0.6931472, %v3271_v20  ;;  %v1958_v7 = vmul.f32 %v5882_v43, %v1918_v16  ;;  %v1989_v46 = vsub.f32 %v1957_v24, %v1829_v13  ;;  %v2064_v27 = vadd.f32 %v5866_v29, %v2063_v49 }
 0x27f   : > { %v2012_v9 = vadd.f32 %v2011_v57, %v1981_v59  ;;  %v3273_v4 = vpop.eup %3272  ;;  %v1959_v18 = vmul.f32 %v5862_v21, %v1920_v44 }
 0x280   : > { %v3275_v30 = vpop.eup %3274  ;;  %v1924_v59 = vmul.f32 0.6931472, %v3273_v4  ;;  %v1960_v62 = vmul.f32 %v5884_v56, %v1922_v10 }
 0x281   : > { %v2013_v23 = vadd.f32 %v2012_v9, %v1982_v14  ;;  %v3277_v50 = vpop.eup %3276  ;;  %v1926_v25 = vmul.f32 0.6931472, %v3275_v30  ;;  %v1990_v14 = vsub.f32 %v1958_v7, %v1830_v17  ;;  %v1991_v60 = vsub.f32 %v1959_v18, %v1831_v5  ;;  %v1833_v9 = vld [vmem:[#allocation3 + $0xc0] sm:$0xff] }
 0x282   : > { %v3279_v8 = vpop.eup %3278  ;;  %v1928_v53 = vmul.f32 0.6931472, %v3277_v50  ;;  %v1961_v3 = vmul.f32 %v5866_v29, %v1924_v59  ;;  %v1992_v41 = vsub.f32 %v1960_v62, %v1832_v51 }
 0x283   : > { %v2014_v61 = vadd.f32 %v2013_v23, %v1983_v55  ;;  %v3281_v42 = vpop.eup %3280  ;;  %v1930_v48 = vmul.f32 0.6931472, %v3279_v8  ;;  %v1962_v33 = vmul.f32 %v5868_v6, %v1926_v25 }
 0x284   : > { %v1932_v23 = vmul.f32 0.6931472, %v3281_v42  ;;  %v1963_v63 = vmul.f32 %v5870_v26, %v1928_v53  ;;  %v1993_v34 = vsub.f32 %v1961_v3, %v1833_v9 }
 0x285   : > { %v2015_v32 = vadd.f32 %v2014_v61, %v1984_v58  ;;  %v2065_v58 = vadd.f32 %v5868_v6, %v2064_v27  ;;  %v1964_v29 = vmul.f32 %v5872_v15, %v1930_v48  ;;  %v1994_v40 = vsub.f32 %v1962_v33, %v1834_v28  ;;  %v5885_v61 = vld [vmem:[#allocation84_spill] sm:$0xff]  ;;  %v5886_v6 = vld [vmem:[#allocation85_spill] sm:$0xff] }
 0x286   : > { %v1965_v54 = vmul.f32 %v5885_v61, %v1932_v23  ;;  %v1995_v45 = vsub.f32 %v1963_v63, %v1835_v37 }
 0x287   : > { %v2016_v19 = vadd.f32 %v2015_v32, %v1985_v12  ;;  %v3283_v21 = vpop.eup %3282  ;;  %v1836_v12 = vld [vmem:[#allocation3 + $0x10] sm:$0xff]  ;;  %v2066_v16 = vadd.f32 %v5870_v26, %v2065_v58  ;;  %v2111_v26 = vlaneseq }
 0x288   : > { %v1934_v52 = vmul.f32 0.6931472, %v3283_v21  ;;  %v1996_v32 = vsub.f32 %v1964_v29, %v1836_v12  ;;  %v1997_v4 = vsub.f32 %v1965_v54, %v1837_v39 }
 0x289   : > { %v2017_v35 = vadd.f32 %v2016_v19, %v1986_v11  ;;  %v2067_v24 = vadd.f32 %v5872_v15, %v2066_v16 }
 0x28a   : > { %v1966_v11 = vmul.f32 %v5886_v6, %v1934_v52 }
 0x28b   : > { %v2018_v38 = vadd.f32 %v2017_v35, %v1987_v22  ;;  %v2068_v30 = vadd.f32 %v5885_v61, %v2067_v24  ;;  %v5105_v35 = vand.u32 127, %v2111_v26 }
 0x28c   : > { %v1998_v22 = vsub.f32 %v1966_v11, %v1838_v0 }
 0x28d   : > { %v2019_v57 = vadd.f32 %v2018_v38, %v1988_v31  ;;  %v2069_v7 = vadd.f32 %v5886_v6, %v2068_v30  ;;  %v5103_v31 = vshrl.u32 %v2111_v26, 7 }
 0x28f   : > { %v2020_v55 = vadd.f32 %v2019_v57, %v1989_v46  ;;  %v5111_v57 = vmov 0.0  }
 0x291   : > { %v2021_v1 = vadd.f32 %v2020_v55, %v1990_v14 }
 0x293   : > { %v2022_v43 = vadd.f32 %v2021_v1, %v1991_v60 }
 0x295   : > { %v2023_v47 = vadd.f32 %v2022_v43, %v1992_v41 }
 0x297   : > { %v2024_v20 = vadd.f32 %v2023_v47, %v1993_v34 }
 0x299   : > { %v2025_v36 = vadd.f32 %v2024_v20, %v1994_v40 }
 0x29b   : > { %v2026_v44 = vadd.f32 %v2025_v36, %v1995_v45 }
 0x29d   : > { %v2027_v19 = vadd.f32 %v2026_v44, %v1996_v32 }
 0x29f   : > { %v2028_v13 = vadd.f32 %v2027_v19, %v1997_v4 }
 0x2a1   : > { %v2029_v10 = vadd.f32 %v2028_v13, %v1998_v22 }
 0x2a3   : > { %2030 = vadd.xlane.f32.xlu0 %v2029_v10 }
 0x2a7   : > { %2070 = vadd.xlane.f32.xlu0 %v2069_v7 }
 0x32c   : > { %v2031_v17 = vpop.xlane.xlu0 %2030 }
 0x32d   : > { %v2032_v56 = vrot.slane %v2031_v17, 4 }
 0x32f   : > { %v2033_v49 = vadd.f32 %v2032_v56, %v2031_v17 }
 0x330   : > { %v2071_v50 = vpop.xlane.xlu0 %2070 }
 0x331   : > { %v2034_v15 = vrot.slane %v2033_v49, 2  ;;  %v2072_v59 = vrot.slane %v2071_v50, 4 }
 0x333   : > { %v2073_v18 = vadd.f32 %v2072_v59, %v2071_v50  ;;  %v2035_v46 = vadd.f32 %v2034_v15, %v2033_v49 }
 0x335   : > { %v2074_v38 = vrot.slane %v2073_v18, 2  ;;  %v2036_v5 = vrot.slane %v2035_v46, 1 }
 0x337   : > { %v2075_v8 = vadd.f32 %v2074_v38, %v2073_v18  ;;  %v2037_v25 = vadd.f32 %v2036_v5, %v2035_v46 }
 0x339   : > { %2804 = vpush %v2037_v25  ;;  %v2076_v62 = vrot.slane %v2075_v8, 1 }
 0x33b   : > { %v2077_v14 = vadd.f32 %v2076_v62, %v2075_v8 }
 0x33d   : > { %2806 = vpush %v2077_v14 }
 0x36a   : > { %s5107_s14 = spop %2804 }
 0x36e   : > { %s5109_s2 = spop %2806 }
 0x36f LB: >> { %v5122_v51 = vstv %s3510_s4  ;;  %v5887_v27 = vld [vmem:[#allocation22_spill] sm:$0xff]  ;;  %v5888_v42 = vld [vmem:[#allocation23_spill] sm:$0xff]  ;;  %v5889_v53 = vld [vmem:[#allocation24_spill] sm:$0xff]  ;;  %v3521_v3 = vmov 0.0   ;;  %s2801_s0 = sshll.u32 %s3510_s4, 8  ;;  %s2120_s4 = sadd.s32 1, %s3510_s4   ;;  %s3510_s4 = sphi %s5113_s4, %s2120_s4   ;;  %v3506_v57 = vphi %v5111_v57, %v5950_v57  }
 0x370   : >> { %vm2190_vm7 = vcmp.eq.s32.totalorder %v5887_v27, %v5122_v51  ;;  %vm2191_vm8 = vcmp.eq.s32.totalorder %v5888_v42, %v5122_v51  ;;  %vm2192_vm9 = vcmp.eq.s32.totalorder %v5889_v53, %v5122_v51  ;;  %v5890_v9 = vld [vmem:[#allocation25_spill] sm:$0xff]  ;;  %v5891_v48 = vld [vmem:[#allocation26_spill] sm:$0xff]  ;;  %v5892_v1 = vld [vmem:[#allocation27_spill] sm:$0xff]  ;;  %s5148_s5 = scalar_lea.vmem [#allocation2], %s2801_s0  ;;  %p2117_p12 = scmp.ge.s32.totalorder %s2120_s4, 3  }
 0x371   : >> { %v2760_v60 = vsel %vm2190_vm7, 1.0, %v3521_v3  ;;  %v2761_v55 = vsel %vm2191_vm8, 1.0, %v3521_v3  ;;  %vm2193_vm10 = vcmp.eq.s32.totalorder %v5890_v9, %v5122_v51  ;;  %v2762_v21 = vsel %vm2192_vm9, 1.0, %v3521_v3  ;;  %v5893_v23 = vld [vmem:[#allocation28_spill] sm:$0xff]  ;;  %v5894_v43 = vld [vmem:[#allocation29_spill] sm:$0xff]  ;;  %v5895_v47 = vld [vmem:[#allocation30_spill] sm:$0xff] }
 0x372   : >> { %vm2194_vm11 = vcmp.eq.s32.totalorder %v5891_v48, %v5122_v51  ;;  %v2430_v33 = vadd.f32 %v2761_v55, %v2760_v60  ;;  %v2763_v41 = vsel %vm2193_vm10, 1.0, %v3521_v3  ;;  %vm2195_vm12 = vcmp.eq.s32.totalorder %v5892_v1, %v5122_v51  ;;  %v2125_v29 = vld [vmem:[%s5148_s5] sm:$0xff]  ;;  %v2126_v40 = vld [vmem:[%s5148_s5 + $0x8] sm:$0xff]  ;;  %v2127_v54 = vld [vmem:[%s5148_s5 + $0x10] sm:$0xff]  ;;  %s5951_s13 = sld [smem:[#allocation17_spill]] (%p2117_p12)  ;;  %s2509_s17 = sshll.u32 (%p2117_p12), %s3882_s1, 4  ;;  %s5499_s17 = int_to_ptr.vmem [resolvable:$true] %s2509_s17 }
 0x373   : >> { %v2764_v58 = vsel %vm2194_vm11, 1.0, %v3521_v3  ;;  %vm2196_vm13 = vcmp.eq.s32.totalorder %v5893_v23, %v5122_v51  ;;  %v2765_v34 = vsel %vm2195_vm12, 1.0, %v3521_v3  ;;  %vm2197_vm14 = vcmp.eq.s32.totalorder %v5894_v43, %v5122_v51  ;;  %v5896_v45 = vld [vmem:[#allocation31_spill] sm:$0xff]  ;;  %v5897_v39 = vld [vmem:[#allocation54_spill] sm:$0xff]  ;;  %v5898_v36 = vld [vmem:[#allocation32_spill] sm:$0xff]  ;;  %s5952_s8 = sld [smem:[#allocation20_spill]] (%p2117_p12) }
 0x374   : >> { %v2431_v28 = vadd.f32 %v2762_v21, %v2430_v33  ;;  %v2766_v52 = vsel %vm2196_vm13, 1.0, %v3521_v3  ;;  %vm2198_vm15 = vcmp.eq.s32.totalorder %v5895_v47, %v5122_v51  ;;  %v2767_v61 = vsel %vm2197_vm14, 1.0, %v3521_v3  ;;  %v2128_v32 = vld [vmem:[%s5148_s5 + $0x18] sm:$0xff]  ;;  %v5900_v24 = vld [vmem:[#allocation33_spill] sm:$0xff]  ;;  %v2129_v19 = vld [vmem:[%s5148_s5 + $0x20] sm:$0xff]  ;;  %s5953_s7 = sld [smem:[#allocation101_spill]] (%p2117_p12) }
 0x375   : >> { %vm2199_vm0 = vcmp.eq.s32.totalorder %v5896_v45, %v5122_v51  ;;  %v2157_v16 = vmul.f32 %v2125_v29, %v5062_v2  ;;  %v2158_v6 = vmul.f32 %v2126_v40, %v5897_v39  ;;  %v2768_v11 = vsel %vm2198_vm15, 1.0, %v3521_v3  ;;  %v5899_v4 = vld [vmem:[#allocation55_spill] sm:$0xff]  ;;  %v5901_v30 = vld [vmem:[#allocation56_spill] sm:$0xff]  ;;  %v2130_v56 = vld [vmem:[%s5148_s5 + $0x28] sm:$0xff]  ;;  %s3352_s4 = scalar_lea.vmem (%p2117_p12), %s5499_s17, 128 }
 0x376   : >> { %v2432_v63 = vadd.f32 %v2763_v41, %v2431_v28  ;;  %vm2200_vm5 = vcmp.eq.s32.totalorder %v5898_v36, %v5122_v51  ;;  %v2159_v44 = vmul.f32 %v2127_v54, %v5899_v4  ;;  %vm2201_vm6 = vcmp.eq.s32.totalorder %v5900_v24, %v5122_v51  ;;  %v5902_v49 = vld [vmem:[#allocation34_spill] sm:$0xff]  ;;  %v5903_v15 = vld [vmem:[#allocation57_spill] sm:$0xff]  ;;  %v5904_v46 = vld [vmem:[#allocation35_spill] sm:$0xff]  ;;  %p3353_p5 = scmp.ne.s32.totalorder (%p2117_p12), %s5499_s17, %s3352_s4 }
 0x377   : >> { %v5168_v22 = vsel %vm2199_vm0, 1.0, %v3521_v3  ;;  %v2160_v10 = vmul.f32 %v2128_v32, %v5901_v30  ;;  %v2286_v7 = vmul.f32 %v2760_v60, %v2157_v16  ;;  %v2287_v26 = vmul.f32 %v2761_v55, %v2158_v6  ;;  %v2131_v5 = vld [vmem:[%s5148_s5 + $0x30] sm:$0xff]  ;;  %v5906_v42 = vld [vmem:[#allocation36_spill] sm:$0xff]  ;;  %v2132_v60 = vld [vmem:[%s5148_s5 + $0x38] sm:$0xff] }
 0x378   : >> { %v2433_v37 = vadd.f32 %v2764_v58, %v2432_v63  ;;  %v5173_v17 = vsel %vm2200_vm5, 1.0, %v3521_v3  ;;  %vm2202_vm1 = vcmp.eq.s32.totalorder %v5902_v49, %v5122_v51  ;;  %v2161_v59 = vmul.f32 %v2129_v19, %v5903_v15  ;;  %v5905_v25 = vld [vmem:[#allocation58_spill] sm:$0xff]  ;;  %v5907_v9 = vld [vmem:[#allocation59_spill] sm:$0xff]  ;;  %v5908_v1 = vld [vmem:[#allocation37_spill] sm:$0xff]  ;;  %s2793_s11 = sshll.u32 (%p2117_p12), %s5951_s13, 1 }
 0x379   : >> { %v2288_v18 = vmul.f32 %v2762_v21, %v2159_v44  ;;  %vm2203_vm2 = vcmp.eq.s32.totalorder %v5904_v46, %v5122_v51  ;;  %v5183_v38 = vsel %vm2201_vm6, 1.0, %v3521_v3  ;;  %v2162_v62 = vmul.f32 %v2130_v56, %v5905_v25  ;;  %v2133_v28 = vld [vmem:[%s5148_s5 + $0x40] sm:$0xff]  ;;  %v5910_v40 = vld [vmem:[#allocation38_spill] sm:$0xff]  ;;  %v2134_v47 = vld [vmem:[%s5148_s5 + $0x48] sm:$0xff]  ;;  %s2505_s15 = sadd.s32 (%p2117_p12), %s3478_s25, %s2793_s11  ;;  %p5954_p0 = scmp.ne.s32.totalorder (%p2117_p12), %s5952_s8, 0 }
 0x37a   : >> { %v2434_v12 = vadd.f32 %v2765_v34, %v2433_v37  ;;  %v2289_v14 = vmul.f32 %v2763_v41, %v2160_v10  ;;  %v2318_v27 = vadd.f32 %v2287_v26, %v2286_v7  ;;  %vm2204_vm3 = vcmp.eq.s32.totalorder %v5906_v42, %v5122_v51  ;;  %v5909_v63 = vld [vmem:[#allocation60_spill] sm:$0xff]  ;;  %v5911_v54 = vld [vmem:[#allocation61_spill] sm:$0xff]  ;;  %v5912_v32 = vld [vmem:[#allocation39_spill] sm:$0xff]  ;;  %s2794_s6 = sshll.u32 (%p2117_p12), %s2505_s15, 7  ;;  %s3522_s25 = smov (%p2117_p12), [#allocation11]  }
 0x37b   : >> { %v5191_v53 = vsel %vm2202_vm1, 1.0, %v3521_v3  ;;  %v5196_v21 = vmul.f32 %v2131_v5, %v5907_v9  ;;  %v2290_v48 = vmul.f32 %v2764_v58, %v2161_v59  ;;  %vm2205_vm4 = vcmp.eq.s32.totalorder %v5908_v1, %v5122_v51  ;;  %v2135_v36 = vld [vmem:[%s5148_s5 + $0x50] sm:$0xff]  ;;  %v5915_v49 = vld [vmem:[#allocation63_spill] sm:$0xff]  ;;  %v2137_v5 = vld [vmem:[%s5148_s5 + $0x60] sm:$0xff]  ;;  %s2507_s18 = scalar_lea.hbm (%p2117_p12), %s5953_s7, %s2794_s6  ;;  %p3354_p6 = pnand (%p2117_p12), %p3353_p5, %p5954_p0 }
 0x37c   : >> { %v2435_v20 = vadd.f32 %v2766_v52, %v2434_v12  ;;  %v2319_v33 = vadd.f32 %v2318_v27, %v2288_v18  ;;  %v5201_v41 = vsel %vm2203_vm2, 1.0, %v3521_v3  ;;  %v5206_v43 = vmul.f32 %v2132_v60, %v5909_v63  ;;  %v5913_v19 = vld [vmem:[#allocation62_spill] sm:$0xff]  ;;  %v5916_v18 = vld [vmem:[#allocation41_spill] sm:$0xff]  ;;  %v5920_v63 = vld [vmem:[#allocation43_spill] sm:$0xff] }
 0x37d   : >> { %v2291_v37 = vmul.f32 %v2765_v34, %v2162_v62  ;;  %vm2206_vm7 = vcmp.eq.s32.totalorder %v5910_v40, %v5122_v51  ;;  %v5211_v58 = vsel %vm2204_vm3, 1.0, %v3521_v3  ;;  %v5216_v45 = vmul.f32 %v2133_v28, %v5911_v54  ;;  %v5918_v60 = vld [vmem:[#allocation42_spill] sm:$0xff]  ;;  %p3355_p3 = pneg (%p2117_p12), %p3354_p6 }
 0x37e   : >> { %v2436_v0 = vadd.f32 %v2767_v61, %v2435_v20  ;;  %v2320_v29 = vadd.f32 %v2319_v33, %v2289_v14  ;;  %v2292_v20 = vmul.f32 %v2766_v52, %v5196_v21  ;;  %vm2207_vm8 = vcmp.eq.s32.totalorder %v5912_v32, %v5122_v51  ;;  %v5914_v52 = vld [vmem:[#allocation40_spill] sm:$0xff]  ;;  %v5919_v1 = vld [vmem:[#allocation66_spill] sm:$0xff] }
 0x37f   : >> { %v5222_v34 = vsel %vm2205_vm4, 1.0, %v3521_v3  ;;  %v2359_v4 = vmul.f32 %v2158_v6, %v2158_v6  ;;  %v2293_v30 = vmul.f32 %v2767_v61, %v5206_v43  ;;  %vm2208_vm9 = vcmp.eq.s32.totalorder %v5914_v52, %v5122_v51  ;;  %v5917_v14 = vld [vmem:[#allocation64_spill] sm:$0xff] }
 0x380   : >> { %v2437_v13 = vadd.f32 %v2768_v11, %v2436_v0  ;;  %v2321_v39 = vadd.f32 %v2320_v29, %v2290_v48  ;;  %v2358_v0 = vmul.f32 %v2157_v16, %v2157_v16  ;;  %v5236_v26 = vsel %vm2206_vm7, 1.0, %v3521_v3  ;;  %v2136_v16 = vld [vmem:[%s5148_s5 + $0x58] sm:$0xff] }
 0x381   : >> { %v2360_v56 = vmul.f32 %v2159_v44, %v2159_v44  ;;  %v2294_v61 = vmul.f32 %v2768_v11, %v5216_v45  ;;  %vm2209_vm10 = vcmp.eq.s32.totalorder %v5916_v18, %v5122_v51  ;;  %v5250_v46 = vsel %vm2207_vm8, 1.0, %v3521_v3 }
 0x382   : >> { %v2438_v50 = vadd.f32 %v5168_v22, %v2437_v13  ;;  %v5227_v13 = vmul.f32 %v2134_v47, %v5913_v19  ;;  %v2322_v7 = vadd.f32 %v2321_v39, %v2291_v37  ;;  %v2361_v44 = vmul.f32 %v2160_v10, %v2160_v10  ;;  %v2138_v10 = vld [vmem:[%s5148_s5 + $0x68] sm:$0xff]  ;;  %v5922_v39 = vld [vmem:[#allocation44_spill] sm:$0xff] }
 0x383   : >> { %v5255_v27 = vmul.f32 %v2136_v16, %v5917_v14  ;;  %vm2210_vm11 = vcmp.eq.s32.totalorder %v5918_v60, %v5122_v51  ;;  %v2362_v9 = vmul.f32 %v2161_v59, %v2161_v59  ;;  %v5270_v28 = vmul.f32 %v2137_v5, %v5919_v1  ;;  %v2139_v59 = vld [vmem:[%s5148_s5 + $0x70] sm:$0xff]  ;;  %v5923_v19 = vld [vmem:[#allocation68_spill] sm:$0xff]  ;;  %v5924_v16 = vld [vmem:[#allocation45_spill] sm:$0xff] }
 0x384   : >> { %v2439_v8 = vadd.f32 %v5173_v17, %v2438_v50  ;;  %v5241_v50 = vmul.f32 %v2135_v36, %v5915_v49  ;;  %v2323_v15 = vadd.f32 %v2322_v7, %v2292_v20  ;;  %v2295_v11 = vmul.f32 %v5168_v22, %v5227_v13 }
 0x385   : >> { %vm2211_vm12 = vcmp.eq.s32.totalorder %v5920_v63, %v5122_v51  ;;  %v5280_v37 = vsel %vm2209_vm10, 1.0, %v3521_v3  ;;  %v2363_v29 = vmul.f32 %v2162_v62, %v2162_v62  ;;  %vm2212_vm13 = vcmp.eq.s32.totalorder %v5922_v39, %v5122_v51  ;;  %v2140_v62 = vld [vmem:[%s5148_s5 + $0x78] sm:$0xff] }
 0x386   : >> { %v2440_v55 = vadd.f32 %v5183_v38, %v2439_v8  ;;  %v2390_v8 = vadd.f32 %v2359_v4, %v2358_v0  ;;  %v2324_v42 = vadd.f32 %v2323_v15, %v2293_v30  ;;  %v2296_v22 = vmul.f32 %v5173_v17, %v5241_v50  ;;  %v5925_v15 = vld [vmem:[#allocation69_spill] sm:$0xff] }
 0x387   : >> { %v2297_v17 = vmul.f32 %v5183_v38, %v5255_v27  ;;  %v5295_v36 = vsel %vm2210_vm11, 1.0, %v3521_v3  ;;  %v2364_v0 = vmul.f32 %v5196_v21, %v5196_v21  ;;  %v5302_v38 = vmul.f32 %v2139_v59, %v5923_v19  ;;  %v2141_v21 = vld [vmem:[%s5148_s5 + $0x80] sm:$0xff] }
 0x388   : >> { %v2441_v23 = vadd.f32 %v5191_v53, %v2440_v55  ;;  %v5265_v55 = vsel %vm2208_vm9, 1.0, %v3521_v3  ;;  %v2391_v48 = vadd.f32 %v2390_v8, %v2360_v56  ;;  %v2298_v30 = vmul.f32 %v5191_v53, %v5270_v28  ;;  %v5926_v8 = vld [vmem:[#allocation46_spill] sm:$0xff] }
 0x389   : >> { %vm2213_vm14 = vcmp.eq.s32.totalorder %v5924_v16, %v5122_v51  ;;  %v5312_v56 = vsel %vm2211_vm12, 1.0, %v3521_v3  ;;  %v5319_v53 = vmul.f32 %v2140_v62, %v5925_v15  ;;  %vm2214_vm15 = vcmp.eq.s32.totalorder %v5926_v8, %v5122_v51 }
 0x38a   : >> { %v2442_v12 = vadd.f32 %v5201_v41, %v2441_v23  ;;  %v2325_v23 = vadd.f32 %v2324_v42, %v2294_v61  ;;  %v2392_v40 = vadd.f32 %v2391_v48, %v2361_v44  ;;  %v2366_v14 = vmul.f32 %v5216_v45, %v5216_v45  ;;  %v2143_v45 = vld [vmem:[%s5148_s5 + $0x90] sm:$0xff] }
 0x38b   : >> { %v5346_v1 = vsel %vm2213_vm14, 1.0, %v3521_v3  ;;  %vm2470_vm7 = vcmp.eq.s32.totalorder %v5105_v35, %v5122_v51  ;;  %vm2471_vm8 = vcmp.eq.s32.totalorder %v5103_v31, 0  ;;  %vm2475_vm9 = vcmp.eq.s32.totalorder %v5103_v31, 1 }
 0x38c   : >> { %v2443_v24 = vadd.f32 %v5211_v58, %v2442_v12  ;;  %v5921_v12 = vld [vmem:[#allocation67_spill] sm:$0xff]  ;;  %v2326_v20 = vadd.f32 %v2325_v23, %v2295_v11  ;;  %v2393_v4 = vadd.f32 %v2392_v40, %v2362_v9  ;;  %v2300_v9 = vmul.f32 %v5211_v58, %v5302_v38  ;;  %vm2472_vm11 = vmand %vm2471_vm8, %vm2470_vm7 }
 0x38d   : >> { %v5285_v54 = vmul.f32 %v2138_v10, %v5921_v12  ;;  %v5927_v10 = vld [vmem:[#allocation70_spill] sm:$0xff]  ;;  %v2301_v40 = vmul.f32 %v5222_v34, %v5319_v53  ;;  %v5930_v12 = vld [vmem:[#allocation48_spill] sm:$0xff]  ;;  %vm2479_vm10 = vcmp.eq.s32.totalorder %v5103_v31, 2  ;;  %vm2476_vm12 = vmand %vm2475_vm9, %vm2470_vm7  ;;  %vm2483_vm14 = vcmp.eq.s32.totalorder (%p2117_p12), %v5103_v31, 3 }
 0x38e   : >> { %v2444_v6 = vadd.f32 %v5222_v34, %v2443_v24  ;;  %v2327_v7 = vadd.f32 %v2326_v20, %v2296_v22  ;;  %v2394_v49 = vadd.f32 %v2393_v4, %v2363_v29  ;;  %v2367_v22 = vmul.f32 %v5227_v13, %v5227_v13  ;;  %v5929_v29 = vld [vmem:[#allocation71_spill] sm:$0xff]  ;;  %v5931_v4 = vld [vmem:[#allocation72_spill] sm:$0xff] }
 0x38f   : >> { %v2299_v5 = vmul.f32 %v5201_v41, %v5285_v54  ;;  %v5336_v41 = vmul.f32 %v2141_v21, %v5927_v10  ;;  %vm2216_vm5 = vcmp.eq.s32.totalorder %v5930_v12, %v5122_v51  ;;  %v2144_v13 = vld [vmem:[%s5148_s5 + $0x98] sm:$0xff]  ;;  %v2368_v20 = vmul.f32 %v5241_v50, %v5241_v50  ;;  %v2145_v50 = vld [vmem:[%s5148_s5 + $0xa0] sm:$0xff]  ;;  %v5935_v10 = vld [vmem:[#allocation74_spill] sm:$0xff] }
 0x390   : >> { %v2445_v25 = vadd.f32 %v5236_v26, %v2444_v6  ;;  %v2365_v6 = vmul.f32 %v5206_v43, %v5206_v43  ;;  %v2328_v44 = vadd.f32 %v2327_v7, %v2297_v17  ;;  %v2142_v43 = vld [vmem:[%s5148_s5 + $0x88] sm:$0xff]  ;;  %v2395_v11 = vadd.f32 %v2394_v49, %v2364_v0  ;;  %v5938_v12 = vld [vmem:[#allocation52_spill] sm:$0xff] }
 0x391   : >> { %v5353_v58 = vmul.f32 %v2142_v43, %v5929_v29  ;;  %v5363_v17 = vsel %vm2214_vm15, 1.0, %v3521_v3  ;;  %v5370_v34 = vmul.f32 %v2143_v45, %v5931_v4  ;;  %v2369_v21 = vmul.f32 %v5255_v27, %v5255_v27  ;;  %v2146_v27 = vld [vmem:[%s5148_s5 + $0xa8] sm:$0xff]  ;;  %v5937_v29 = vld [vmem:[#allocation75_spill] sm:$0xff]  ;;  %v5939_v4 = vld [vmem:[#allocation76_spill] sm:$0xff] }
 0x392   : >> { %v2446_v33 = vadd.f32 %v5250_v46, %v2445_v25  ;;  %v5329_v25 = vsel %vm2212_vm13, 1.0, %v3521_v3  ;;  %v2329_v48 = vadd.f32 %v2328_v44, %v2298_v30  ;;  %v2396_v23 = vadd.f32 %v2395_v11, %v2365_v6  ;;  %v5932_v30 = vld [vmem:[#allocation49_spill] sm:$0xff]  ;;  %v5934_v44 = vld [vmem:[#allocation50_spill] sm:$0xff]  ;;  %vm2480_vm13 = vmand %vm2479_vm10, %vm2470_vm7 }
 0x393   : >> { %vm2217_vm6 = vcmp.eq.s32.totalorder %v5932_v30, %v5122_v51  ;;  %v2303_v15 = vmul.f32 %v5250_v46, %v5353_v58  ;;  %vm2218_vm1 = vcmp.eq.s32.totalorder %v5934_v44, %v5122_v51  ;;  %v5395_v43 = vsel %vm2216_vm5, 1.0, %v3521_v3  ;;  %v5940_v30 = vld [vmem:[#allocation53_spill] sm:$0xff] }
 0x394   : >> { %v2447_v47 = vadd.f32 %v5265_v55, %v2446_v33  ;;  %v5928_v33 = vld [vmem:[#allocation47_spill] sm:$0xff]  ;;  %v2397_v62 = vadd.f32 %v2396_v23, %v2366_v14  ;;  %v2370_v14 = vmul.f32 %v5270_v28, %v5270_v28  ;;  %v2177_v46 = vmul.f32 %v2145_v50, %v5935_v10  ;;  %v2147_v28 = vld [vmem:[%s5148_s5 + $0xb0] sm:$0xff] }
 0x395   : >> { %vm2215_vm0 = vcmp.eq.s32.totalorder %v5928_v33, %v5122_v51  ;;  %v5936_v33 = vld [vmem:[#allocation51_spill] sm:$0xff]  ;;  %v5410_v45 = vsel %vm2217_vm6, 1.0, %v3521_v3  ;;  %vm2220_vm3 = vcmp.eq.s32.totalorder %v5938_v12, %v5122_v51  ;;  %vm2221_vm4 = vcmp.eq.s32.totalorder %v5940_v30, %v5122_v51 }
 0x396   : >> { %v2448_v24 = vadd.f32 %v5280_v37, %v2447_v47  ;;  %v2330_v47 = vadd.f32 %v2329_v48, %v2299_v5  ;;  %v5380_v7 = vsel %vm2215_vm0, 1.0, %v3521_v3  ;;  %v2398_v6 = vadd.f32 %v2397_v62, %v2367_v22 }
 0x397   : >> { %vm2219_vm2 = vcmp.eq.s32.totalorder %v5936_v33, %v5122_v51  ;;  %v2371_v22 = vmul.f32 %v5285_v54, %v5285_v54  ;;  %v2372_v54 = vmul.f32 %v5302_v38, %v5302_v38  ;;  %v2373_v38 = vmul.f32 %v5319_v53, %v5319_v53  ;;  %v2151_v33 = vld [vmem:[%s5148_s5 + $0xd0] sm:$0xff] }
 0x398   : >> { %v2449_v61 = vadd.f32 %v5295_v36, %v2448_v24  ;;  %v2302_v24 = vmul.f32 %v5236_v26, %v5336_v41  ;;  %v2331_v19 = vadd.f32 %v2330_v47, %v2300_v9  ;;  %v2399_v11 = vadd.f32 %v2398_v6, %v2368_v20  ;;  %v2148_v20 = vld [vmem:[%s5148_s5 + $0xb8] sm:$0xff] }
 0x399   : >> { %v2304_v9 = vmul.f32 %v5265_v55, %v5370_v34  ;;  %v2178_v55 = vmul.f32 %v2146_v27, %v5937_v29  ;;  %v2789_v50 = vsel %vm2219_vm2, 1.0, %v3521_v3  ;;  %v2790_v44 = vsel %vm2220_vm3, 1.0, %v3521_v3  ;;  %v2150_v27 = vld [vmem:[%s5148_s5 + $0xc8] sm:$0xff] }
 0x39a   : >> { %v2450_v42 = vadd.f32 %v5312_v56, %v2449_v61  ;;  %v5933_v61 = vld [vmem:[#allocation73_spill] sm:$0xff]  ;;  %v2332_v5 = vadd.f32 %v2331_v19, %v2301_v40  ;;  %v2400_v23 = vadd.f32 %v2399_v11, %v2369_v21  ;;  %v2149_v21 = vld [vmem:[%s5148_s5 + $0xc0] sm:$0xff]  ;;  %vm2484_vm15 = vcmp.eq.s32.totalorder (%p2117_p12), %v5105_v35, 0 }
 0x39b   : >> { %v2176_v26 = vmul.f32 %v2144_v13, %v5933_v61  ;;  %v5424_v13 = vsel %vm2218_vm1, 1.0, %v3521_v3  ;;  %v5941_v61 = vld [vmem:[#allocation95_spill] sm:$0xff]  ;;  %vm2488_vm0 = vcmp.eq.s32.totalorder (%p2117_p12), %v5105_v35, 1  ;;  %vm2485_vm5 = vmand (%p2117_p12), %vm2483_vm14, %vm2484_vm15  ;;  %v2490_v51 = vstv (%p2117_p12), %s5109_s2  ;;  %s3356_s2 = sshll.u32 (%p2117_p12), %s3522_s25, 4  ;;  %s3357_s2 = int_to_ptr.vmem [resolvable:$false] %s3356_s2 }
 0x39c   : >> { %v2451_v59 = vadd.f32 %v5329_v25, %v2450_v42  ;;  %v2333_v48 = vadd.f32 %v2332_v5, %v2302_v24  ;;  %v2401_v62 = vadd.f32 %v2400_v23, %v2370_v14  ;;  %v2306_v24 = vmul.f32 %v5295_v36, %v2177_v46  ;;  %vm2489_vm6 = vmand (%p2117_p12), %vm2483_vm14, %vm2488_vm0  ;;  %s3358_s0 = scalar_lea.vmem (%p2117_p12), %s3357_s2, 256  ;;  %p3359_p4 = scmp.lt.s32.totalorder (%p2117_p12), %s5499_s17, %s3357_s2 }
 0x39d   : >> { %v2305_v40 = vmul.f32 %v5280_v37, %v2176_v26  ;;  %v2179_v37 = vmul.f32 %v2147_v28, %v5939_v4  ;;  %v2307_v36 = vmul.f32 %v5312_v56, %v2178_v55  ;;  %v2374_v14 = vmul.f32 %v5336_v41, %v5336_v41  ;;  %v5943_v41 = vld [vmem:[#allocation96_spill] sm:$0xff]  ;;  %p3360_p13 = scmp.lt.s32.totalorder (%p2117_p12), %s3358_s0, %s3352_s4 }
 0x39e   : >> { %v2452_v0 = vadd.f32 %v5346_v1, %v2451_v59  ;;  %v2334_v47 = vadd.f32 %v2333_v48, %v2303_v15  ;;  %v2402_v6 = vadd.f32 %v2401_v62, %v2371_v22  ;;  %v2180_v15 = vmul.f32 %v2148_v20, %v5941_v61 }
 0x39f   : >> { %v2791_v56 = vsel %vm2221_vm4, 1.0, %v3521_v3  ;;  %v2375_v28 = vmul.f32 %v5353_v58, %v5353_v58  ;;  %v2377_v4 = vmul.f32 %v2176_v26, %v2176_v26  ;;  %v5947_v26 = vld [vmem:[#allocation83_spill] sm:$0xff]  ;;  %p3361_p7 = por (%p2117_p12), %p3360_p13, %p3359_p4 }
 0x3a0   : >> { %v2453_v49 = vadd.f32 %v5363_v17, %v2452_v0  ;;  %v2335_v19 = vadd.f32 %v2334_v47, %v2304_v9  ;;  %v2403_v11 = vadd.f32 %v2402_v6, %v2372_v54  ;;  %v2308_v9 = vmul.f32 %v5329_v25, %v2179_v37  ;;  %v2152_v25 = vld [vmem:[%s5148_s5 + $0xd8] sm:$0xff]  ;;  %v5944_v54 = vld [vmem:[#allocation80_spill] sm:$0xff] }
 0x3a1   : >> { %v2309_v29 = vmul.f32 %v5346_v1, %v2180_v15  ;;  %v2376_v47 = vmul.f32 %v5370_v34, %v5370_v34  ;;  %v2183_v3 = vmul.f32 %v2151_v33, %v5944_v54  ;;  %v2378_v34 = vmul.f32 %v2177_v46, %v2177_v46  ;;  %v5948_v33 = vld [vmem:[#allocation97_spill] sm:$0xff]  ;;  %p3362_p9 = pnand (%p2117_p12), %p3361_p7, %p3355_p3 }
 0x3a2   : >> { %v2454_v42 = vadd.f32 %v5380_v7, %v2453_v49  ;;  %v2336_v5 = vadd.f32 %v2335_v19, %v2305_v40  ;;  %v2404_v22 = vadd.f32 %v2403_v11, %v2373_v38  ;;  %v5945_v19 = vld [vmem:[#allocation81_spill] sm:$0xff] }
 0x3a3   : >> { %v2184_v1 = vmul.f32 %v2152_v25, %v5945_v19  ;;  %v2154_v38 = vld [vmem:[%s5148_s5 + $0xe8] sm:$0xff] }
 0x3a4   : >> { %v2455_v59 = vadd.f32 %v5395_v43, %v2454_v42  ;;  %v5942_v42 = vld [vmem:[#allocation78_spill] sm:$0xff]  ;;  %v2337_v48 = vadd.f32 %v2336_v5, %v2306_v24  ;;  %v2405_v12 = vadd.f32 %v2404_v22, %v2374_v14  ;;  %v2186_v11 = vmul.f32 %v2154_v38, %v5947_v26 }
 0x3a5   : >> { %v2181_v10 = vmul.f32 %v2149_v21, %v5942_v42 }
 0x3a6   : >> { %v2456_v0 = vadd.f32 %v5410_v45, %v2455_v59  ;;  %v2182_v59 = vmul.f32 %v2150_v27, %v5943_v41  ;;  %v2338_v40 = vadd.f32 %v2337_v48, %v2307_v36  ;;  %v2406_v24 = vadd.f32 %v2405_v12, %v2375_v28 }
 0x3a7   : >> { %v2310_v62 = vmul.f32 %v5363_v17, %v2181_v10  ;;  %v2312_v36 = vmul.f32 %v5395_v43, %v2183_v3  ;;  %v2155_v17 = vld [vmem:[%s5148_s5 + $0xf0] sm:$0xff]  ;;  %v2379_v27 = vmul.f32 %v2178_v55, %v2178_v55  ;;  %v2380_v48 = vmul.f32 %v2179_v37, %v2179_v37  ;;  %v5949_v43 = vld [vmem:[#allocation98_spill] sm:$0xff] }
 0x3a8   : >> { %v2457_v49 = vadd.f32 %v5424_v13, %v2456_v0  ;;  %v2339_v58 = vadd.f32 %v2338_v40, %v2308_v9  ;;  %v2153_v0 = vld [vmem:[%s5148_s5 + $0xe0] sm:$0xff]  ;;  %v2311_v30 = vmul.f32 %v5380_v7, %v2182_v59  ;;  %v2407_v6 = vadd.f32 %v2406_v24, %v2376_v47  ;;  %v2156_v9 = vld [vmem:[%s5148_s5 + $0xf8] sm:$0xff] }
 0x3a9   : >> { %v2187_v28 = vmul.f32 %v2155_v17, %v5948_v33  ;;  %v2315_v40 = vmul.f32 %v2789_v50, %v2186_v11  ;;  %v2382_v25 = vmul.f32 %v2181_v10, %v2181_v10  ;;  %v2385_v24 = vmul.f32 %v2184_v1, %v2184_v1 }
 0x3aa   : >> { %v2458_v53 = vadd.f32 %v2789_v50, %v2457_v49  ;;  %v2340_v21 = vadd.f32 %v2339_v58, %v2309_v29  ;;  %v5946_v49 = vld [vmem:[#allocation82_spill] sm:$0xff]  ;;  %v2408_v14 = vadd.f32 %v2407_v6, %v2377_v4  ;;  %v2188_v29 = vmul.f32 %v2156_v9, %v5949_v43 }
 0x3ab   : >> { %v2185_v61 = vmul.f32 %v2153_v0, %v5946_v49  ;;  %v2316_v12 = vmul.f32 %v2790_v44, %v2187_v28  ;;  %v2384_v58 = vmul.f32 %v2183_v3, %v2183_v3  ;;  %v2388_v38 = vmul.f32 %v2187_v28, %v2187_v28 }
 0x3ac   : >> { %v2459_v23 = vadd.f32 %v2790_v44, %v2458_v53  ;;  %v2341_v5 = vadd.f32 %v2340_v21, %v2310_v62  ;;  %v2313_v53 = vmul.f32 %v5410_v45, %v2184_v1  ;;  %v2409_v7 = vadd.f32 %v2408_v14, %v2378_v34 }
 0x3ad   : >> { %v2314_v46 = vmul.f32 %v5424_v13, %v2185_v61  ;;  %v2383_v45 = vmul.f32 %v2182_v59, %v2182_v59  ;;  %v2317_v62 = vmul.f32 %v2791_v56, %v2188_v29  ;;  %v2387_v21 = vmul.f32 %v2186_v11, %v2186_v11 }
 0x3ae   : >> { %v2460_v20 = vadd.f32 %v2791_v56, %v2459_v23  ;;  %v2342_v42 = vadd.f32 %v2341_v5, %v2311_v30  ;;  %v2381_v23 = vmul.f32 %v2180_v15, %v2180_v15  ;;  %v2410_v41 = vadd.f32 %v2409_v7, %v2379_v27 }
 0x3af   : >> { %v2386_v15 = vmul.f32 %v2185_v61, %v2185_v61  ;;  %v2389_v34 = vmul.f32 %v2188_v29, %v2188_v29 }
 0x3b0   : >> { %2461 = vadd.xlane.f32.xlu1 %v2460_v20  ;;  %v2343_v22 = vadd.f32 %v2342_v42, %v2312_v36  ;;  %v2411_v47 = vadd.f32 %v2410_v41, %v2380_v48 }
 0x3b2   : >> { %v2344_v55 = vadd.f32 %v2343_v22, %v2313_v53  ;;  %v2412_v54 = vadd.f32 %v2411_v47, %v2381_v23 }
 0x3b4   : >> { %v2345_v20 = vadd.f32 %v2344_v55, %v2314_v46  ;;  %v2413_v0 = vadd.f32 %v2412_v54, %v2382_v25 }
 0x3b6   : >> { %v2346_v37 = vadd.f32 %v2345_v20, %v2315_v40  ;;  %v2414_v13 = vadd.f32 %v2413_v0, %v2383_v45 }
 0x3b8   : >> { %v2347_v4 = vadd.f32 %v2346_v37, %v2316_v12  ;;  %v2415_v30 = vadd.f32 %v2414_v13, %v2384_v58 }
 0x3ba   : >> { %v2348_v19 = vadd.f32 %v2347_v4, %v2317_v62  ;;  %v2416_v50 = vadd.f32 %v2415_v30, %v2385_v24 }
 0x3bc   : >> { %2349 = vadd.xlane.f32.xlu0 %v2348_v19  ;;  %v2417_v10 = vadd.f32 %v2416_v50, %v2386_v15 }
 0x3be   : >> { %v2418_v44 = vadd.f32 %v2417_v10, %v2387_v21 }
 0x3c0   : >> { %v2419_v6 = vadd.f32 %v2418_v44, %v2388_v38 }
 0x3c2   : >> { %v2420_v59 = vadd.f32 %v2419_v6, %v2389_v34 }
 0x3c4   : >> { %2421 = vadd.xlane.f32.xlu0 %v2420_v59 }
 0x439   : >> { %v2462_v56 = vpop.xlane.xlu1 %2461 }
 0x43a   : >> { %v2463_v36 = vrot.slane %v2462_v56, 4 }
 0x43c   : >> { %v2464_v17 = vadd.f32 %v2463_v36, %v2462_v56 }
 0x43e   : >> { %v2465_v14 = vrot.slane %v2464_v17, 2 }
 0x440   : >> { %v2466_v9 = vadd.f32 %v2465_v14, %v2464_v17 }
 0x442   : >> { %v2467_v33 = vrot.slane %v2466_v9, 1 }
 0x444   : >> { %v2468_v22 = vadd.f32 %v2467_v33, %v2466_v9 }
 0x445   : >> { %v2350_v49 = vpop.xlane.xlu0 %2349 }
 0x446   : >> { %v2351_v3 = vrot.slane %v2350_v49, 4 }
 0x448   : >> { %v2352_v5 = vadd.f32 %v2351_v3, %v2350_v49 }
 0x44a   : >> { %v2353_v1 = vrot.slane %v2352_v5, 2 }
 0x44c   : >> { %v2354_v27 = vadd.f32 %v2353_v1, %v2352_v5 }
 0x44d   : >> { %v2422_v26 = vpop.xlane.xlu0 %2421 }
 0x44e   : >> { %v2355_v61 = vrot.slane %v2354_v27, 1  ;;  %v2423_v53 = vrot.slane %v2422_v26, 4 }
 0x450   : >> { %v2356_v11 = vadd.f32 %v2355_v61, %v2354_v27  ;;  %v2424_v42 = vadd.f32 %v2423_v53, %v2422_v26 }
 0x452   : >> { %2808 = vpush %v2356_v11  ;;  %v2425_v48 = vrot.slane %v2424_v42, 2 }
 0x454   : >> { %v2426_v7 = vadd.f32 %v2425_v48, %v2424_v42 }
 0x456   : >> { %v2427_v28 = vrot.slane %v2426_v7, 1 }
 0x458   : >> { %v2428_v46 = vadd.f32 %v2427_v28, %v2426_v7 }
 0x45a   : >> { %2810 = vpush %v2428_v46 }
 0x45b   : >> { %2812 = vpush %v2468_v22 }
 0x483   : >> { %s2809_s19 = spop %2808 }
 0x484   : >> { %v2473_v23 = vstv %s2809_s19 }
 0x485   : >> { %v2474_v41 = vsel %vm2472_vm11, %v2473_v23, %v3506_v57 }
 0x48b   : >> { %s2811_s12 = spop %2810  ;;  %2119 = sbr.rel (!%p2117_p12) target bundleno = 879 (0x36f), region = 143 }
 0x48c   : >> { %v2477_v43 = vstv %s2811_s12  ;;  %s2813_s26 = spop %2812 }
 0x48d   : >> { %v2478_v29 = vsel %vm2476_vm12, %v2477_v43, %v2474_v41  ;;  %v2481_v40 = vstv %s2813_s26 }
 0x48e   : >> { %v2482_v55 = vsel %vm2480_vm13, %v2481_v40, %v2478_v29  }
 0x48f   : >> { %v5950_v57 = vmov %v2482_v55 }
 0x490   : > { %v2486_v57 = vstv %s5107_s14  ;;  %s2494_s14 = scalar_lea.sflag [#allocation8], %s3726_s10 }
 0x491   : > { %v2487_v2 = vsel %vm2485_vm5, %v2486_v57, %v2482_v55 }
 0x492   : > { %v2491_v31 = vsel %vm2489_vm6, %v2490_v51, %v2487_v2 }
 0x493   : > { %2492 = vst [vmem:[%s3882_s1] sm:$0xff] %v2491_v31 }
 0x494   : > { %3365 = shalt.err (!%p3362_p9)
}
 0x495   : > { %s3366_s5 = scalar_lea.hbm %s2507_s18, 128  ;;  %s3370_s19 = scalar_lea.hbm %s5953_s7, 512 }
 0x496   : > { %p3367_p8 = scmp.ne.s32.totalorder %s2507_s18, %s3366_s5  ;;  %p3371_p11 = scmp.lt.s32.totalorder %s2507_s18, %s5953_s7 }
 0x497   : > { %p3372_p1 = scmp.lt.s32.totalorder %s3370_s19, %s3366_s5 }
 0x498   : > { %p3368_p2 = pnand %p3367_p8, %p5954_p0 }
 0x499   : > { %p3373_p12 = por %p3372_p1, %p3371_p11 }
 0x49a   : > { %p3369_p10 = pneg %p3368_p2 }
 0x49c   : > { %p3374_p5 = pnand %p3373_p12, %p3369_p10 }
 0x49e   : > { %3377 = shalt.err (!%p3374_p5)
}
 0x49f   : > { %2818 = dma.vmem_to_hbm [thread:$0]  (%p5954_p0), %s5499_s17, 128, %s2507_s18, %s2494_s14  }
 0x4a0 PF: > { %s5955_s13 = sld [smem:[#allocation16_spill]]  ;;  %p2832_p6 = scmp.ge.s32.totalorder %s3494_s29, 2 }
 0x4a1   : > { %s5956_s11 = sld [smem:[#allocation21_spill]] }
 0x4a6   : > { %s2521_s15 = sand.u32 1, %s5955_s13  }
 0x4a7   : > { %p5957_p3 = scmp.ne.s32.totalorder %s5956_s11, 0  ;;  %s2522_s6 = scalar_lea.sflag [#allocation8], %s2521_s15 }
 0x4a9   : > { %p2828_p4 = pnand %p2832_p6, %p5957_p3 }
 0x4ab   : > { %p2829_p13 = pneg %p2828_p4 }
 0x4ad   : > { %3449 = dma.done.wait (%p2829_p13), %s2522_s6, 128  }
 0x4ae   : > { %3451 = vsyncadd (%p2829_p13), %s2522_s6, 4294967168  ;;  %s29_s29 = sadd.s32 1, %s3494_s29   ;;  %s5958_s8 = sld [smem:[#allocation18_spill]] }
 0x4af   : > { %p26_p7 = scmp.ge.s32.totalorder %s29_s29, 6   ;;  %s5959_s17 = sld [smem:[#allocation19_spill]] }
 0x4b0   : > { %s5960_s0 = smov %s3458_s20  ;;  %s5961_s20 = smov %s3462_s21 }
 0x4b1   : > { %s5962_s21 = smov %s3696_s9  ;;  %s5963_s22 = smov %s3470_s23 }
 0x4b2   : > { %s5964_s23 = smov %s3474_s24  ;;  %s5965_s24 = smov %s3693_s30 }
 0x4b3   : > { %s5966_s25 = smov %s3486_s27  ;;  %s5967_s26 = smov %s3490_s28 }
 0x4b4   : > { %s5968_s27 = smov %s5958_s8  ;;  %28 = sbr.rel (!%p26_p7) target bundleno = 27 (0x1b), region = 154 }
 0x4b5   : > { %s5969_s28 = smov %s5959_s17 }
 0x4b9   :  { %2527 = vsyncpa [#allocation7], 1 }
 0x4ba   :  { %2529 = vsyncpa [#allocation7 + $0x1], 1 }
 0x4bb   :  { %2530 = vsyncpa [#allocation10], 1 }
 0x4bc   :  { %2532 = vsyncpa [#allocation10 + $0x1], 1 }
 0x4bd   :  { %2533 = vsyncpa [#allocation8], 1 }
 0x4be   :  { %2535 = vsyncpa [#allocation8 + $0x1], 1 }

</bundles_post_ra>
